<compile_context>
chip_gen: v5e
topology: v5e:2x2
jax: 0.10.0
libtpu: 0.0.40
codegen_flags: <defaults>
</compile_context>

<pallas_src>
import jax
import jax.numpy as jnp
import numpy as np
from jax.experimental import pallas as pl
from jax.experimental.pallas import tpu as pltpu

BN_EPS = 1e-5
HIDDEN = 32
N_ACTIONS = 5
CONV_CH = (3, 16, 32, 64)


# ----------------------------- Pallas kernels ------------------------------ #

def _conv_bn_relu_block(a2d, pad_ref, w_ref, b_ref, g_ref, be_ref):
    """One fused Conv3x3(pad=1) + training-mode BN + ReLU layer, fully in VMEM.

    a2d:     (N*H*W, Cin) activation value, rows ordered (n, h, w).
    pad_ref: (N, H+2, W+2, Cin) VMEM scratch for the zero-padded activation.
    w_ref:   (9, Cin, Cout) conv weights, k = ky*3 + kx.
    b_ref / g_ref / be_ref: (1, Cout) conv bias / BN gamma / BN beta.
    Returns (N*H*W, Cout) f32 value.
    """
    N, Hp, Wp, Cin = pad_ref.shape
    H, W = Hp - 2, Wp - 2
    Cout = b_ref.shape[-1]
    R = N * H * W

    # Zero-padded activation lives in VMEM scratch (never goes to HBM).
    pad_ref[...] = jnp.zeros((N, Hp, Wp, Cin), jnp.float32)
    pad_ref[:, 1:H + 1, 1:W + 1, :] = a2d.reshape(N, H, W, Cin)
    ap = pad_ref[...]

    # In-kernel im2col: 9 shifted-window accumulating matmuls on the MXU.
    acc = jnp.zeros((R, Cout), jnp.float32)
    for k in range(9):
        ky, kx = divmod(k, 3)
        patch = ap[:, ky:ky + H, kx:kx + W, :].reshape(R, Cin)
        acc = acc + jnp.dot(patch, w_ref[k], preferred_element_type=jnp.float32)
    acc = acc + b_ref[...]                                     # conv bias

    # BatchNorm2d training mode: biased batch statistics over (N, H, W) == rows.
    mean = jnp.mean(acc, axis=0, keepdims=True)
    var = jnp.mean((acc - mean) ** 2, axis=0, keepdims=True)
    y = (acc - mean) * jax.lax.rsqrt(var + BN_EPS)
    y = y * g_ref[...] + be_ref[...]
    return jnp.maximum(y, 0.0)                                 # ReLU


def heads_kernel(x_ref, w1_ref, b1_ref, w2_ref, b2_ref, o_ref):
    # x: (N, F)  w1: (F, C*32)  b1: (1, C*32)  w2: (C*32, P) block-diag  b2: (1, P)
    h = jnp.dot(x_ref[...], w1_ref[...], preferred_element_type=jnp.float32) + b1_ref[...]
    h = jnp.where(h > 0.0, h, jnp.exp(h) - 1.0)                # ELU(alpha=1)
    o_ref[...] = jnp.dot(h, w2_ref[...], preferred_element_type=jnp.float32) + b2_ref[...]


# ------------------------------ JAX wrappers -------------------------------- #

def conv_stack(x2d, prep, N, H, W):
    """Fused conv1->bn->relu->conv2->...->conv3 stack. x2d: (N*H*W, 3) NHWC rows."""
    R = N * H * W

    def kernel(x_ref,
               w1, b1, g1, be1,
               w2, b2, g2, be2,
               w3, b3, g3, be3,
               o_ref, pad1, pad2, pad3):
        a = _conv_bn_relu_block(x_ref[...], pad1, w1, b1, g1, be1)
        a = _conv_bn_relu_block(a, pad2, w2, b2, g2, be2)
        a = _conv_bn_relu_block(a, pad3, w3, b3, g3, be3)
        o_ref[...] = a

    vmem = pl.BlockSpec(memory_space=pltpu.MemorySpace.VMEM)
    return pl.pallas_call(
        kernel,
        out_shape=jax.ShapeDtypeStruct((R, CONV_CH[3]), jnp.float32),
        in_specs=[vmem] * 13,
        out_specs=vmem,
        scratch_shapes=[
            pltpu.VMEM((N, H + 2, W + 2, CONV_CH[0]), jnp.float32),
            pltpu.VMEM((N, H + 2, W + 2, CONV_CH[1]), jnp.float32),
            pltpu.VMEM((N, H + 2, W + 2, CONV_CH[2]), jnp.float32),
        ],
        compiler_params=pltpu.CompilerParams(vmem_limit_bytes=32 * 1024 * 1024),
    )(x2d,
      prep["cw1"], prep["cb1"], prep["cg1"], prep["cbe1"],
      prep["cw2"], prep["cb2"], prep["cg2"], prep["cbe2"],
      prep["cw3"], prep["cb3"], prep["cg3"], prep["cbe3"])


def car_heads(x_flat, prep):
    """x_flat: (N, F) NHWC-flattened features. Returns lane-dense (N, P) slab."""
    N = x_flat.shape[0]
    P = prep["w2_bd"].shape[1]
    vmem = pl.BlockSpec(memory_space=pltpu.MemorySpace.VMEM)
    return pl.pallas_call(
        heads_kernel,
        out_shape=jax.ShapeDtypeStruct((N, P), jnp.float32),
        in_specs=[vmem] * 5,
        out_specs=vmem,
        compiler_params=pltpu.CompilerParams(vmem_limit_bytes=32 * 1024 * 1024),
    )(x_flat, prep["w1_cat"], prep["b1_cat"], prep["w2_bd"], prep["b2_pad"])


def car_leader_forward(prep, x_nchw):
    """x_nchw: (N, 3, H, W) like PyTorch. Returns (N, number_of_cars, 5)."""
    N = x_nchw.shape[0]
    H, W, C = prep["H"], prep["W"], prep["num_cars"]
    # Tiny one-off layout change (N*3*H*W elements); everything downstream is fused.
    x2d = jnp.transpose(x_nchw, (0, 2, 3, 1)).reshape(N * H * W, CONV_CH[0])
    feat = conv_stack(x2d, prep, N, H, W)                      # (N*H*W, 64)
    # NHWC flatten is a free contiguous reshape; the NCHW permutation implied by
    # PyTorch's Flatten was folded into w1_cat at prep time.
    x_flat = feat.reshape(N, H * W * CONV_CH[3])
    out_pad = car_heads(x_flat, prep)                          # (N, P) lane-dense
    return out_pad[:, :C * N_ACTIONS].reshape(N, C, N_ACTIONS)


# --------------------- one-time parameter preparation ----------------------- #

def prepare_params(params, grid_shape, number_of_cars):
    """One-time re-layout of PyTorch-style params into kernel-friendly tensors."""
    H, W = grid_shape
    C = number_of_cars
    F = CONV_CH[3] * H * W
    prep = {"H": H, "W": W, "num_cars": C}

    def conv(wk, bk, gk, bek, cin, cout, idx):
        return {
            f"cw{idx}": params[wk].reshape(9, cin, cout),
            f"cb{idx}": params[bk].reshape(1, cout),
            f"cg{idx}": params[gk].reshape(1, cout),
            f"cbe{idx}": params[bek].reshape(1, cout),
        }

    prep.update(conv("w_c1", "b_c1", "g1", "be1", CONV_CH[0], CONV_CH[1], 1))
    prep.update(conv("w_c2", "b_c2", "g2", "be2", CONV_CH[1], CONV_CH[2], 2))
    prep.update(conv("w_c3", "b_c3", "g3", "be3", CONV_CH[2], CONV_CH[3], 3))

    # Fold PyTorch's NCHW flatten (f_torch = c*H*W + h*W + w) into w1 so the kernel
    # can consume the natural NHWC flatten (f_nhwc = (h*W + w)*64 + c) directly.
    hw = np.arange(H * W)
    ch = np.arange(CONV_CH[3])
    perm = (ch[None, :] * (H * W) + hw[:, None]).reshape(-1)   # f_nhwc -> f_torch
    w1_perm = params["w1"][:, perm, :]                         # (C, F, 32)
    prep["w1_cat"] = jnp.transpose(w1_perm, (1, 0, 2)).reshape(F, C * HIDDEN)
    prep["b1_cat"] = params["b1"].reshape(1, C * HIDDEN)

    # Block-diagonal second layer; pad output width to a lane-dense multiple of 128.
    P = max(128, ((C * N_ACTIONS + 127) // 128) * 128)
    w2_bd = jnp.zeros((C * HIDDEN, P), jnp.float32)
    b2_pad = jnp.zeros((1, P), jnp.float32)
    for c in range(C):
        w2_bd = w2_bd.at[c * HIDDEN:(c + 1) * HIDDEN,
                         c * N_ACTIONS:(c + 1) * N_ACTIONS].set(params["w2"][c])
    b2_pad = b2_pad.at[0, :C * N_ACTIONS].set(params["b2"].reshape(-1))
    prep["w2_bd"] = w2_bd
    prep["b2_pad"] = b2_pad
    return prep


# --------------------------- deterministic params --------------------------- #

def init_params(key, grid_shape, number_of_cars):
    H, W = grid_shape
    features = 64 * H * W  # dimensions_after_conv(grid_shape, 64)
    ks = jax.random.split(key, 10)

    def rnd(k, shape, scale):
        return (scale * jax.random.normal(k, shape)).astype(jnp.float32)

    return dict(
        w_c1=rnd(ks[0], (3, 3, 3, 16), 0.1), b_c1=rnd(ks[1], (16,), 0.1),
        g1=jnp.ones((16,), jnp.float32), be1=jnp.zeros((16,), jnp.float32),
        w_c2=rnd(ks[2], (3, 3, 16, 32), 0.1), b_c2=rnd(ks[3], (32,), 0.1),
        g2=jnp.ones((32,), jnp.float32), be2=jnp.zeros((32,), jnp.float32),
        w_c3=rnd(ks[4], (3, 3, 32, 64), 0.1), b_c3=rnd(ks[5], (64,), 0.1),
        g3=jnp.ones((64,), jnp.float32), be3=jnp.zeros((64,), jnp.float32),
        w1=rnd(ks[6], (number_of_cars, features, HIDDEN), 0.02),
        b1=rnd(ks[7], (number_of_cars, HIDDEN), 0.02),
        w2=rnd(ks[8], (number_of_cars, HIDDEN, N_ACTIONS), 0.1),
        b2=rnd(ks[9], (number_of_cars, N_ACTIONS), 0.1),
    )


# ------------------------------ pure-JAX ref -------------------------------- #

def reference_forward(params, x_nchw):
    x = jnp.transpose(x_nchw, (0, 2, 3, 1))

    def conv_block(x, w, b, g, be):
        y = jax.lax.conv_general_dilated(
            x, w, window_strides=(1, 1), padding="SAME",
            dimension_numbers=("NHWC", "HWIO", "NHWC")) + b
        mean = jnp.mean(y, axis=(0, 1, 2), keepdims=True)
        var = jnp.mean((y - mean) ** 2, axis=(0, 1, 2), keepdims=True)
        y = (y - mean) / jnp.sqrt(var + BN_EPS) * g + be
        return jnp.maximum(y, 0.0)

    x = conv_block(x, params["w_c1"], params["b_c1"], params["g1"], params["be1"])
    x = conv_block(x, params["w_c2"], params["b_c2"], params["g2"], params["be2"])
    x = conv_block(x, params["w_c3"], params["b_c3"], params["g3"], params["be3"])
    N, H, W, C = x.shape
    x_flat = jnp.transpose(x, (0, 3, 1, 2)).reshape(N, C * H * W)  # PyTorch NCHW flatten

    outs = []
    for c in range(params["w1"].shape[0]):
        h = x_flat @ params["w1"][c] + params["b1"][c]
        h = jnp.where(h > 0.0, h, jnp.exp(h) - 1.0)
        outs.append(h @ params["w2"][c] + params["b2"][c])
    return jnp.stack(outs, axis=1)


# ----------------------------------- main ----------------------------------- #

if __name__ == "__main__":
    batch = 2
    grid_shape = (8, 8)
    number_of_cars = 3

    key = jax.random.PRNGKey(0)
    kx, kp = jax.random.split(key)
    x = jax.random.normal(kx, (batch, 3, grid_shape[0], grid_shape[1]), jnp.float32)
    params = init_params(kp, grid_shape, number_of_cars)
    prep = prepare_params(params, grid_shape, number_of_cars)

    out = jax.block_until_ready(car_leader_forward(prep, x))
    assert out.shape == (batch, number_of_cars, N_ACTIONS), out.shape

    ref = jax.block_until_ready(reference_forward(params, x))
    np.testing.assert_allclose(np.asarray(out), np.asarray(ref), rtol=2e-3, atol=2e-3)

    print("KERNEL_OK")
</pallas_src>

<mosaic_0001>
module attributes {stable_mosaic.version = 11 : i64} {
  func.func @kernel(%arg0: memref<128x3xf32, #tpu.memory_space<vmem>>, %arg1: memref<9x3x16xf32, #tpu.memory_space<vmem>>, %arg2: memref<1x16xf32, #tpu.memory_space<vmem>>, %arg3: memref<1x16xf32, #tpu.memory_space<vmem>>, %arg4: memref<1x16xf32, #tpu.memory_space<vmem>>, %arg5: memref<9x16x32xf32, #tpu.memory_space<vmem>>, %arg6: memref<1x32xf32, #tpu.memory_space<vmem>>, %arg7: memref<1x32xf32, #tpu.memory_space<vmem>>, %arg8: memref<1x32xf32, #tpu.memory_space<vmem>>, %arg9: memref<9x32x64xf32, #tpu.memory_space<vmem>>, %arg10: memref<1x64xf32, #tpu.memory_space<vmem>>, %arg11: memref<1x64xf32, #tpu.memory_space<vmem>>, %arg12: memref<1x64xf32, #tpu.memory_space<vmem>>, %arg13: memref<128x64xf32, #tpu.memory_space<vmem>>, %arg14: memref<2x10x10x3xf32, #tpu.memory_space<vmem>>, %arg15: memref<2x10x10x16xf32, #tpu.memory_space<vmem>>, %arg16: memref<2x10x10x32xf32, #tpu.memory_space<vmem>>) attributes {dimension_semantics = [], scalar_prefetch = 0 : i64, scratch_operands = 3 : i64, tpu.core_type = #tpu.core_type<tc>} {
    %c0 = arith.constant 0 : index
    %c0_0 = arith.constant 0 : index
    %0 = vector.load %arg0[%c0, %c0_0] : memref<128x3xf32, #tpu.memory_space<vmem>>, vector<128x3xf32>
    %cst = arith.constant 0.000000e+00 : f32
    %1 = vector.broadcast %cst : f32 to vector<2x10x10x3xf32>
    %c0_1 = arith.constant 0 : index
    %c0_2 = arith.constant 0 : index
    %c0_3 = arith.constant 0 : index
    %c0_4 = arith.constant 0 : index
    %2 = vector.load %arg14[%c0_1, %c0_2, %c0_3, %c0_4] : memref<2x10x10x3xf32, #tpu.memory_space<vmem>>, vector<2x10x10x3xf32>
    tpu.vector_store %arg14[%c0_1, %c0_2, %c0_3, %c0_4], %1 {strides = array<i32>} : memref<2x10x10x3xf32, #tpu.memory_space<vmem>>, vector<2x10x10x3xf32>,
    %3 = vector.shape_cast %0 : vector<128x3xf32> to vector<2x8x8x3xf32>
    %c0_5 = arith.constant 0 : index
    %c1 = arith.constant 1 : index
    %c1_6 = arith.constant 1 : index
    %c0_7 = arith.constant 0 : index
    %4 = vector.load %arg14[%c0_5, %c1, %c1_6, %c0_7] : memref<2x10x10x3xf32, #tpu.memory_space<vmem>>, vector<2x8x8x3xf32>
    tpu.vector_store %arg14[%c0_5, %c1, %c1_6, %c0_7], %3 {strides = array<i32>} : memref<2x10x10x3xf32, #tpu.memory_space<vmem>>, vector<2x8x8x3xf32>,
    %c0_8 = arith.constant 0 : index
    %c0_9 = arith.constant 0 : index
    %c0_10 = arith.constant 0 : index
    %c0_11 = arith.constant 0 : index
    %5 = vector.load %arg14[%c0_8, %c0_9, %c0_10, %c0_11] : memref<2x10x10x3xf32, #tpu.memory_space<vmem>>, vector<2x10x10x3xf32>
    %cst_12 = arith.constant 0.000000e+00 : f32
    %6 = vector.broadcast %cst_12 : f32 to vector<128x16xf32>
    %7 = vector.extract_strided_slice %5 {offsets = [0, 0, 0, 0], sizes = [2, 8, 8, 3], strides = [1, 1, 1, 1]} : vector<2x10x10x3xf32> to vector<2x8x8x3xf32>
    %8 = vector.shape_cast %7 : vector<2x8x8x3xf32> to vector<128x3xf32>
    %c0_13 = arith.constant 0 : index
    %c0_14 = arith.constant 0 : index
    %c0_15 = arith.constant 0 : index
    %9 = vector.load %arg1[%c0_13, %c0_14, %c0_15] : memref<9x3x16xf32, #tpu.memory_space<vmem>>, vector<1x3x16xf32>
    %10 = vector.shape_cast %9 : vector<1x3x16xf32> to vector<3x16xf32>
    %cst_16 = arith.constant dense<0.000000e+00> : vector<128x16xf32>
    %11 = tpu.matmul %8, %10, %cst_16 {dimension_numbers = #tpu.dot_dimension_numbers<[1], [0], [0], [1], [0, 0, 1, 1], [], []>} : vector<128x3xf32>, vector<3x16xf32>, vector<128x16xf32> -> vector<128x16xf32>
    %12 = arith.addf %6, %11 : vector<128x16xf32>
    %13 = vector.extract_strided_slice %5 {offsets = [0, 0, 1, 0], sizes = [2, 8, 8, 3], strides = [1, 1, 1, 1]} : vector<2x10x10x3xf32> to vector<2x8x8x3xf32>
    %14 = vector.shape_cast %13 : vector<2x8x8x3xf32> to vector<128x3xf32>
    %c1_17 = arith.constant 1 : index
    %c0_18 = arith.constant 0 : index
    %c0_19 = arith.constant 0 : index
    %15 = vector.load %arg1[%c1_17, %c0_18, %c0_19] : memref<9x3x16xf32, #tpu.memory_space<vmem>>, vector<1x3x16xf32>
    %16 = vector.shape_cast %15 : vector<1x3x16xf32> to vector<3x16xf32>
    %cst_20 = arith.constant dense<0.000000e+00> : vector<128x16xf32>
    %17 = tpu.matmul %14, %16, %cst_20 {dimension_numbers = #tpu.dot_dimension_numbers<[1], [0], [0], [1], [0, 0, 1, 1], [], []>} : vector<128x3xf32>, vector<3x16xf32>, vector<128x16xf32> -> vector<128x16xf32>
    %18 = arith.addf %12, %17 : vector<128x16xf32>
    %19 = vector.extract_strided_slice %5 {offsets = [0, 0, 2, 0], sizes = [2, 8, 8, 3], strides = [1, 1, 1, 1]} : vector<2x10x10x3xf32> to vector<2x8x8x3xf32>
    %20 = vector.shape_cast %19 : vector<2x8x8x3xf32> to vector<128x3xf32>
    %c2 = arith.constant 2 : index
    %c0_21 = arith.constant 0 : index
    %c0_22 = arith.constant 0 : index
    %21 = vector.load %arg1[%c2, %c0_21, %c0_22] : memref<9x3x16xf32, #tpu.memory_space<vmem>>, vector<1x3x16xf32>
    %22 = vector.shape_cast %21 : vector<1x3x16xf32> to vector<3x16xf32>
    %cst_23 = arith.constant dense<0.000000e+00> : vector<128x16xf32>
    %23 = tpu.matmul %20, %22, %cst_23 {dimension_numbers = #tpu.dot_dimension_numbers<[1], [0], [0], [1], [0, 0, 1, 1], [], []>} : vector<128x3xf32>, vector<3x16xf32>, vector<128x16xf32> -> vector<128x16xf32>
    %24 = arith.addf %18, %23 : vector<128x16xf32>
    %25 = vector.extract_strided_slice %5 {offsets = [0, 1, 0, 0], sizes = [2, 8, 8, 3], strides = [1, 1, 1, 1]} : vector<2x10x10x3xf32> to vector<2x8x8x3xf32>
    %26 = vector.shape_cast %25 : vector<2x8x8x3xf32> to vector<128x3xf32>
    %c3 = arith.constant 3 : index
    %c0_24 = arith.constant 0 : index
    %c0_25 = arith.constant 0 : index
    %27 = vector.load %arg1[%c3, %c0_24, %c0_25] : memref<9x3x16xf32, #tpu.memory_space<vmem>>, vector<1x3x16xf32>
    %28 = vector.shape_cast %27 : vector<1x3x16xf32> to vector<3x16xf32>
    %cst_26 = arith.constant dense<0.000000e+00> : vector<128x16xf32>
    %29 = tpu.matmul %26, %28, %cst_26 {dimension_numbers = #tpu.dot_dimension_numbers<[1], [0], [0], [1], [0, 0, 1, 1], [], []>} : vector<128x3xf32>, vector<3x16xf32>, vector<128x16xf32> -> vector<128x16xf32>
    %30 = arith.addf %24, %29 : vector<128x16xf32>
    %31 = vector.extract_strided_slice %5 {offsets = [0, 1, 1, 0], sizes = [2, 8, 8, 3], strides = [1, 1, 1, 1]} : vector<2x10x10x3xf32> to vector<2x8x8x3xf32>
    %32 = vector.shape_cast %31 : vector<2x8x8x3xf32> to vector<128x3xf32>
    %c4 = arith.constant 4 : index
    %c0_27 = arith.constant 0 : index
    %c0_28 = arith.constant 0 : index
    %33 = vector.load %arg1[%c4, %c0_27, %c0_28] : memref<9x3x16xf32, #tpu.memory_space<vmem>>, vector<1x3x16xf32>
    %34 = vector.shape_cast %33 : vector<1x3x16xf32> to vector<3x16xf32>
    %cst_29 = arith.constant dense<0.000000e+00> : vector<128x16xf32>
    %35 = tpu.matmul %32, %34, %cst_29 {dimension_numbers = #tpu.dot_dimension_numbers<[1], [0], [0], [1], [0, 0, 1, 1], [], []>} : vector<128x3xf32>, vector<3x16xf32>, vector<128x16xf32> -> vector<128x16xf32>
    %36 = arith.addf %30, %35 : vector<128x16xf32>
    %37 = vector.extract_strided_slice %5 {offsets = [0, 1, 2, 0], sizes = [2, 8, 8, 3], strides = [1, 1, 1, 1]} : vector<2x10x10x3xf32> to vector<2x8x8x3xf32>
    %38 = vector.shape_cast %37 : vector<2x8x8x3xf32> to vector<128x3xf32>
    %c5 = arith.constant 5 : index
    %c0_30 = arith.constant 0 : index
    %c0_31 = arith.constant 0 : index
    %39 = vector.load %arg1[%c5, %c0_30, %c0_31] : memref<9x3x16xf32, #tpu.memory_space<vmem>>, vector<1x3x16xf32>
    %40 = vector.shape_cast %39 : vector<1x3x16xf32> to vector<3x16xf32>
    %cst_32 = arith.constant dense<0.000000e+00> : vector<128x16xf32>
    %41 = tpu.matmul %38, %40, %cst_32 {dimension_numbers = #tpu.dot_dimension_numbers<[1], [0], [0], [1], [0, 0, 1, 1], [], []>} : vector<128x3xf32>, vector<3x16xf32>, vector<128x16xf32> -> vector<128x16xf32>
    %42 = arith.addf %36, %41 : vector<128x16xf32>
    %43 = vector.extract_strided_slice %5 {offsets = [0, 2, 0, 0], sizes = [2, 8, 8, 3], strides = [1, 1, 1, 1]} : vector<2x10x10x3xf32> to vector<2x8x8x3xf32>
    %44 = vector.shape_cast %43 : vector<2x8x8x3xf32> to vector<128x3xf32>
    %c6 = arith.constant 6 : index
    %c0_33 = arith.constant 0 : index
    %c0_34 = arith.constant 0 : index
    %45 = vector.load %arg1[%c6, %c0_33, %c0_34] : memref<9x3x16xf32, #tpu.memory_space<vmem>>, vector<1x3x16xf32>
    %46 = vector.shape_cast %45 : vector<1x3x16xf32> to vector<3x16xf32>
    %cst_35 = arith.constant dense<0.000000e+00> : vector<128x16xf32>
    %47 = tpu.matmul %44, %46, %cst_35 {dimension_numbers = #tpu.dot_dimension_numbers<[1], [0], [0], [1], [0, 0, 1, 1], [], []>} : vector<128x3xf32>, vector<3x16xf32>, vector<128x16xf32> -> vector<128x16xf32>
    %48 = arith.addf %42, %47 : vector<128x16xf32>
    %49 = vector.extract_strided_slice %5 {offsets = [0, 2, 1, 0], sizes = [2, 8, 8, 3], strides = [1, 1, 1, 1]} : vector<2x10x10x3xf32> to vector<2x8x8x3xf32>
    %50 = vector.shape_cast %49 : vector<2x8x8x3xf32> to vector<128x3xf32>
    %c7 = arith.constant 7 : index
    %c0_36 = arith.constant 0 : index
    %c0_37 = arith.constant 0 : index
    %51 = vector.load %arg1[%c7, %c0_36, %c0_37] : memref<9x3x16xf32, #tpu.memory_space<vmem>>, vector<1x3x16xf32>
    %52 = vector.shape_cast %51 : vector<1x3x16xf32> to vector<3x16xf32>
    %cst_38 = arith.constant dense<0.000000e+00> : vector<128x16xf32>
    %53 = tpu.matmul %50, %52, %cst_38 {dimension_numbers = #tpu.dot_dimension_numbers<[1], [0], [0], [1], [0, 0, 1, 1], [], []>} : vector<128x3xf32>, vector<3x16xf32>, vector<128x16xf32> -> vector<128x16xf32>
    %54 = arith.addf %48, %53 : vector<128x16xf32>
    %55 = vector.extract_strided_slice %5 {offsets = [0, 2, 2, 0], sizes = [2, 8, 8, 3], strides = [1, 1, 1, 1]} : vector<2x10x10x3xf32> to vector<2x8x8x3xf32>
    %56 = vector.shape_cast %55 : vector<2x8x8x3xf32> to vector<128x3xf32>
    %c8 = arith.constant 8 : index
    %c0_39 = arith.constant 0 : index
    %c0_40 = arith.constant 0 : index
    %57 = vector.load %arg1[%c8, %c0_39, %c0_40] : memref<9x3x16xf32, #tpu.memory_space<vmem>>, vector<1x3x16xf32>
    %58 = vector.shape_cast %57 : vector<1x3x16xf32> to vector<3x16xf32>
    %cst_41 = arith.constant dense<0.000000e+00> : vector<128x16xf32>
    %59 = tpu.matmul %56, %58, %cst_41 {dimension_numbers = #tpu.dot_dimension_numbers<[1], [0], [0], [1], [0, 0, 1, 1], [], []>} : vector<128x3xf32>, vector<3x16xf32>, vector<128x16xf32> -> vector<128x16xf32>
    %60 = arith.addf %54, %59 : vector<128x16xf32>
    %c0_42 = arith.constant 0 : index
    %c0_43 = arith.constant 0 : index
    %61 = vector.load %arg2[%c0_42, %c0_43] : memref<1x16xf32, #tpu.memory_space<vmem>>, vector<1x16xf32>
    %62 = vector.broadcast %61 : vector<1x16xf32> to vector<128x16xf32>
    %63 = arith.addf %60, %62 : vector<128x16xf32>
    %cst_44 = arith.constant dense<0.000000e+00> : vector<16xf32>
    %64 = vector.multi_reduction <add>, %63, %cst_44 [0] : vector<128x16xf32> to vector<16xf32>
    %65 = vector.shape_cast %64 : vector<16xf32> to vector<1x16xf32>
    %cst_45 = arith.constant 1.280000e+02 : f32
    %66 = vector.broadcast %cst_45 : f32 to vector<1x16xf32>
    %67 = arith.divf %65, %66 : vector<1x16xf32>
    %68 = vector.broadcast %67 : vector<1x16xf32> to vector<128x16xf32>
    %69 = arith.subf %63, %68 : vector<128x16xf32>
    %70 = arith.mulf %69, %69 : vector<128x16xf32>
    %cst_46 = arith.constant dense<0.000000e+00> : vector<16xf32>
    %71 = vector.multi_reduction <add>, %70, %cst_46 [0] : vector<128x16xf32> to vector<16xf32>
    %72 = vector.shape_cast %71 : vector<16xf32> to vector<1x16xf32>
    %cst_47 = arith.constant 1.280000e+02 : f32
    %73 = vector.broadcast %cst_47 : f32 to vector<1x16xf32>
    %74 = arith.divf %72, %73 : vector<1x16xf32>
    %75 = vector.broadcast %67 : vector<1x16xf32> to vector<128x16xf32>
    %76 = arith.subf %63, %75 : vector<128x16xf32>
    %cst_48 = arith.constant 9.99999974E-6 : f32
    %77 = vector.broadcast %cst_48 : f32 to vector<1x16xf32>
    %78 = arith.addf %74, %77 : vector<1x16xf32>
    %79 = math.rsqrt %78 : vector<1x16xf32>
    %80 = vector.broadcast %79 : vector<1x16xf32> to vector<128x16xf32>
    %81 = arith.mulf %76, %80 : vector<128x16xf32>
    %c0_49 = arith.constant 0 : index
    %c0_50 = arith.constant 0 : index
    %82 = vector.load %arg3[%c0_49, %c0_50] : memref<1x16xf32, #tpu.memory_space<vmem>>, vector<1x16xf32>
    %83 = vector.broadcast %82 : vector<1x16xf32> to vector<128x16xf32>
    %84 = arith.mulf %81, %83 : vector<128x16xf32>
    %c0_51 = arith.constant 0 : index
    %c0_52 = arith.constant 0 : index
    %85 = vector.load %arg4[%c0_51, %c0_52] : memref<1x16xf32, #tpu.memory_space<vmem>>, vector<1x16xf32>
    %86 = vector.broadcast %85 : vector<1x16xf32> to vector<128x16xf32>
    %87 = arith.addf %84, %86 : vector<128x16xf32>
    %cst_53 = arith.constant 0.000000e+00 : f32
    %88 = vector.broadcast %cst_53 : f32 to vector<128x16xf32>
    %89 = arith.maximumf %87, %88 : vector<128x16xf32>
    %cst_54 = arith.constant 0.000000e+00 : f32
    %90 = vector.broadcast %cst_54 : f32 to vector<2x10x10x16xf32>
    %c0_55 = arith.constant 0 : index
    %c0_56 = arith.constant 0 : index
    %c0_57 = arith.constant 0 : index
    %c0_58 = arith.constant 0 : index
    %91 = vector.load %arg15[%c0_55, %c0_56, %c0_57, %c0_58] : memref<2x10x10x16xf32, #tpu.memory_space<vmem>>, vector<2x10x10x16xf32>
    tpu.vector_store %arg15[%c0_55, %c0_56, %c0_57, %c0_58], %90 {strides = array<i32>} : memref<2x10x10x16xf32, #tpu.memory_space<vmem>>, vector<2x10x10x16xf32>,
    %92 = vector.shape_cast %89 : vector<128x16xf32> to vector<2x8x8x16xf32>
    %c0_59 = arith.constant 0 : index
    %c1_60 = arith.constant 1 : index
    %c1_61 = arith.constant 1 : index
    %c0_62 = arith.constant 0 : index
    %93 = vector.load %arg15[%c0_59, %c1_60, %c1_61, %c0_62] : memref<2x10x10x16xf32, #tpu.memory_space<vmem>>, vector<2x8x8x16xf32>
    tpu.vector_store %arg15[%c0_59, %c1_60, %c1_61, %c0_62], %92 {strides = array<i32>} : memref<2x10x10x16xf32, #tpu.memory_space<vmem>>, vector<2x8x8x16xf32>,
    %c0_63 = arith.constant 0 : index
    %c0_64 = arith.constant 0 : index
    %c0_65 = arith.constant 0 : index
    %c0_66 = arith.constant 0 : index
    %94 = vector.load %arg15[%c0_63, %c0_64, %c0_65, %c0_66] : memref<2x10x10x16xf32, #tpu.memory_space<vmem>>, vector<2x10x10x16xf32>
    %cst_67 = arith.constant 0.000000e+00 : f32
    %95 = vector.broadcast %cst_67 : f32 to vector<128x32xf32>
    %96 = vector.extract_strided_slice %94 {offsets = [0, 0, 0, 0], sizes = [2, 8, 8, 16], strides = [1, 1, 1, 1]} : vector<2x10x10x16xf32> to vector<2x8x8x16xf32>
    %97 = vector.shape_cast %96 : vector<2x8x8x16xf32> to vector<128x16xf32>
    %c0_68 = arith.constant 0 : index
    %c0_69 = arith.constant 0 : index
    %c0_70 = arith.constant 0 : index
    %98 = vector.load %arg5[%c0_68, %c0_69, %c0_70] : memref<9x16x32xf32, #tpu.memory_space<vmem>>, vector<1x16x32xf32>
    %99 = vector.shape_cast %98 : vector<1x16x32xf32> to vector<16x32xf32>
    %cst_71 = arith.constant dense<0.000000e+00> : vector<128x32xf32>
    %100 = tpu.matmul %97, %99, %cst_71 {dimension_numbers = #tpu.dot_dimension_numbers<[1], [0], [0], [1], [0, 0, 1, 1], [], []>} : vector<128x16xf32>, vector<16x32xf32>, vector<128x32xf32> -> vector<128x32xf32>
    %101 = arith.addf %95, %100 : vector<128x32xf32>
    %102 = vector.extract_strided_slice %94 {offsets = [0, 0, 1, 0], sizes = [2, 8, 8, 16], strides = [1, 1, 1, 1]} : vector<2x10x10x16xf32> to vector<2x8x8x16xf32>
    %103 = vector.shape_cast %102 : vector<2x8x8x16xf32> to vector<128x16xf32>
    %c1_72 = arith.constant 1 : index
    %c0_73 = arith.constant 0 : index
    %c0_74 = arith.constant 0 : index
    %104 = vector.load %arg5[%c1_72, %c0_73, %c0_74] : memref<9x16x32xf32, #tpu.memory_space<vmem>>, vector<1x16x32xf32>
    %105 = vector.shape_cast %104 : vector<1x16x32xf32> to vector<16x32xf32>
    %cst_75 = arith.constant dense<0.000000e+00> : vector<128x32xf32>
    %106 = tpu.matmul %103, %105, %cst_75 {dimension_numbers = #tpu.dot_dimension_numbers<[1], [0], [0], [1], [0, 0, 1, 1], [], []>} : vector<128x16xf32>, vector<16x32xf32>, vector<128x32xf32> -> vector<128x32xf32>
    %107 = arith.addf %101, %106 : vector<128x32xf32>
    %108 = vector.extract_strided_slice %94 {offsets = [0, 0, 2, 0], sizes = [2, 8, 8, 16], strides = [1, 1, 1, 1]} : vector<2x10x10x16xf32> to vector<2x8x8x16xf32>
    %109 = vector.shape_cast %108 : vector<2x8x8x16xf32> to vector<128x16xf32>
    %c2_76 = arith.constant 2 : index
    %c0_77 = arith.constant 0 : index
    %c0_78 = arith.constant 0 : index
    %110 = vector.load %arg5[%c2_76, %c0_77, %c0_78] : memref<9x16x32xf32, #tpu.memory_space<vmem>>, vector<1x16x32xf32>
    %111 = vector.shape_cast %110 : vector<1x16x32xf32> to vector<16x32xf32>
    %cst_79 = arith.constant dense<0.000000e+00> : vector<128x32xf32>
    %112 = tpu.matmul %109, %111, %cst_79 {dimension_numbers = #tpu.dot_dimension_numbers<[1], [0], [0], [1], [0, 0, 1, 1], [], []>} : vector<128x16xf32>, vector<16x32xf32>, vector<128x32xf32> -> vector<128x32xf32>
    %113 = arith.addf %107, %112 : vector<128x32xf32>
    %114 = vector.extract_strided_slice %94 {offsets = [0, 1, 0, 0], sizes = [2, 8, 8, 16], strides = [1, 1, 1, 1]} : vector<2x10x10x16xf32> to vector<2x8x8x16xf32>
    %115 = vector.shape_cast %114 : vector<2x8x8x16xf32> to vector<128x16xf32>
    %c3_80 = arith.constant 3 : index
    %c0_81 = arith.constant 0 : index
    %c0_82 = arith.constant 0 : index
    %116 = vector.load %arg5[%c3_80, %c0_81, %c0_82] : memref<9x16x32xf32, #tpu.memory_space<vmem>>, vector<1x16x32xf32>
    %117 = vector.shape_cast %116 : vector<1x16x32xf32> to vector<16x32xf32>
    %cst_83 = arith.constant dense<0.000000e+00> : vector<128x32xf32>
    %118 = tpu.matmul %115, %117, %cst_83 {dimension_numbers = #tpu.dot_dimension_numbers<[1], [0], [0], [1], [0, 0, 1, 1], [], []>} : vector<128x16xf32>, vector<16x32xf32>, vector<128x32xf32> -> vector<128x32xf32>
    %119 = arith.addf %113, %118 : vector<128x32xf32>
    %120 = vector.extract_strided_slice %94 {offsets = [0, 1, 1, 0], sizes = [2, 8, 8, 16], strides = [1, 1, 1, 1]} : vector<2x10x10x16xf32> to vector<2x8x8x16xf32>
    %121 = vector.shape_cast %120 : vector<2x8x8x16xf32> to vector<128x16xf32>
    %c4_84 = arith.constant 4 : index
    %c0_85 = arith.constant 0 : index
    %c0_86 = arith.constant 0 : index
    %122 = vector.load %arg5[%c4_84, %c0_85, %c0_86] : memref<9x16x32xf32, #tpu.memory_space<vmem>>, vector<1x16x32xf32>
    %123 = vector.shape_cast %122 : vector<1x16x32xf32> to vector<16x32xf32>
    %cst_87 = arith.constant dense<0.000000e+00> : vector<128x32xf32>
    %124 = tpu.matmul %121, %123, %cst_87 {dimension_numbers = #tpu.dot_dimension_numbers<[1], [0], [0], [1], [0, 0, 1, 1], [], []>} : vector<128x16xf32>, vector<16x32xf32>, vector<128x32xf32> -> vector<128x32xf32>
    %125 = arith.addf %119, %124 : vector<128x32xf32>
    %126 = vector.extract_strided_slice %94 {offsets = [0, 1, 2, 0], sizes = [2, 8, 8, 16], strides = [1, 1, 1, 1]} : vector<2x10x10x16xf32> to vector<2x8x8x16xf32>
    %127 = vector.shape_cast %126 : vector<2x8x8x16xf32> to vector<128x16xf32>
    %c5_88 = arith.constant 5 : index
    %c0_89 = arith.constant 0 : index
    %c0_90 = arith.constant 0 : index
    %128 = vector.load %arg5[%c5_88, %c0_89, %c0_90] : memref<9x16x32xf32, #tpu.memory_space<vmem>>, vector<1x16x32xf32>
    %129 = vector.shape_cast %128 : vector<1x16x32xf32> to vector<16x32xf32>
    %cst_91 = arith.constant dense<0.000000e+00> : vector<128x32xf32>
    %130 = tpu.matmul %127, %129, %cst_91 {dimension_numbers = #tpu.dot_dimension_numbers<[1], [0], [0], [1], [0, 0, 1, 1], [], []>} : vector<128x16xf32>, vector<16x32xf32>, vector<128x32xf32> -> vector<128x32xf32>
    %131 = arith.addf %125, %130 : vector<128x32xf32>
    %132 = vector.extract_strided_slice %94 {offsets = [0, 2, 0, 0], sizes = [2, 8, 8, 16], strides = [1, 1, 1, 1]} : vector<2x10x10x16xf32> to vector<2x8x8x16xf32>
    %133 = vector.shape_cast %132 : vector<2x8x8x16xf32> to vector<128x16xf32>
    %c6_92 = arith.constant 6 : index
    %c0_93 = arith.constant 0 : index
    %c0_94 = arith.constant 0 : index
    %134 = vector.load %arg5[%c6_92, %c0_93, %c0_94] : memref<9x16x32xf32, #tpu.memory_space<vmem>>, vector<1x16x32xf32>
    %135 = vector.shape_cast %134 : vector<1x16x32xf32> to vector<16x32xf32>
    %cst_95 = arith.constant dense<0.000000e+00> : vector<128x32xf32>
    %136 = tpu.matmul %133, %135, %cst_95 {dimension_numbers = #tpu.dot_dimension_numbers<[1], [0], [0], [1], [0, 0, 1, 1], [], []>} : vector<128x16xf32>, vector<16x32xf32>, vector<128x32xf32> -> vector<128x32xf32>
    %137 = arith.addf %131, %136 : vector<128x32xf32>
    %138 = vector.extract_strided_slice %94 {offsets = [0, 2, 1, 0], sizes = [2, 8, 8, 16], strides = [1, 1, 1, 1]} : vector<2x10x10x16xf32> to vector<2x8x8x16xf32>
    %139 = vector.shape_cast %138 : vector<2x8x8x16xf32> to vector<128x16xf32>
    %c7_96 = arith.constant 7 : index
    %c0_97 = arith.constant 0 : index
    %c0_98 = arith.constant 0 : index
    %140 = vector.load %arg5[%c7_96, %c0_97, %c0_98] : memref<9x16x32xf32, #tpu.memory_space<vmem>>, vector<1x16x32xf32>
    %141 = vector.shape_cast %140 : vector<1x16x32xf32> to vector<16x32xf32>
    %cst_99 = arith.constant dense<0.000000e+00> : vector<128x32xf32>
    %142 = tpu.matmul %139, %141, %cst_99 {dimension_numbers = #tpu.dot_dimension_numbers<[1], [0], [0], [1], [0, 0, 1, 1], [], []>} : vector<128x16xf32>, vector<16x32xf32>, vector<128x32xf32> -> vector<128x32xf32>
    %143 = arith.addf %137, %142 : vector<128x32xf32>
    %144 = vector.extract_strided_slice %94 {offsets = [0, 2, 2, 0], sizes = [2, 8, 8, 16], strides = [1, 1, 1, 1]} : vector<2x10x10x16xf32> to vector<2x8x8x16xf32>
    %145 = vector.shape_cast %144 : vector<2x8x8x16xf32> to vector<128x16xf32>
    %c8_100 = arith.constant 8 : index
    %c0_101 = arith.constant 0 : index
    %c0_102 = arith.constant 0 : index
    %146 = vector.load %arg5[%c8_100, %c0_101, %c0_102] : memref<9x16x32xf32, #tpu.memory_space<vmem>>, vector<1x16x32xf32>
    %147 = vector.shape_cast %146 : vector<1x16x32xf32> to vector<16x32xf32>
    %cst_103 = arith.constant dense<0.000000e+00> : vector<128x32xf32>
    %148 = tpu.matmul %145, %147, %cst_103 {dimension_numbers = #tpu.dot_dimension_numbers<[1], [0], [0], [1], [0, 0, 1, 1], [], []>} : vector<128x16xf32>, vector<16x32xf32>, vector<128x32xf32> -> vector<128x32xf32>
    %149 = arith.addf %143, %148 : vector<128x32xf32>
    %c0_104 = arith.constant 0 : index
    %c0_105 = arith.constant 0 : index
    %150 = vector.load %arg6[%c0_104, %c0_105] : memref<1x32xf32, #tpu.memory_space<vmem>>, vector<1x32xf32>
    %151 = vector.broadcast %150 : vector<1x32xf32> to vector<128x32xf32>
    %152 = arith.addf %149, %151 : vector<128x32xf32>
    %cst_106 = arith.constant dense<0.000000e+00> : vector<32xf32>
    %153 = vector.multi_reduction <add>, %152, %cst_106 [0] : vector<128x32xf32> to vector<32xf32>
    %154 = vector.shape_cast %153 : vector<32xf32> to vector<1x32xf32>
    %cst_107 = arith.constant 1.280000e+02 : f32
    %155 = vector.broadcast %cst_107 : f32 to vector<1x32xf32>
    %156 = arith.divf %154, %155 : vector<1x32xf32>
    %157 = vector.broadcast %156 : vector<1x32xf32> to vector<128x32xf32>
    %158 = arith.subf %152, %157 : vector<128x32xf32>
    %159 = arith.mulf %158, %158 : vector<128x32xf32>
    %cst_108 = arith.constant dense<0.000000e+00> : vector<32xf32>
    %160 = vector.multi_reduction <add>, %159, %cst_108 [0] : vector<128x32xf32> to vector<32xf32>
    %161 = vector.shape_cast %160 : vector<32xf32> to vector<1x32xf32>
    %cst_109 = arith.constant 1.280000e+02 : f32
    %162 = vector.broadcast %cst_109 : f32 to vector<1x32xf32>
    %163 = arith.divf %161, %162 : vector<1x32xf32>
    %164 = vector.broadcast %156 : vector<1x32xf32> to vector<128x32xf32>
    %165 = arith.subf %152, %164 : vector<128x32xf32>
    %cst_110 = arith.constant 9.99999974E-6 : f32
    %166 = vector.broadcast %cst_110 : f32 to vector<1x32xf32>
    %167 = arith.addf %163, %166 : vector<1x32xf32>
    %168 = math.rsqrt %167 : vector<1x32xf32>
    %169 = vector.broadcast %168 : vector<1x32xf32> to vector<128x32xf32>
    %170 = arith.mulf %165, %169 : vector<128x32xf32>
    %c0_111 = arith.constant 0 : index
    %c0_112 = arith.constant 0 : index
    %171 = vector.load %arg7[%c0_111, %c0_112] : memref<1x32xf32, #tpu.memory_space<vmem>>, vector<1x32xf32>
    %172 = vector.broadcast %171 : vector<1x32xf32> to vector<128x32xf32>
    %173 = arith.mulf %170, %172 : vector<128x32xf32>
    %c0_113 = arith.constant 0 : index
    %c0_114 = arith.constant 0 : index
    %174 = vector.load %arg8[%c0_113, %c0_114] : memref<1x32xf32, #tpu.memory_space<vmem>>, vector<1x32xf32>
    %175 = vector.broadcast %174 : vector<1x32xf32> to vector<128x32xf32>
    %176 = arith.addf %173, %175 : vector<128x32xf32>
    %cst_115 = arith.constant 0.000000e+00 : f32
    %177 = vector.broadcast %cst_115 : f32 to vector<128x32xf32>
    %178 = arith.maximumf %176, %177 : vector<128x32xf32>
    %cst_116 = arith.constant 0.000000e+00 : f32
    %179 = vector.broadcast %cst_116 : f32 to vector<2x10x10x32xf32>
    %c0_117 = arith.constant 0 : index
    %c0_118 = arith.constant 0 : index
    %c0_119 = arith.constant 0 : index
    %c0_120 = arith.constant 0 : index
    %180 = vector.load %arg16[%c0_117, %c0_118, %c0_119, %c0_120] : memref<2x10x10x32xf32, #tpu.memory_space<vmem>>, vector<2x10x10x32xf32>
    tpu.vector_store %arg16[%c0_117, %c0_118, %c0_119, %c0_120], %179 {strides = array<i32>} : memref<2x10x10x32xf32, #tpu.memory_space<vmem>>, vector<2x10x10x32xf32>,
    %181 = vector.shape_cast %178 : vector<128x32xf32> to vector<2x8x8x32xf32>
    %c0_121 = arith.constant 0 : index
    %c1_122 = arith.constant 1 : index
    %c1_123 = arith.constant 1 : index
    %c0_124 = arith.constant 0 : index
    %182 = vector.load %arg16[%c0_121, %c1_122, %c1_123, %c0_124] : memref<2x10x10x32xf32, #tpu.memory_space<vmem>>, vector<2x8x8x32xf32>
    tpu.vector_store %arg16[%c0_121, %c1_122, %c1_123, %c0_124], %181 {strides = array<i32>} : memref<2x10x10x32xf32, #tpu.memory_space<vmem>>, vector<2x8x8x32xf32>,
    %c0_125 = arith.constant 0 : index
    %c0_126 = arith.constant 0 : index
    %c0_127 = arith.constant 0 : index
    %c0_128 = arith.constant 0 : index
    %183 = vector.load %arg16[%c0_125, %c0_126, %c0_127, %c0_128] : memref<2x10x10x32xf32, #tpu.memory_space<vmem>>, vector<2x10x10x32xf32>
    %cst_129 = arith.constant 0.000000e+00 : f32
    %184 = vector.broadcast %cst_129 : f32 to vector<128x64xf32>
    %185 = vector.extract_strided_slice %183 {offsets = [0, 0, 0, 0], sizes = [2, 8, 8, 32], strides = [1, 1, 1, 1]} : vector<2x10x10x32xf32> to vector<2x8x8x32xf32>
    %186 = vector.shape_cast %185 : vector<2x8x8x32xf32> to vector<128x32xf32>
    %c0_130 = arith.constant 0 : index
    %c0_131 = arith.constant 0 : index
    %c0_132 = arith.constant 0 : index
    %187 = vector.load %arg9[%c0_130, %c0_131, %c0_132] : memref<9x32x64xf32, #tpu.memory_space<vmem>>, vector<1x32x64xf32>
    %188 = vector.shape_cast %187 : vector<1x32x64xf32> to vector<32x64xf32>
    %cst_133 = arith.constant dense<0.000000e+00> : vector<128x64xf32>
    %189 = tpu.matmul %186, %188, %cst_133 {dimension_numbers = #tpu.dot_dimension_numbers<[1], [0], [0], [1], [0, 0, 1, 1], [], []>} : vector<128x32xf32>, vector<32x64xf32>, vector<128x64xf32> -> vector<128x64xf32>
    %190 = arith.addf %184, %189 : vector<128x64xf32>
    %191 = vector.extract_strided_slice %183 {offsets = [0, 0, 1, 0], sizes = [2, 8, 8, 32], strides = [1, 1, 1, 1]} : vector<2x10x10x32xf32> to vector<2x8x8x32xf32>
    %192 = vector.shape_cast %191 : vector<2x8x8x32xf32> to vector<128x32xf32>
    %c1_134 = arith.constant 1 : index
    %c0_135 = arith.constant 0 : index
    %c0_136 = arith.constant 0 : index
    %193 = vector.load %arg9[%c1_134, %c0_135, %c0_136] : memref<9x32x64xf32, #tpu.memory_space<vmem>>, vector<1x32x64xf32>
    %194 = vector.shape_cast %193 : vector<1x32x64xf32> to vector<32x64xf32>
    %cst_137 = arith.constant dense<0.000000e+00> : vector<128x64xf32>
    %195 = tpu.matmul %192, %194, %cst_137 {dimension_numbers = #tpu.dot_dimension_numbers<[1], [0], [0], [1], [0, 0, 1, 1], [], []>} : vector<128x32xf32>, vector<32x64xf32>, vector<128x64xf32> -> vector<128x64xf32>
    %196 = arith.addf %190, %195 : vector<128x64xf32>
    %197 = vector.extract_strided_slice %183 {offsets = [0, 0, 2, 0], sizes = [2, 8, 8, 32], strides = [1, 1, 1, 1]} : vector<2x10x10x32xf32> to vector<2x8x8x32xf32>
    %198 = vector.shape_cast %197 : vector<2x8x8x32xf32> to vector<128x32xf32>
    %c2_138 = arith.constant 2 : index
    %c0_139 = arith.constant 0 : index
    %c0_140 = arith.constant 0 : index
    %199 = vector.load %arg9[%c2_138, %c0_139, %c0_140] : memref<9x32x64xf32, #tpu.memory_space<vmem>>, vector<1x32x64xf32>
    %200 = vector.shape_cast %199 : vector<1x32x64xf32> to vector<32x64xf32>
    %cst_141 = arith.constant dense<0.000000e+00> : vector<128x64xf32>
    %201 = tpu.matmul %198, %200, %cst_141 {dimension_numbers = #tpu.dot_dimension_numbers<[1], [0], [0], [1], [0, 0, 1, 1], [], []>} : vector<128x32xf32>, vector<32x64xf32>, vector<128x64xf32> -> vector<128x64xf32>
    %202 = arith.addf %196, %201 : vector<128x64xf32>
    %203 = vector.extract_strided_slice %183 {offsets = [0, 1, 0, 0], sizes = [2, 8, 8, 32], strides = [1, 1, 1, 1]} : vector<2x10x10x32xf32> to vector<2x8x8x32xf32>
    %204 = vector.shape_cast %203 : vector<2x8x8x32xf32> to vector<128x32xf32>
    %c3_142 = arith.constant 3 : index
    %c0_143 = arith.constant 0 : index
    %c0_144 = arith.constant 0 : index
    %205 = vector.load %arg9[%c3_142, %c0_143, %c0_144] : memref<9x32x64xf32, #tpu.memory_space<vmem>>, vector<1x32x64xf32>
    %206 = vector.shape_cast %205 : vector<1x32x64xf32> to vector<32x64xf32>
    %cst_145 = arith.constant dense<0.000000e+00> : vector<128x64xf32>
    %207 = tpu.matmul %204, %206, %cst_145 {dimension_numbers = #tpu.dot_dimension_numbers<[1], [0], [0], [1], [0, 0, 1, 1], [], []>} : vector<128x32xf32>, vector<32x64xf32>, vector<128x64xf32> -> vector<128x64xf32>
    %208 = arith.addf %202, %207 : vector<128x64xf32>
    %209 = vector.extract_strided_slice %183 {offsets = [0, 1, 1, 0], sizes = [2, 8, 8, 32], strides = [1, 1, 1, 1]} : vector<2x10x10x32xf32> to vector<2x8x8x32xf32>
    %210 = vector.shape_cast %209 : vector<2x8x8x32xf32> to vector<128x32xf32>
    %c4_146 = arith.constant 4 : index
    %c0_147 = arith.constant 0 : index
    %c0_148 = arith.constant 0 : index
    %211 = vector.load %arg9[%c4_146, %c0_147, %c0_148] : memref<9x32x64xf32, #tpu.memory_space<vmem>>, vector<1x32x64xf32>
    %212 = vector.shape_cast %211 : vector<1x32x64xf32> to vector<32x64xf32>
    %cst_149 = arith.constant dense<0.000000e+00> : vector<128x64xf32>
    %213 = tpu.matmul %210, %212, %cst_149 {dimension_numbers = #tpu.dot_dimension_numbers<[1], [0], [0], [1], [0, 0, 1, 1], [], []>} : vector<128x32xf32>, vector<32x64xf32>, vector<128x64xf32> -> vector<128x64xf32>
    %214 = arith.addf %208, %213 : vector<128x64xf32>
    %215 = vector.extract_strided_slice %183 {offsets = [0, 1, 2, 0], sizes = [2, 8, 8, 32], strides = [1, 1, 1, 1]} : vector<2x10x10x32xf32> to vector<2x8x8x32xf32>
    %216 = vector.shape_cast %215 : vector<2x8x8x32xf32> to vector<128x32xf32>
    %c5_150 = arith.constant 5 : index
    %c0_151 = arith.constant 0 : index
    %c0_152 = arith.constant 0 : index
    %217 = vector.load %arg9[%c5_150, %c0_151, %c0_152] : memref<9x32x64xf32, #tpu.memory_space<vmem>>, vector<1x32x64xf32>
    %218 = vector.shape_cast %217 : vector<1x32x64xf32> to vector<32x64xf32>
    %cst_153 = arith.constant dense<0.000000e+00> : vector<128x64xf32>
    %219 = tpu.matmul %216, %218, %cst_153 {dimension_numbers = #tpu.dot_dimension_numbers<[1], [0], [0], [1], [0, 0, 1, 1], [], []>} : vector<128x32xf32>, vector<32x64xf32>, vector<128x64xf32> -> vector<128x64xf32>
    %220 = arith.addf %214, %219 : vector<128x64xf32>
    %221 = vector.extract_strided_slice %183 {offsets = [0, 2, 0, 0], sizes = [2, 8, 8, 32], strides = [1, 1, 1, 1]} : vector<2x10x10x32xf32> to vector<2x8x8x32xf32>
    %222 = vector.shape_cast %221 : vector<2x8x8x32xf32> to vector<128x32xf32>
    %c6_154 = arith.constant 6 : index
    %c0_155 = arith.constant 0 : index
    %c0_156 = arith.constant 0 : index
    %223 = vector.load %arg9[%c6_154, %c0_155, %c0_156] : memref<9x32x64xf32, #tpu.memory_space<vmem>>, vector<1x32x64xf32>
    %224 = vector.shape_cast %223 : vector<1x32x64xf32> to vector<32x64xf32>
    %cst_157 = arith.constant dense<0.000000e+00> : vector<128x64xf32>
    %225 = tpu.matmul %222, %224, %cst_157 {dimension_numbers = #tpu.dot_dimension_numbers<[1], [0], [0], [1], [0, 0, 1, 1], [], []>} : vector<128x32xf32>, vector<32x64xf32>, vector<128x64xf32> -> vector<128x64xf32>
    %226 = arith.addf %220, %225 : vector<128x64xf32>
    %227 = vector.extract_strided_slice %183 {offsets = [0, 2, 1, 0], sizes = [2, 8, 8, 32], strides = [1, 1, 1, 1]} : vector<2x10x10x32xf32> to vector<2x8x8x32xf32>
    %228 = vector.shape_cast %227 : vector<2x8x8x32xf32> to vector<128x32xf32>
    %c7_158 = arith.constant 7 : index
    %c0_159 = arith.constant 0 : index
    %c0_160 = arith.constant 0 : index
    %229 = vector.load %arg9[%c7_158, %c0_159, %c0_160] : memref<9x32x64xf32, #tpu.memory_space<vmem>>, vector<1x32x64xf32>
    %230 = vector.shape_cast %229 : vector<1x32x64xf32> to vector<32x64xf32>
    %cst_161 = arith.constant dense<0.000000e+00> : vector<128x64xf32>
    %231 = tpu.matmul %228, %230, %cst_161 {dimension_numbers = #tpu.dot_dimension_numbers<[1], [0], [0], [1], [0, 0, 1, 1], [], []>} : vector<128x32xf32>, vector<32x64xf32>, vector<128x64xf32> -> vector<128x64xf32>
    %232 = arith.addf %226, %231 : vector<128x64xf32>
    %233 = vector.extract_strided_slice %183 {offsets = [0, 2, 2, 0], sizes = [2, 8, 8, 32], strides = [1, 1, 1, 1]} : vector<2x10x10x32xf32> to vector<2x8x8x32xf32>
    %234 = vector.shape_cast %233 : vector<2x8x8x32xf32> to vector<128x32xf32>
    %c8_162 = arith.constant 8 : index
    %c0_163 = arith.constant 0 : index
    %c0_164 = arith.constant 0 : index
    %235 = vector.load %arg9[%c8_162, %c0_163, %c0_164] : memref<9x32x64xf32, #tpu.memory_space<vmem>>, vector<1x32x64xf32>
    %236 = vector.shape_cast %235 : vector<1x32x64xf32> to vector<32x64xf32>
    %cst_165 = arith.constant dense<0.000000e+00> : vector<128x64xf32>
    %237 = tpu.matmul %234, %236, %cst_165 {dimension_numbers = #tpu.dot_dimension_numbers<[1], [0], [0], [1], [0, 0, 1, 1], [], []>} : vector<128x32xf32>, vector<32x64xf32>, vector<128x64xf32> -> vector<128x64xf32>
    %238 = arith.addf %232, %237 : vector<128x64xf32>
    %c0_166 = arith.constant 0 : index
    %c0_167 = arith.constant 0 : index
    %239 = vector.load %arg10[%c0_166, %c0_167] : memref<1x64xf32, #tpu.memory_space<vmem>>, vector<1x64xf32>
    %240 = vector.broadcast %239 : vector<1x64xf32> to vector<128x64xf32>
    %241 = arith.addf %238, %240 : vector<128x64xf32>
    %cst_168 = arith.constant dense<0.000000e+00> : vector<64xf32>
    %242 = vector.multi_reduction <add>, %241, %cst_168 [0] : vector<128x64xf32> to vector<64xf32>
    %243 = vector.shape_cast %242 : vector<64xf32> to vector<1x64xf32>
    %cst_169 = arith.constant 1.280000e+02 : f32
    %244 = vector.broadcast %cst_169 : f32 to vector<1x64xf32>
    %245 = arith.divf %243, %244 : vector<1x64xf32>
    %246 = vector.broadcast %245 : vector<1x64xf32> to vector<128x64xf32>
    %247 = arith.subf %241, %246 : vector<128x64xf32>
    %248 = arith.mulf %247, %247 : vector<128x64xf32>
    %cst_170 = arith.constant dense<0.000000e+00> : vector<64xf32>
    %249 = vector.multi_reduction <add>, %248, %cst_170 [0] : vector<128x64xf32> to vector<64xf32>
    %250 = vector.shape_cast %249 : vector<64xf32> to vector<1x64xf32>
    %cst_171 = arith.constant 1.280000e+02 : f32
    %251 = vector.broadcast %cst_171 : f32 to vector<1x64xf32>
    %252 = arith.divf %250, %251 : vector<1x64xf32>
    %253 = vector.broadcast %245 : vector<1x64xf32> to vector<128x64xf32>
    %254 = arith.subf %241, %253 : vector<128x64xf32>
    %cst_172 = arith.constant 9.99999974E-6 : f32
    %255 = vector.broadcast %cst_172 : f32 to vector<1x64xf32>
    %256 = arith.addf %252, %255 : vector<1x64xf32>
    %257 = math.rsqrt %256 : vector<1x64xf32>
    %258 = vector.broadcast %257 : vector<1x64xf32> to vector<128x64xf32>
    %259 = arith.mulf %254, %258 : vector<128x64xf32>
    %c0_173 = arith.constant 0 : index
    %c0_174 = arith.constant 0 : index
    %260 = vector.load %arg11[%c0_173, %c0_174] : memref<1x64xf32, #tpu.memory_space<vmem>>, vector<1x64xf32>
    %261 = vector.broadcast %260 : vector<1x64xf32> to vector<128x64xf32>
    %262 = arith.mulf %259, %261 : vector<128x64xf32>
    %c0_175 = arith.constant 0 : index
    %c0_176 = arith.constant 0 : index
    %263 = vector.load %arg12[%c0_175, %c0_176] : memref<1x64xf32, #tpu.memory_space<vmem>>, vector<1x64xf32>
    %264 = vector.broadcast %263 : vector<1x64xf32> to vector<128x64xf32>
    %265 = arith.addf %262, %264 : vector<128x64xf32>
    %cst_177 = arith.constant 0.000000e+00 : f32
    %266 = vector.broadcast %cst_177 : f32 to vector<128x64xf32>
    %267 = arith.maximumf %265, %266 : vector<128x64xf32>
    %c0_178 = arith.constant 0 : index
    %c0_179 = arith.constant 0 : index
    %268 = vector.load %arg13[%c0_178, %c0_179] : memref<128x64xf32, #tpu.memory_space<vmem>>, vector<128x64xf32>
    tpu.vector_store %arg13[%c0_178, %c0_179], %267 {strides = array<i32>} : memref<128x64xf32, #tpu.memory_space<vmem>>, vector<128x64xf32>,
    return
  }
}

</mosaic_0001>

<bundles_post_ra>
// kernel: tpu_custom_call.1
= control target key start
LH: loop header
LB: loop body
LE: loop exit
PB: predicated region body
PF: predicated region fallthrough
CT: control target
= control target key end

     0   :  { %18 = vsyncpa [#allocation6], 0  ;;  %s7487_s0 = inlined_call_operand.vmem [shape: f32[128,3], index: 0, kind: input, shape index: {}]   ;;  %s7488_s1 = inlined_call_operand.vmem [shape: f32[9,3,16], index: 1, kind: input, shape index: {}]   ;;  %s7489_s2 = inlined_call_operand.vmem [shape: f32[1,16], index: 2, kind: input, shape index: {}]   ;;  %s7490_s3 = inlined_call_operand.vmem [shape: f32[1,16], index: 3, kind: input, shape index: {}]   ;;  %s7491_s4 = inlined_call_operand.vmem [shape: f32[1,16], index: 4, kind: input, shape index: {}]   ;;  %s7492_s5 = inlined_call_operand.hbm [shape: f32[9,16,32], index: 5, kind: input, shape index: {}]   ;;  %s7493_s6 = inlined_call_operand.vmem [shape: f32[1,32], index: 6, kind: input, shape index: {}]   ;;  %s7494_s7 = inlined_call_operand.vmem [shape: f32[1,32], index: 7, kind: input, shape index: {}]   ;;  %s7495_s8 = inlined_call_operand.vmem [shape: f32[1,32], index: 8, kind: input, shape index: {}]   ;;  %s7496_s9 = inlined_call_operand.hbm [shape: f32[9,32,64], index: 9, kind: input, shape index: {}]   ;;  %s7497_s10 = inlined_call_operand.vmem [shape: f32[1,64], index: 10, kind: input, shape index: {}]   ;;  %s7498_s11 = inlined_call_operand.vmem [shape: f32[1,64], index: 11, kind: input, shape index: {}]   ;;  %s7499_s12 = inlined_call_operand.vmem [shape: f32[1,64], index: 12, kind: input, shape index: {}]   ;;  %s7500_s13 = inlined_call_operand.vmem [shape: f32[128,64], index: 13, kind: output, shape index: {}]  }
   0x1   :  { %s34_s27 = sshll.u32 %s7492_s5, 4  ;;  %s35_s27 = int_to_ptr.hbm [resolvable:$true] %s34_s27 }
   0x2   :  { %19 = vsyncpa [#allocation8], 0  ;;  %s4627_s28 = smov [#allocation5]   ;;  %s53_s15 = sshll.u32 %s7496_s9, 4  ;;  %s54_s15 = int_to_ptr.hbm [resolvable:$true] %s53_s15 }
   0x3   :  { %s36_s29 = sshll.u32 %s4627_s28, 4  ;;  %s4628_s16 = smov 128   ;;  %s37_s29 = int_to_ptr.vmem [resolvable:$true] %s36_s29 }
   0x4   :  { %s4629_s17 = smov 8   ;;  %s4630_s18 = smov [#allocation7]  }
   0x5   :  { %42 = dma.hbm_to_vmem [thread:$0]  %s35_s27, 2304, %s37_s29, [#allocation6], %s4628_s16, %s4628_s16, %s4629_s17  }
   0x6   :  { %s55_s19 = sshll.u32 %s4630_s18, 4  ;;  %s56_s19 = int_to_ptr.vmem [resolvable:$true] %s55_s19 }
   0x7   :  { %61 = dma.hbm_to_vmem [thread:$0]  %s54_s15, 4608, %s56_s19, [#allocation8], %s4628_s16, %s4628_s16, %s4629_s17  }
   0x8   :  { %4623 = dma.done.wait [#allocation6], 2304  }
   0x9   :  { %4624 = vsyncadd [#allocation6], 4294964992 }
   0xa   :  { %4625 = dma.done.wait [#allocation8], 4608  }
   0xb   :  { %4626 = vsyncadd [#allocation8], 4294962688  ;;  %vm92_vm0 = vcmask 23552   ;;  %vm94_vm1 = vcmask 17408   ;;  %v7501_v0 = vmov 0.0   ;;  %vm307_vm2 = vcmask 1042432  }
   0xc   :  { %122 = vst.msk [vmem:[#allocation2 + $0xe0] sm:$0xff] %vm92_vm0, %v7501_v0  ;;  %v4100_v1 = vld [vmem:[%s7488_s1 + $0x4] sm:$0x7]  ;;  %v87_v2 = vld [vmem:[%s7487_s0 + $0x58] sm:$0xff]  ;;  %v4135_v3 = vld [vmem:[%s7488_s1 + $0x8] sm:$0x7] }
   0xd   :  { %123 = vst.msk [vmem:[#allocation2 + $0xe8] sm:$0x3] %vm94_vm1, %v7501_v0  ;;  %4549 = vmatpush.msk.msra.mxu3 %vm307_vm2, %v4100_v1  ;;  %4136 = vmatpush.msk.msra.mxu2 %vm307_vm2, %v4135_v3  ;;  %vm476_vm3 = vcmask 1045504   ;;  %v191_v4 = vld [vmem:[%s7488_s1] sm:$0x7]  ;;  %vm224_vm4 = vcmask 1046528  }
   0xe   :  { %93 = vst.msk [vmem:[#allocation2] sm:$0xff] %vm92_vm0, %v7501_v0  ;;  %4101 = vmatpush.msk.msra.mxu0 %vm307_vm2, %v4100_v1  ;;  %4118 = vmatpush.msk.msra.mxu1 %vm307_vm2, %v191_v4  ;;  %v4171_v18 = vld [vmem:[%s7488_s1 + $0x10] sm:$0x7]  ;;  %v88_v19 = vld [vmem:[%s7487_s0 + $0x60] sm:$0xff]  ;;  %v89_v21 = vld [vmem:[%s7487_s0 + $0x68] sm:$0xff]  ;;  %vm1235_vm5 = vcmask 130048  }
   0xf   :  { %95 = vst.msk [vmem:[#allocation2 + $0x8] sm:$0x3] %vm94_vm1, %v7501_v0  ;;  %4550 = vmatpush.msk.msrb.mxu3 %vm307_vm2, %v191_v4  ;;  %v76_v20 = vld [vmem:[%s7487_s0] sm:$0xff]  ;;  %v77_v22 = vld [vmem:[%s7487_s0 + $0x8] sm:$0xff]  ;;  %v90_v23 = vld [vmem:[%s7487_s0 + $0x70] sm:$0xff]  ;;  %vm1435_vm7 = vcmask 123904  }
  0x10   :  { %96 = vst.msk [vmem:[#allocation2 + $0x10] sm:$0xff] %vm92_vm0, %v7501_v0  ;;  %4172 = vmatpush.msk.msrb.mxu0 %vm307_vm2, %v4171_v18  ;;  %v78_v24 = vld [vmem:[%s7487_s0 + $0x10] sm:$0xff]  ;;  %v79_v25 = vld [vmem:[%s7487_s0 + $0x18] sm:$0xff]  ;;  %v80_v26 = vld [vmem:[%s7487_s0 + $0x20] sm:$0xff]  ;;  %vm2555_vm11 = vcmask 261120   ;;  %vm2748_vm12 = vcmask 254976  }
  0x11   :  { %97 = vst.msk [vmem:[#allocation2 + $0x18] sm:$0x3] %vm94_vm1, %v7501_v0  ;;  %v81_v44 = vld [vmem:[%s7487_s0 + $0x28] sm:$0xff]  ;;  %v82_v58 = vld [vmem:[%s7487_s0 + $0x30] sm:$0xff] }
  0x12   :  { %98 = vst.msk [vmem:[#allocation2 + $0x20] sm:$0xff] %vm92_vm0, %v7501_v0  ;;  %v4153_v18 = vld [vmem:[%s7488_s1 + $0xc] sm:$0x7] }
  0x13   :  { %146 = vst.msk [vmem:[#allocation2 + $0xe1] sm:$0xff] %vm92_vm0, %v87_v2 }
  0x14   :  { %99 = vst.msk [vmem:[#allocation2 + $0x28] sm:$0x3] %vm94_vm1, %v7501_v0 }
  0x15   :  { %100 = vst.msk [vmem:[#allocation2 + $0x30] sm:$0xff] %vm92_vm0, %v7501_v0  ;;  %v151_v5 = vld [vmem:[#allocation2] sm:$0xff] }
  0x16   :  { %101 = vst.msk [vmem:[#allocation2 + $0x38] sm:$0x3] %vm94_vm1, %v7501_v0  ;;  %v152_v6 = vld [vmem:[#allocation2 + $0x8] sm:$0x3]  ;;  %v477_v7 = vrot.slane %v151_v5, 2  ;;  %v225_v8 = vrot.slane %v151_v5, 1  ;;  %4119 = vmatmul.msk.f32.vlgmr.msra.gmra.mxu1 %vm92_vm0, %v151_v5 }
  0x17   :  { %102 = vst.msk [vmem:[#allocation2 + $0x40] sm:$0xff] %vm92_vm0, %v7501_v0  ;;  %v478_v9 = vrot.slane %v152_v6, 2  ;;  %v226_v10 = vrot.slane %v152_v6, 1 }
  0x18   :  { %103 = vst.msk [vmem:[#allocation2 + $0x48] sm:$0x3] %vm94_vm1, %v7501_v0 }
  0x19   :  { %104 = vst.msk [vmem:[#allocation2 + $0x50] sm:$0xff] %vm92_vm0, %v7501_v0  ;;  %v479_v11 = vsel %vm476_vm3, %v477_v7, %v478_v9  ;;  %v227_v12 = vsel %vm224_vm4, %v225_v8, %v226_v10 }
  0x1a   :  { %v4756_v13 = vld [vmem:[#allocation2 + $0xe0] sm:$0xff]  ;;  %v4758_v14 = vld [vmem:[#allocation2 + $0xe8] sm:$0x3]  ;;  %105 = vst.msk [vmem:[#allocation2 + $0x58] sm:$0x3] %vm94_vm1, %v7501_v0  ;;  %4137 = vmatmul.msk.f32.vlgmr.msra.gmra.mxu2 %vm92_vm0, %v479_v11  ;;  %4102 = vmatmul.msk.f32.vlgmr.msra.gmra.mxu0 %vm92_vm0, %v227_v12 }
  0x1b   :  { %v261_v15 = vrot.slane %v4756_v13, 1  ;;  %v262_v16 = vrot.slane %v4758_v14, 1  ;;  %106 = vst.msk [vmem:[#allocation2 + $0x60] sm:$0xff] %vm92_vm0, %v7501_v0 }
  0x1c   :  { %107 = vst.msk [vmem:[#allocation2 + $0x68] sm:$0x3] %vm94_vm1, %v7501_v0 }
  0x1d   :  { %v4771_v17 = vsel %vm224_vm4, %v261_v15, %v262_v16  ;;  %108 = vst.msk [vmem:[#allocation2 + $0x70] sm:$0xff] %vm92_vm0, %v7501_v0 }
  0x1e   :  { %4114 = vmatmul.msk.f32.vlgmr.msra.gmra.mxu3 %vm92_vm0, %v4771_v17  ;;  %109 = vst.msk [vmem:[#allocation2 + $0x78] sm:$0x3] %vm94_vm1, %v7501_v0 }
  0x1f   :  { %110 = vst.msk [vmem:[#allocation2 + $0x80] sm:$0xff] %vm92_vm0, %v7501_v0  ;;  %4551 = vmatpush.msk.msra.mxu3 %vm307_vm2, %v4135_v3 }
  0x20   :  { %111 = vst.msk [vmem:[#allocation2 + $0x88] sm:$0x3] %vm94_vm1, %v7501_v0 }
  0x21   :  { %112 = vst.msk [vmem:[#allocation2 + $0x90] sm:$0xff] %vm92_vm0, %v7501_v0 }
  0x22   :  { %113 = vst.msk [vmem:[#allocation2 + $0x98] sm:$0x3] %vm94_vm1, %v7501_v0 }
  0x23   :  { %114 = vst.msk [vmem:[#allocation2 + $0xa0] sm:$0xff] %vm92_vm0, %v7501_v0 }
  0x24   :  { %115 = vst.msk [vmem:[#allocation2 + $0xa8] sm:$0x3] %vm94_vm1, %v7501_v0 }
  0x25   :  { %116 = vst.msk [vmem:[#allocation2 + $0xb0] sm:$0xff] %vm92_vm0, %v7501_v0 }
  0x26   :  { %117 = vst.msk [vmem:[#allocation2 + $0xb8] sm:$0x3] %vm94_vm1, %v7501_v0 }
  0x27   :  { %118 = vst.msk [vmem:[#allocation2 + $0xc0] sm:$0xff] %vm92_vm0, %v7501_v0 }
  0x28   :  { %119 = vst.msk [vmem:[#allocation2 + $0xc8] sm:$0x3] %vm94_vm1, %v7501_v0 }
  0x29   :  { %120 = vst.msk [vmem:[#allocation2 + $0xd0] sm:$0xff] %vm92_vm0, %v7501_v0 }
  0x2a   :  { %121 = vst.msk [vmem:[#allocation2 + $0xd8] sm:$0x3] %vm94_vm1, %v7501_v0 }
  0x2b   :  { %124 = vst.msk [vmem:[#allocation2 + $0xf0] sm:$0xff] %vm92_vm0, %v7501_v0 }
  0x2c   :  { %125 = vst.msk [vmem:[#allocation2 + $0xf8] sm:$0x3] %vm94_vm1, %v7501_v0 }
  0x2d   :  { %126 = vst.msk [vmem:[#allocation2 + $0x100] sm:$0xff] %vm92_vm0, %v7501_v0 }
  0x2e   :  { %127 = vst.msk [vmem:[#allocation2 + $0x108] sm:$0x3] %vm94_vm1, %v7501_v0 }
  0x2f   :  { %128 = vst.msk [vmem:[#allocation2 + $0x110] sm:$0xff] %vm92_vm0, %v7501_v0 }
  0x30   :  { %129 = vst.msk [vmem:[#allocation2 + $0x118] sm:$0x3] %vm94_vm1, %v7501_v0 }
  0x31   :  { %130 = vst.msk [vmem:[#allocation2 + $0x120] sm:$0xff] %vm92_vm0, %v7501_v0 }
  0x32   :  { %131 = vst.msk [vmem:[#allocation2 + $0x128] sm:$0x3] %vm94_vm1, %v7501_v0 }
  0x33   :  { %132 = vst.msk [vmem:[#allocation2 + $0x130] sm:$0xff] %vm92_vm0, %v7501_v0 }
  0x34   :  { %133 = vst.msk [vmem:[#allocation2 + $0x138] sm:$0x3] %vm94_vm1, %v7501_v0 }
  0x35   :  { %147 = vst.msk [vmem:[#allocation2 + $0xf1] sm:$0xff] %vm92_vm0, %v88_v19  ;;  %v84_v19 = vld [vmem:[%s7487_s0 + $0x40] sm:$0xff] }
  0x36   :  { %135 = vst.msk [vmem:[#allocation2 + $0x11] sm:$0xff] %vm92_vm0, %v76_v20 }
  0x37   :  { %148 = vst.msk [vmem:[#allocation2 + $0x101] sm:$0xff] %vm92_vm0, %v89_v21 }
  0x38   :  { %136 = vst.msk [vmem:[#allocation2 + $0x21] sm:$0xff] %vm92_vm0, %v77_v22 }
  0x39   :  { %149 = vst.msk [vmem:[#allocation2 + $0x111] sm:$0xff] %vm92_vm0, %v90_v23 }
  0x3a   :  { %137 = vst.msk [vmem:[#allocation2 + $0x31] sm:$0xff] %vm92_vm0, %v78_v24 }
  0x3b   :  { %138 = vst.msk [vmem:[#allocation2 + $0x41] sm:$0xff] %vm92_vm0, %v79_v25 }
  0x3c   :  { %v4859_v27 = vld [vmem:[#allocation2 + $0xf0] sm:$0xff]  ;;  %v4861_v28 = vld [vmem:[#allocation2 + $0xf8] sm:$0x3]  ;;  %139 = vst.msk [vmem:[#allocation2 + $0x51] sm:$0xff] %vm92_vm0, %v80_v26 }
  0x3d   :  { %v264_v29 = vrot.slane %v4859_v27, 1  ;;  %v265_v30 = vrot.slane %v4861_v28, 1  ;;  %v4866_v31 = vld [vmem:[#allocation2 + $0x10] sm:$0xff]  ;;  %v154_v32 = vld [vmem:[#allocation2 + $0x18] sm:$0x3]  ;;  %140 = vst.msk [vmem:[#allocation2 + $0x61] sm:$0xff] %vm92_vm0, %v81_v44 }
  0x3e   :  { %v480_v33 = vrot.slane %v4866_v31, 2  ;;  %v481_v34 = vrot.slane %v154_v32, 2  ;;  %v228_v35 = vrot.slane %v4866_v31, 1  ;;  %v229_v36 = vrot.slane %v154_v32, 1  ;;  %v4870_v37 = vld [vmem:[#allocation2 + $0x100] sm:$0xff]  ;;  %4120 = vmatmul.msk.f32.gmra.mxu1 %vm92_vm0, %v4866_v31  ;;  %141 = vst.msk [vmem:[#allocation2 + $0x71] sm:$0xff] %vm92_vm0, %v82_v58 }
  0x3f   :  { %v4875_v38 = vsel %vm224_vm4, %v264_v29, %v265_v30  ;;  %v4877_v39 = vld [vmem:[#allocation2 + $0x108] sm:$0x3]  ;;  %v4879_v40 = vld [vmem:[#allocation2 + $0x20] sm:$0xff]  ;;  %v267_v45 = vrot.slane %v4870_v37, 1  ;;  %143 = vst.msk [vmem:[#allocation2 + $0xb1] sm:$0xff] %vm92_vm0, %v84_v19 }
  0x40   :  { %v156_v41 = vld [vmem:[#allocation2 + $0x28] sm:$0x3]  ;;  %4115 = vmatmul.msk.f32.gmra.mxu3 %vm92_vm0, %v4875_v38  ;;  %v4884_v42 = vsel %vm476_vm3, %v480_v33, %v481_v34  ;;  %v4887_v43 = vsel %vm224_vm4, %v228_v35, %v229_v36  ;;  %v268_v46 = vrot.slane %v4877_v39, 1  ;;  %v483_v47 = vrot.slane %v4879_v40, 2  ;;  %v4910_v54 = vld [vmem:[#allocation2 + $0x110] sm:$0xff]  ;;  %1434 = vst.msk [vmem:[#allocation3] sm:$0xff] %vm1235_vm5, %v7501_v0 }
  0x41   :  { %4138 = vmatmul.msk.f32.gmra.mxu2 %vm92_vm0, %v4884_v42  ;;  %4103 = vmatmul.msk.f32.gmra.mxu0 %vm92_vm0, %v4887_v43  ;;  %v484_v48 = vrot.slane %v156_v41, 2  ;;  %v231_v49 = vrot.slane %v4879_v40, 1  ;;  %v232_v50 = vrot.slane %v156_v41, 1  ;;  %v4912_v55 = vld [vmem:[#allocation2 + $0x118] sm:$0x3]  ;;  %v4916_v56 = vld [vmem:[#allocation2 + $0x30] sm:$0xff] }
  0x42   :  { %v4902_v51 = vsel %vm224_vm4, %v267_v45, %v268_v46  ;;  %v158_v57 = vld [vmem:[#allocation2 + $0x38] sm:$0x3]  ;;  %v270_v59 = vrot.slane %v4910_v54, 1  ;;  %v271_v60 = vrot.slane %v4912_v55, 1  ;;  %v486_v61 = vrot.slane %v4916_v56, 2  ;;  %v4943_v5 = vld [vmem:[#allocation2 + $0x40] sm:$0xff] }
  0x43   :  { %v4905_v52 = vsel %vm476_vm3, %v483_v47, %v484_v48  ;;  %v4908_v53 = vsel %vm224_vm4, %v231_v49, %v232_v50  ;;  %v487_v62 = vrot.slane %v158_v57, 2  ;;  %v234_v63 = vrot.slane %v4916_v56, 1  ;;  %v160_v6 = vld [vmem:[#allocation2 + $0x48] sm:$0x3]  ;;  %v4961_v15 = vld [vmem:[#allocation2 + $0x50] sm:$0xff]  ;;  %1437 = vst.msk [vmem:[#allocation3 + $0x10] sm:$0xff] %vm1235_vm5, %v7501_v0 }
  0x44   :  { %v235_v1 = vrot.slane %v158_v57, 1  ;;  %v4933_v2 = vsel %vm224_vm4, %v270_v59, %v271_v60  ;;  %v489_v7 = vrot.slane %v4943_v5, 2  ;;  %v490_v8 = vrot.slane %v160_v6, 2  ;;  %v162_v16 = vld [vmem:[#allocation2 + $0x58] sm:$0x3]  ;;  %v4987_v26 = vld [vmem:[#allocation2 + $0x60] sm:$0xff] }
  0x45   :  { %v4936_v3 = vsel %vm476_vm3, %v486_v61, %v487_v62  ;;  %v237_v9 = vrot.slane %v4943_v5, 1  ;;  %v238_v10 = vrot.slane %v160_v6, 1  ;;  %v492_v20 = vrot.slane %v4961_v15, 2  ;;  %v164_v29 = vld [vmem:[#allocation2 + $0x68] sm:$0x3]  ;;  %v5009_v44 = vld [vmem:[#allocation2 + $0x70] sm:$0xff] }
  0x46   :  { %4121 = vmatmul.msk.f32.gmra.mxu1 %vm92_vm0, %v4879_v40  ;;  %v4939_v4 = vsel %vm224_vm4, %v234_v63, %v235_v1  ;;  %v4954_v11 = vsel %vm476_vm3, %v489_v7, %v490_v8  ;;  %v493_v21 = vrot.slane %v162_v16, 2  ;;  %v240_v22 = vrot.slane %v4961_v15, 1  ;;  %v85_v30 = vld [vmem:[%s7487_s0 + $0x48] sm:$0xff]  ;;  %v166_v45 = vld [vmem:[#allocation2 + $0x78] sm:$0x3]  ;;  %v86_v46 = vld [vmem:[%s7487_s0 + $0x50] sm:$0xff] }
  0x47   :  { %v4957_v12 = vsel %vm224_vm4, %v237_v9, %v238_v10  ;;  %v241_v23 = vrot.slane %v162_v16, 1  ;;  %144 = vst.msk [vmem:[#allocation2 + $0xc1] sm:$0xff] %vm92_vm0, %v85_v30  ;;  %v495_v32 = vrot.slane %v4987_v26, 2  ;;  %v496_v33 = vrot.slane %v164_v29, 2  ;;  %v171_v59 = vld [vmem:[#allocation2 + $0xa0] sm:$0xff] }
  0x48   :  { %4116 = vmatmul.msk.f32.gmra.mxu3 %vm92_vm0, %v4902_v51  ;;  %v4980_v24 = vsel %vm476_vm3, %v492_v20, %v493_v21  ;;  %v243_v34 = vrot.slane %v4987_v26, 1  ;;  %v244_v35 = vrot.slane %v164_v29, 1  ;;  %145 = vst.msk [vmem:[#allocation2 + $0xd1] sm:$0xff] %vm92_vm0, %v86_v46  ;;  %v498_v47 = vrot.slane %v5009_v44, 2  ;;  %v172_v60 = vld [vmem:[#allocation2 + $0xa8] sm:$0x3] }
  0x49   :  { %4139 = vmatmul.msk.f32.gmra.mxu2 %vm92_vm0, %v4905_v52  ;;  %4104 = vmatmul.msk.f32.gmra.mxu0 %vm92_vm0, %v4908_v53  ;;  %v4983_v25 = vsel %vm224_vm4, %v240_v22, %v241_v23  ;;  %v5002_v36 = vsel %vm476_vm3, %v495_v32, %v496_v33  ;;  %v499_v48 = vrot.slane %v166_v45, 2  ;;  %v246_v49 = vrot.slane %v5009_v44, 1  ;;  %v174_v16 = vld [vmem:[#allocation2 + $0xb8] sm:$0x3]  ;;  %v4189_v46 = vld [vmem:[%s7488_s1 + $0x14] sm:$0x7] }
  0x4a   :  { %v5005_v41 = vsel %vm224_vm4, %v243_v34, %v244_v35  ;;  %v247_v50 = vrot.slane %v166_v45, 1  ;;  %v514_v61 = vrot.slane %v4758_v14, 2  ;;  %v513_v62 = vrot.slane %v4756_v13, 2  ;;  %v5045_v14 = vld [vmem:[#allocation2 + $0xb0] sm:$0xff]  ;;  %v4207_v19 = vld [vmem:[%s7488_s1 + $0x18] sm:$0x7]  ;;  %4190 = vmatpush.msk.msrb.mxu1 %vm307_vm2, %v4189_v46 }
  0x4b   :  { %v5024_v57 = vsel %vm476_vm3, %v498_v47, %v499_v48  ;;  %v501_v63 = vrot.slane %v171_v59, 2  ;;  %v502_v1 = vrot.slane %v172_v60, 2  ;;  %v249_v6 = vrot.slane %v171_v59, 1  ;;  %4208 = vmatpush.msk.msrb.mxu2 %vm307_vm2, %v4207_v19  ;;  %v4243_v45 = vld [vmem:[%s7488_s1 + $0x20] sm:$0x7]  ;;  %1439 = vst.msk [vmem:[#allocation3 + $0x20] sm:$0xff] %vm1235_vm5, %v7501_v0 }
  0x4c   :  { %v5027_v58 = vsel %vm224_vm4, %v246_v49, %v247_v50  ;;  %v250_v7 = vrot.slane %v172_v60, 1  ;;  %v5040_v8 = vsel %vm476_vm3, %v513_v62, %v514_v61  ;;  %v516_v20 = vrot.slane %v4859_v27, 2  ;;  %4244 = vmatpush.msk.msra.mxu0 %vm307_vm2, %v4243_v45  ;;  %1441 = vst.msk [vmem:[#allocation3 + $0x30] sm:$0xff] %vm1235_vm5, %v7501_v0 }
  0x4d   :  { %v503_v9 = vsel %vm476_vm3, %v501_v63, %v502_v1  ;;  %v517_v21 = vrot.slane %v4861_v28, 2  ;;  %v504_v22 = vrot.slane %v5045_v14, 2  ;;  %v505_v23 = vrot.slane %v174_v16, 2  ;;  %1443 = vst.msk [vmem:[#allocation3 + $0x40] sm:$0xff] %vm1235_vm5, %v7501_v0 }
  0x4e   :  { %4122 = vmatmul.msk.f32.gmra.mxu1 %vm92_vm0, %v4916_v56  ;;  %v251_v10 = vsel %vm224_vm4, %v249_v6, %v250_v7  ;;  %v252_v29 = vrot.slane %v5045_v14, 1  ;;  %v253_v30 = vrot.slane %v174_v16, 1  ;;  %v5074_v28 = vld [vmem:[#allocation2 + $0xc0] sm:$0xff]  ;;  %v176_v35 = vld [vmem:[#allocation2 + $0xc8] sm:$0x3]  ;;  %v519_v47 = vrot.slane %v4870_v37, 2 }
  0x4f   :  { %v5064_v32 = vsel %vm476_vm3, %v516_v20, %v517_v21  ;;  %v5067_v33 = vsel %vm476_vm3, %v504_v22, %v505_v23  ;;  %v520_v48 = vrot.slane %v4877_v39, 2  ;;  %v507_v49 = vrot.slane %v5074_v28, 2  ;;  %v5105_v39 = vld [vmem:[#allocation2 + $0xd0] sm:$0xff]  ;;  %v178_v1 = vld [vmem:[#allocation2 + $0xd8] sm:$0x3]  ;;  %1445 = vst.msk [vmem:[#allocation3 + $0x50] sm:$0xff] %vm1235_vm5, %v7501_v0 }
  0x50   :  { %4117 = vmatmul.msk.f32.gmra.mxu3 %vm92_vm0, %v4933_v2  ;;  %v5070_v34 = vsel %vm224_vm4, %v252_v29, %v253_v30  ;;  %v508_v50 = vrot.slane %v176_v35, 2  ;;  %v256_v60 = vrot.slane %v176_v35, 1  ;;  %v522_v6 = vrot.slane %v4910_v54, 2  ;;  %1447 = vst.msk [vmem:[#allocation3 + $0x60] sm:$0xff] %vm1235_vm5, %v7501_v0 }
  0x51   :  { %4140 = vmatmul.msk.f32.gmra.mxu2 %vm92_vm0, %v4936_v3  ;;  %4105 = vmatmul.msk.f32.gmra.mxu0 %vm92_vm0, %v4939_v4  ;;  %v5095_v61 = vsel %vm476_vm3, %v519_v47, %v520_v48  ;;  %v523_v7 = vrot.slane %v4912_v55, 2  ;;  %v258_v16 = vrot.slane %v5105_v39, 1  ;;  %1449 = vst.msk [vmem:[#allocation3 + $0x70] sm:$0xff] %vm1235_vm5, %v7501_v0 }
  0x52   :  { %v5098_v62 = vsel %vm476_vm3, %v507_v49, %v508_v50  ;;  %1451 = vst.msk [vmem:[#allocation3 + $0x80] sm:$0xff] %vm1235_vm5, %v7501_v0 }
  0x53   :  { %v5118_v19 = vsel %vm476_vm3, %v522_v6, %v523_v7  ;;  %1453 = vst.msk [vmem:[#allocation3 + $0x90] sm:$0xff] %vm1235_vm5, %v7501_v0 }
  0x54   :  { %1455 = vst.msk [vmem:[#allocation3 + $0xa0] sm:$0xff] %vm1235_vm5, %v7501_v0 }
  0x55   :  { %1457 = vst.msk [vmem:[#allocation3 + $0xb0] sm:$0xff] %vm1235_vm5, %v7501_v0 }
  0x56   :  { %4123 = vmatmul.msk.f32.gmra.mxu1 %vm92_vm0, %v4943_v5  ;;  %1459 = vst.msk [vmem:[#allocation3 + $0xc0] sm:$0xff] %vm1235_vm5, %v7501_v0 }
  0x57   :  { %1461 = vst.msk [vmem:[#allocation3 + $0xd0] sm:$0xff] %vm1235_vm5, %v7501_v0 }
  0x58   :  { %4131 = vmatmul.msk.f32.vlgmr.msrb.gmra.mxu3 %vm92_vm0, %v4756_v13  ;;  %1463 = vst.msk [vmem:[#allocation3 + $0xe0] sm:$0xff] %vm1235_vm5, %v7501_v0 }
  0x59   :  { %4141 = vmatmul.msk.f32.gmra.mxu2 %vm92_vm0, %v4954_v11  ;;  %4106 = vmatmul.msk.f32.gmra.mxu0 %vm92_vm0, %v4957_v12  ;;  %1465 = vst.msk [vmem:[#allocation3 + $0xf0] sm:$0xff] %vm1235_vm5, %v7501_v0 }
  0x5a   :  { %4154 = vmatpush.msk.msrb.mxu3 %vm307_vm2, %v4153_v18  ;;  %v4225_v18 = vld [vmem:[%s7488_s1 + $0x1c] sm:$0x7]  ;;  %1467 = vst.msk [vmem:[#allocation3 + $0x100] sm:$0xff] %vm1235_vm5, %v7501_v0 }
  0x5b   :  { %1469 = vst.msk [vmem:[#allocation3 + $0x110] sm:$0xff] %vm1235_vm5, %v7501_v0 }
  0x5c   :  { %1471 = vst.msk [vmem:[#allocation3 + $0x120] sm:$0xff] %vm1235_vm5, %v7501_v0 }
  0x5d   :  { %1473 = vst.msk [vmem:[#allocation3 + $0x130] sm:$0xff] %vm1235_vm5, %v7501_v0 }
  0x5e   :  { %4124 = vmatmul.msk.f32.gmra.mxu1 %vm92_vm0, %v4961_v15 }
  0x60   :  { %4132 = vmatmul.msk.f32.gmra.mxu3 %vm92_vm0, %v4859_v27 }
  0x61   :  { %4142 = vmatmul.msk.f32.gmra.mxu2 %vm92_vm0, %v4980_v24  ;;  %4107 = vmatmul.msk.f32.gmra.mxu0 %vm92_vm0, %v4983_v25 }
  0x66   :  { %4125 = vmatmul.msk.f32.gmra.mxu1 %vm92_vm0, %v4987_v26 }
  0x68   :  { %4133 = vmatmul.msk.f32.gmra.mxu3 %vm92_vm0, %v4870_v37 }
  0x69   :  { %4143 = vmatmul.msk.f32.gmra.mxu2 %vm92_vm0, %v5002_v36  ;;  %4108 = vmatmul.msk.f32.gmra.mxu0 %vm92_vm0, %v5005_v41 }
  0x6e   :  { %4126 = vmatmul.msk.f32.gmra.mxu1 %vm92_vm0, %v5009_v44 }
  0x70   :  { %4134 = vmatmul.msk.f32.gmra.mxu3 %vm92_vm0, %v4910_v54 }
  0x71   :  { %4144 = vmatmul.msk.f32.gmra.mxu2 %vm92_vm0, %v5024_v57  ;;  %4109 = vmatmul.msk.f32.gmra.mxu0 %vm92_vm0, %v5027_v58 }
  0x76   :  { %4127 = vmatmul.msk.f32.gmra.mxu1 %vm92_vm0, %v171_v59  ;;  %v255_v59 = vrot.slane %v5074_v28, 1 }
  0x78   :  { %4149 = vmatmul.msk.f32.vlgmr.msra.gmra.mxu3 %vm92_vm0, %v5040_v8  ;;  %v5101_v63 = vsel %vm224_vm4, %v255_v59, %v256_v60 }
  0x79   :  { %4145 = vmatmul.msk.f32.gmra.mxu2 %vm92_vm0, %v503_v9  ;;  %4110 = vmatmul.msk.f32.gmra.mxu0 %vm92_vm0, %v251_v10  ;;  %v510_v9 = vrot.slane %v5105_v39, 2  ;;  %v511_v10 = vrot.slane %v178_v1, 2 }
  0x7a   :  { %4226 = vmatpush.msk.msra.mxu3 %vm307_vm2, %v4225_v18  ;;  %v259_v18 = vrot.slane %v178_v1, 1 }
  0x7b   :  { %v5121_v20 = vsel %vm476_vm3, %v510_v9, %v511_v10  ;;  %v5206_v10 = vld [vmem:[#allocation2 + $0x90] sm:$0xff] }
  0x7c   :  { %v5124_v21 = vsel %vm224_vm4, %v258_v16, %v259_v18 }
  0x7e   :  { %4128 = vmatmul.msk.f32.gmra.mxu1 %vm92_vm0, %v5045_v14 }
  0x80   :  { %4150 = vmatmul.msk.f32.gmra.mxu3 %vm92_vm0, %v5064_v32 }
  0x81   :  { %4146 = vmatmul.msk.f32.gmra.mxu2 %vm92_vm0, %v5067_v33  ;;  %4111 = vmatmul.msk.f32.gmra.mxu0 %vm92_vm0, %v5070_v34 }
  0x86   :  { %4129 = vmatmul.msk.f32.gmra.mxu1 %vm92_vm0, %v5074_v28 }
  0x88   :  { %4151 = vmatmul.msk.f32.gmra.mxu3 %vm92_vm0, %v5095_v61 }
  0x89   :  { %4147 = vmatmul.msk.f32.gmra.mxu2 %vm92_vm0, %v5098_v62  ;;  %4112 = vmatmul.msk.f32.gmra.mxu0 %vm92_vm0, %v5101_v63 }
  0x8e   :  { %4130 = vmatmul.msk.f32.gmra.mxu1 %vm92_vm0, %v5105_v39 }
  0x90   :  { %4152 = vmatmul.msk.f32.gmra.mxu3 %vm92_vm0, %v5118_v19 }
  0x91   :  { %4148 = vmatmul.msk.f32.gmra.mxu2 %vm92_vm0, %v5121_v20  ;;  %4113 = vmatmul.msk.f32.gmra.mxu0 %vm92_vm0, %v5124_v21 }
  0x96   :  { %4191 = vmatmul.msk.f32.vlgmr.msrb.gmra.mxu1 %vm92_vm0, %v4884_v42 }
  0x97   :  { %v5172_v42 = vpop.f32.mrf.mxu0 }
  0x98   :  { %4155 = vmatmul.msk.f32.vlgmr.msrb.gmra.mxu3 %vm92_vm0, %v4866_v31  ;;  %v83_v31 = vld [vmem:[%s7487_s0 + $0x38] sm:$0xff] }
  0x99   :  { %4209 = vmatmul.msk.f32.vlgmr.msrb.gmra.mxu2 %vm92_vm0, %v4879_v40  ;;  %4173 = vmatmul.msk.f32.vlgmr.msrb.gmra.mxu0 %vm92_vm0, %v4887_v43  ;;  %142 = vst.msk [vmem:[#allocation2 + $0x81] sm:$0xff] %vm92_vm0, %v83_v31 }
  0x9d   :  { %v5182_v55 = vpop.f32.mrf.mxu2 }
  0x9e   :  { %4192 = vmatmul.msk.f32.gmra.mxu1 %vm92_vm0, %v4905_v52 }
  0xa0   :  { %4156 = vmatmul.msk.f32.gmra.mxu3 %vm92_vm0, %v4879_v40  ;;  %v5170_v40 = vpop.f32.mrf.mxu1  ;;  %v167_v45 = vld [vmem:[#allocation2 + $0x80] sm:$0xff]  ;;  %v168_v46 = vld [vmem:[#allocation2 + $0x88] sm:$0x3] }
  0xa1   :  { %4210 = vmatmul.msk.f32.gmra.mxu2 %vm92_vm0, %v4916_v56  ;;  %4174 = vmatmul.msk.f32.gmra.mxu0 %vm92_vm0, %v4908_v53  ;;  %v364_v43 = vpop.f32.mrf.mxu3  ;;  %v833_v47 = vrot.slane %v167_v45, 2  ;;  %v737_v49 = vrot.slane %v167_v45, 1  ;;  %v738_v50 = vrot.slane %v168_v46, 1 }
  0xa6   :  { %4193 = vmatmul.msk.f32.gmra.mxu1 %vm92_vm0, %v4936_v3 }
  0xa8   :  { %4157 = vmatmul.msk.f32.gmra.mxu3 %vm92_vm0, %v4916_v56 }
  0xa9   :  { %4211 = vmatmul.msk.f32.gmra.mxu2 %vm92_vm0, %v4943_v5  ;;  %4175 = vmatmul.msk.f32.gmra.mxu0 %vm92_vm0, %v4939_v4 }
  0xae   :  { %4194 = vmatmul.msk.f32.gmra.mxu1 %vm92_vm0, %v4954_v11 }
  0xb0   :  { %4158 = vmatmul.msk.f32.gmra.mxu3 %vm92_vm0, %v4943_v5 }
  0xb1   :  { %4212 = vmatmul.msk.f32.gmra.mxu2 %vm92_vm0, %v4961_v15  ;;  %4176 = vmatmul.msk.f32.gmra.mxu0 %vm92_vm0, %v4957_v12 }
  0xb6   :  { %4195 = vmatmul.msk.f32.gmra.mxu1 %vm92_vm0, %v4980_v24 }
  0xb8   :  { %4159 = vmatmul.msk.f32.gmra.mxu3 %vm92_vm0, %v4961_v15 }
  0xb9   :  { %4213 = vmatmul.msk.f32.gmra.mxu2 %vm92_vm0, %v4987_v26  ;;  %4177 = vmatmul.msk.f32.gmra.mxu0 %vm92_vm0, %v4983_v25 }
  0xbb   :  { %v431_v56 = vpop.f32.mrf.mxu1 }
  0xbe   :  { %v331_v5 = vpop.f32.mrf.mxu0  ;;  %4196 = vmatmul.msk.f32.gmra.mxu1 %vm92_vm0, %v5002_v36 }
  0xbf   :  { %v432_v22 = vadd.f32 %v431_v56, %v331_v5 }
  0xc0   :  { %4160 = vmatmul.msk.f32.gmra.mxu3 %vm92_vm0, %v4987_v26  ;;  %v834_v26 = vrot.slane %v168_v46, 2 }
  0xc1   :  { %4214 = vmatmul.msk.f32.gmra.mxu2 %vm92_vm0, %v5009_v44  ;;  %4178 = vmatmul.msk.f32.gmra.mxu0 %vm92_vm0, %v5005_v41 }
  0xc2   :  { %v5202_v60 = vsel %vm476_vm3, %v833_v47, %v834_v26 }
  0xc3   :  { %v367_v15 = vpop.f32.mrf.mxu3  ;;  %v434_v29 = vpop.f32.mrf.mxu1 }
  0xc4   :  { %v582_v23 = vpop.f32.mrf.mxu2 }
  0xc5   :  { %v5192_v30 = vadd.f32 %v582_v23, %v432_v22 }
  0xc6   :  { %v334_v35 = vpop.f32.mrf.mxu0  ;;  %4197 = vmatmul.msk.f32.gmra.mxu1 %vm92_vm0, %v5024_v57 }
  0xc7   :  { %v435_v48 = vadd.f32 %v434_v29, %v334_v35 }
  0xc8   :  { %4161 = vmatmul.msk.f32.gmra.mxu3 %vm92_vm0, %v5009_v44  ;;  %v5209_v44 = vsel %vm224_vm4, %v737_v49, %v738_v50 }
  0xc9   :  { %4215 = vmatmul.msk.f32.gmra.mxu2 %vm92_vm0, %v167_v45  ;;  %4179 = vmatmul.msk.f32.gmra.mxu0 %vm92_vm0, %v5027_v58 }
  0xcb   :  { %v370_v59 = vpop.f32.mrf.mxu3  ;;  %v437_v9 = vpop.f32.mrf.mxu1 }
  0xcc   :  { %v585_v1 = vpop.f32.mrf.mxu2 }
  0xcd   :  { %v5204_v6 = vadd.f32 %v585_v1, %v435_v48 }
  0xce   :  { %v337_v7 = vpop.f32.mrf.mxu0  ;;  %4198 = vmatmul.msk.f32.gmra.mxu1 %vm92_vm0, %v5202_v60 }
  0xcf   :  { %v438_v16 = vadd.f32 %v437_v9, %v337_v7 }
  0xd0   :  { %4162 = vmatmul.msk.f32.gmra.mxu3 %vm92_vm0, %v167_v45 }
  0xd1   :  { %4216 = vmatmul.msk.f32.gmra.mxu2 %vm92_vm0, %v5206_v10  ;;  %4180 = vmatmul.msk.f32.gmra.mxu0 %vm92_vm0, %v5209_v44 }
  0xd3   :  { %v373_v18 = vpop.f32.mrf.mxu3 }
  0xd4   :  { %v588_v31 = vpop.f32.mrf.mxu2 }
  0xd5   :  { %v5218_v56 = vadd.f32 %v588_v31, %v438_v16 }
  0xd6   :  { %v5220_v5 = vpop.f32.mrf.mxu0  ;;  %4199 = vmatmul.msk.f32.gmra.mxu1 %vm92_vm0, %v5067_v33 }
  0xd8   :  { %4163 = vmatmul.msk.f32.gmra.mxu3 %vm92_vm0, %v5045_v14 }
  0xd9   :  { %4217 = vmatmul.msk.f32.gmra.mxu2 %vm92_vm0, %v5074_v28  ;;  %4181 = vmatmul.msk.f32.gmra.mxu0 %vm92_vm0, %v5070_v34  ;;  %v91_v34 = vld [vmem:[%s7487_s0 + $0x78] sm:$0xff] }
  0xda   :  { %150 = vst.msk [vmem:[#allocation2 + $0x121] sm:$0xff] %vm92_vm0, %v91_v34  ;;  %v429_v34 = vadd.f32 %v5170_v40, %v5172_v42 }
  0xdb   :  { %v464_v22 = vpop.f32.mrf.mxu3 }
  0xdc   :  { %v465_v23 = vadd.f32 %v464_v22, %v364_v43 }
  0xde   :  { %v5230_v29 = vpop.f32.mrf.mxu0  ;;  %4200 = vmatmul.msk.f32.gmra.mxu1 %vm92_vm0, %v5098_v62 }
  0xe0   :  { %4164 = vmatmul.msk.f32.gmra.mxu3 %vm92_vm0, %v5074_v28 }
  0xe1   :  { %4218 = vmatmul.msk.f32.gmra.mxu2 %vm92_vm0, %v5105_v39  ;;  %4182 = vmatmul.msk.f32.gmra.mxu0 %vm92_vm0, %v5101_v63  ;;  %v187_v50 = vld [vmem:[#allocation2 + $0x120] sm:$0xff] }
  0xe2   :  { %v836_v1 = vrot.slane %v187_v50, 2 }
  0xe3   :  { %v467_v14 = vpop.f32.mrf.mxu3 }
  0xe4   :  { %v468_v33 = vadd.f32 %v467_v14, %v367_v15 }
  0xe6   :  { %v5243_v43 = vpop.f32.mrf.mxu0  ;;  %4201 = vmatmul.msk.f32.gmra.mxu1 %vm92_vm0, %v5121_v20 }
  0xe8   :  { %4165 = vmatmul.msk.f32.gmra.mxu3 %vm92_vm0, %v5105_v39 }
  0xe9   :  { %4219 = vmatmul.msk.f32.gmra.mxu2 %vm92_vm0, %v4756_v13  ;;  %4183 = vmatmul.msk.f32.gmra.mxu0 %vm92_vm0, %v5124_v21 }
  0xeb   :  { %v470_v28 = vpop.f32.mrf.mxu3 }
  0xec   :  { %v471_v15 = vadd.f32 %v470_v28, %v370_v59  ;;  %v188_v59 = vld [vmem:[#allocation2 + $0x128] sm:$0x3] }
  0xed   :  { %v837_v7 = vrot.slane %v188_v59, 2  ;;  %v741_v9 = vrot.slane %v188_v59, 1 }
  0xee   :  { %v5254_v35 = vpop.f32.mrf.mxu0  ;;  %4202 = vmatmul.msk.f32.gmra.mxu1 %vm92_vm0, %v5040_v8 }
  0xf0   :  { %4166 = vmatmul.msk.f32.gmra.mxu3 %vm92_vm0, %v4756_v13 }
  0xf1   :  { %4220 = vmatmul.msk.f32.gmra.mxu2 %vm92_vm0, %v4859_v27  ;;  %4184 = vmatmul.msk.f32.gmra.mxu0 %vm92_vm0, %v4771_v17 }
  0xf3   :  { %v473_v39 = vpop.f32.mrf.mxu3 }
  0xf4   :  { %v474_v45 = vadd.f32 %v473_v39, %v373_v18  ;;  %v5298_v18 = vsel %vm476_vm3, %v836_v1, %v837_v7 }
  0xf6   :  { %v5264_v46 = vpop.f32.mrf.mxu0  ;;  %4203 = vmatmul.msk.f32.gmra.mxu1 %vm92_vm0, %v5064_v32 }
  0xf8   :  { %4167 = vmatmul.msk.f32.gmra.mxu3 %vm92_vm0, %v4859_v27 }
  0xf9   :  { %4221 = vmatmul.msk.f32.gmra.mxu2 %vm92_vm0, %v4870_v37  ;;  %4185 = vmatmul.msk.f32.gmra.mxu0 %vm92_vm0, %v4875_v38 }
  0xfb   :  { %v615_v13 = vpop.f32.mrf.mxu3 }
  0xfc   :  { %v5274_v47 = vadd.f32 %v615_v13, %v465_v23  ;;  %v5304_v23 = vld [vmem:[#allocation2 + $0x130] sm:$0xff] }
  0xfe   :  { %v5276_v26 = vpop.f32.mrf.mxu0  ;;  %4204 = vmatmul.msk.f32.gmra.mxu1 %vm92_vm0, %v5095_v61 }
 0x100   :  { %4168 = vmatmul.msk.f32.gmra.mxu3 %vm92_vm0, %v4870_v37  ;;  %v740_v37 = vrot.slane %v187_v50, 1 }
 0x101   :  { %4222 = vmatmul.msk.f32.gmra.mxu2 %vm92_vm0, %v4910_v54  ;;  %4186 = vmatmul.msk.f32.gmra.mxu0 %vm92_vm0, %v4902_v51 }
 0x102   :  { %v5307_v14 = vsel %vm224_vm4, %v740_v37, %v741_v9 }
 0x103   :  { %v618_v27 = vpop.f32.mrf.mxu3 }
 0x104   :  { %v5286_v48 = vadd.f32 %v618_v27, %v468_v33 }
 0x106   :  { %v5288_v49 = vpop.f32.mrf.mxu0  ;;  %4205 = vmatmul.msk.f32.gmra.mxu1 %vm92_vm0, %v5118_v19 }
 0x108   :  { %4169 = vmatmul.msk.f32.gmra.mxu3 %vm92_vm0, %v4910_v54 }
 0x109   :  { %4223 = vmatmul.msk.f32.gmra.mxu2 %vm92_vm0, %v187_v50  ;;  %4187 = vmatmul.msk.f32.gmra.mxu0 %vm92_vm0, %v4933_v2 }
 0x10b   :  { %v621_v16 = vpop.f32.mrf.mxu3 }
 0x10c   :  { %v5300_v31 = vadd.f32 %v621_v16, %v471_v15  ;;  %v627_v15 = vadd.f32 %v5182_v55, %v429_v34  ;;  %v591_v55 = vpop.f32.mrf.mxu2 }
 0x10e   :  { %v5302_v22 = vpop.f32.mrf.mxu0  ;;  %4206 = vmatmul.msk.f32.gmra.mxu1 %vm92_vm0, %v5298_v18 }
 0x110   :  { %4170 = vmatmul.msk.f32.gmra.mxu3 %vm92_vm0, %v187_v50 }
 0x111   :  { %4224 = vmatmul.msk.f32.gmra.mxu2 %vm92_vm0, %v5304_v23  ;;  %4188 = vmatmul.msk.f32.gmra.mxu0 %vm92_vm0, %v5307_v14 }
 0x113   :  { %v624_v54 = vpop.f32.mrf.mxu3 }
 0x114   :  { %v5316_v33 = vadd.f32 %v624_v54, %v474_v45  ;;  %v594_v37 = vpop.f32.mrf.mxu2 }
 0x116   :  { %v769_v28 = vpop.f32.mrf.mxu0 }
 0x118   :  { %4227 = vmatmul.msk.f32.vlgmr.msra.gmra.mxu3 %vm92_vm0, %v4908_v53 }
 0x119   :  { %4245 = vmatmul.msk.f32.vlgmr.msra.gmra.mxu0 %vm92_vm0, %v4905_v52  ;;  %v440_v52 = vpop.f32.mrf.mxu1 }
 0x11b   :  { %v671_v39 = vpop.f32.mrf.mxu3 }
 0x11c   :  { %v719_v13 = vadd.f32 %v671_v39, %v627_v15  ;;  %v597_v15 = vpop.f32.mrf.mxu2 }
 0x11e   :  { %v5325_v27 = vadd.f32 %v769_v28, %v719_v13  ;;  %v772_v50 = vpop.f32.mrf.mxu0 }
 0x120   :  { %4228 = vmatmul.msk.f32.gmra.mxu3 %vm92_vm0, %v4939_v4 }
 0x121   :  { %4246 = vmatmul.msk.f32.gmra.mxu0 %vm92_vm0, %v4936_v3 }
 0x123   :  { %v674_v40 = vpop.f32.mrf.mxu3 }
 0x124   :  { %v720_v42 = vadd.f32 %v674_v40, %v5192_v30  ;;  %v443_v30 = vpop.f32.mrf.mxu1 }
 0x126   :  { %v5332_v53 = vadd.f32 %v772_v50, %v720_v42  ;;  %v775_v45 = vpop.f32.mrf.mxu0  ;;  %v1023_v42 = vrot.slane %v5206_v10, 1 }
 0x128   :  { %4229 = vmatmul.msk.f32.gmra.mxu3 %vm92_vm0, %v4957_v12 }
 0x129   :  { %4247 = vmatmul.msk.f32.gmra.mxu0 %vm92_vm0, %v4954_v11  ;;  %v441_v11 = vadd.f32 %v440_v52, %v5220_v5 }
 0x12b   :  { %v677_v59 = vpop.f32.mrf.mxu3 }
 0x12c   :  { %v721_v4 = vadd.f32 %v677_v59, %v5204_v6  ;;  %v446_v6 = vpop.f32.mrf.mxu1 }
 0x12d   :  { %v447_v13 = vadd.f32 %v446_v6, %v5243_v43 }
 0x12e   :  { %v5339_v1 = vadd.f32 %v775_v45, %v721_v4  ;;  %v778_v3 = vpop.f32.mrf.mxu0  ;;  %v600_v45 = vpop.f32.mrf.mxu2 }
 0x12f   :  { %v633_v52 = vadd.f32 %v597_v15, %v447_v13 }
 0x130   :  { %4230 = vmatmul.msk.f32.gmra.mxu3 %vm92_vm0, %v4983_v25  ;;  %v631_v25 = vadd.f32 %v591_v55, %v441_v11 }
 0x131   :  { %4248 = vmatmul.msk.f32.gmra.mxu0 %vm92_vm0, %v4980_v24  ;;  %v444_v24 = vadd.f32 %v443_v30, %v5230_v29  ;;  %v170_v29 = vld [vmem:[#allocation2 + $0x98] sm:$0x3] }
 0x132   :  { %v1120_v55 = vrot.slane %v170_v29, 2 }
 0x133   :  { %v680_v7 = vpop.f32.mrf.mxu3 }
 0x134   :  { %v722_v12 = vadd.f32 %v680_v7, %v5218_v56 }
 0x136   :  { %v5347_v9 = vadd.f32 %v778_v3, %v722_v12  ;;  %v781_v16 = vpop.f32.mrf.mxu0 }
 0x138   :  { %4231 = vmatmul.msk.f32.gmra.mxu3 %vm92_vm0, %v5005_v41  ;;  %v632_v41 = vadd.f32 %v594_v37, %v444_v24 }
 0x139   :  { %4249 = vmatmul.msk.f32.gmra.mxu0 %vm92_vm0, %v5002_v36  ;;  %v449_v36 = vpop.f32.mrf.mxu1 }
 0x13a   :  { %v450_v3 = vadd.f32 %v449_v36, %v5254_v35 }
 0x13b   :  { %v683_v54 = vpop.f32.mrf.mxu3 }
 0x13c   :  { %v723_v34 = vadd.f32 %v683_v54, %v631_v25 }
 0x13e   :  { %v5354_v28 = vadd.f32 %v781_v16, %v723_v34  ;;  %v784_v56 = vpop.f32.mrf.mxu0 }
 0x140   :  { %4232 = vmatmul.msk.f32.gmra.mxu3 %vm92_vm0, %v5027_v58  ;;  %v1024_v58 = vrot.slane %v170_v29, 1 }
 0x141   :  { %4250 = vmatmul.msk.f32.gmra.mxu0 %vm92_vm0, %v5024_v57  ;;  %v1119_v57 = vrot.slane %v5206_v10, 2  ;;  %v5374_v12 = vpop.f32.mrf.mxu1  ;;  %v5378_v10 = vpop.f32.mrf.mxu2 }
 0x142   :  { %v1025_v4 = vsel %vm224_vm4, %v1023_v42, %v1024_v58  ;;  %v1122_v42 = vrot.slane %v5304_v23, 2 }
 0x143   :  { %v686_v5 = vpop.f32.mrf.mxu3  ;;  %v1121_v7 = vsel %vm476_vm3, %v1119_v57, %v1120_v55 }
 0x144   :  { %v724_v39 = vadd.f32 %v686_v5, %v632_v41 }
 0x146   :  { %v5361_v50 = vadd.f32 %v784_v56, %v724_v39  ;;  %v787_v40 = vpop.f32.mrf.mxu0 }
 0x148   :  { %4233 = vmatmul.msk.f32.gmra.mxu3 %vm92_vm0, %v5209_v44 }
 0x149   :  { %4251 = vmatmul.msk.f32.gmra.mxu0 %vm92_vm0, %v5202_v60  ;;  %v634_v60 = vadd.f32 %v600_v45, %v450_v3  ;;  %v5386_v35 = vpop.f32.mrf.mxu1  ;;  %v5392_v54 = vpop.f32.mrf.mxu2 }
 0x14b   :  { %v689_v59 = vpop.f32.mrf.mxu3 }
 0x14c   :  { %v725_v43 = vadd.f32 %v689_v59, %v633_v52 }
 0x14e   :  { %v5371_v30 = vadd.f32 %v787_v40, %v725_v43  ;;  %v790_v44 = vpop.f32.mrf.mxu0 }
 0x150   :  { %4234 = vmatmul.msk.f32.gmra.mxu3 %vm92_vm0, %v1025_v4 }
 0x151   :  { %4252 = vmatmul.msk.f32.gmra.mxu0 %vm92_vm0, %v1121_v7  ;;  %v5400_v24 = vpop.f32.mrf.mxu1  ;;  %v5406_v15 = vpop.f32.mrf.mxu2 }
 0x153   :  { %v692_v37 = vpop.f32.mrf.mxu3 }
 0x154   :  { %v726_v11 = vadd.f32 %v692_v37, %v634_v60 }
 0x156   :  { %v5380_v16 = vadd.f32 %v790_v44, %v726_v11  ;;  %v5382_v25 = vpop.f32.mrf.mxu0 }
 0x158   :  { %4235 = vmatmul.msk.f32.gmra.mxu3 %vm92_vm0, %v5101_v63 }
 0x159   :  { %4253 = vmatmul.msk.f32.gmra.mxu0 %vm92_vm0, %v5098_v62 }
 0x15b   :  { %v5390_v6 = vpop.f32.mrf.mxu3 }
 0x15e   :  { %v5394_v34 = vpop.f32.mrf.mxu0 }
 0x160   :  { %4236 = vmatmul.msk.f32.gmra.mxu3 %vm92_vm0, %v5124_v21  ;;  %v5414_v21 = vpop.f32.mrf.mxu1 }
 0x161   :  { %4254 = vmatmul.msk.f32.gmra.mxu0 %vm92_vm0, %v5121_v20  ;;  %v5420_v20 = vpop.f32.mrf.mxu2 }
 0x163   :  { %v5402_v63 = vpop.f32.mrf.mxu3 }
 0x166   :  { %v5404_v56 = vpop.f32.mrf.mxu0 }
 0x168   :  { %4237 = vmatmul.msk.f32.gmra.mxu3 %vm92_vm0, %v4771_v17  ;;  %v865_v17 = vpop.f32.mrf.mxu1 }
 0x169   :  { %4255 = vmatmul.msk.f32.gmra.mxu0 %vm92_vm0, %v5040_v8  ;;  %v957_v8 = vpop.f32.mrf.mxu2  ;;  %v913_v4 = vadd.f32 %v865_v17, %v5325_v27 }
 0x16b   :  { %v5412_v62 = vpop.f32.mrf.mxu3  ;;  %v1005_v44 = vadd.f32 %v957_v8, %v913_v4 }
 0x16e   :  { %v5416_v41 = vpop.f32.mrf.mxu0 }
 0x170   :  { %4238 = vmatmul.msk.f32.gmra.mxu3 %vm92_vm0, %v4875_v38  ;;  %v868_v13 = vpop.f32.mrf.mxu1 }
 0x171   :  { %4256 = vmatmul.msk.f32.gmra.mxu0 %vm92_vm0, %v5064_v32  ;;  %v914_v60 = vadd.f32 %v868_v13, %v5332_v53 }
 0x173   :  { %v5424_v5 = vpop.f32.mrf.mxu3 }
 0x176   :  { %v5426_v39 = vpop.f32.mrf.mxu0 }
 0x178   :  { %4239 = vmatmul.msk.f32.gmra.mxu3 %vm92_vm0, %v4902_v51  ;;  %v960_v51 = vpop.f32.mrf.mxu2  ;;  %v871_v40 = vpop.f32.mrf.mxu1 }
 0x179   :  { %4257 = vmatmul.msk.f32.gmra.mxu0 %vm92_vm0, %v5095_v61  ;;  %v190_v61 = vld [vmem:[#allocation2 + $0x138] sm:$0x3] }
 0x17a   :  { %v1027_v29 = vrot.slane %v190_v61, 1  ;;  %v1123_v45 = vrot.slane %v190_v61, 2 }
 0x17b   :  { %v5432_v36 = vpop.f32.mrf.mxu3 }
 0x17e   :  { %v5434_v38 = vpop.f32.mrf.mxu0 }
 0x180   :  { %4240 = vmatmul.msk.f32.gmra.mxu3 %vm92_vm0, %v4933_v2  ;;  %v963_v58 = vpop.f32.mrf.mxu2  ;;  %v874_v52 = vpop.f32.mrf.mxu1 }
 0x181   :  { %4258 = vmatmul.msk.f32.gmra.mxu0 %vm92_vm0, %v5118_v19  ;;  %v1026_v19 = vrot.slane %v5304_v23, 1  ;;  %v1124_v23 = vsel %vm476_vm3, %v1122_v42, %v1123_v45  ;;  %v5505_v42 = vld [vmem:[%s7489_s2] ss:$0 sm:$0xff] }
 0x183   :  { %v5444_v32 = vpop.f32.mrf.mxu3 }
 0x186   :  { %v5452_v2 = vpop.f32.mrf.mxu0 }
 0x188   :  { %4241 = vmatmul.msk.f32.gmra.mxu3 %vm92_vm0, %v5307_v14  ;;  %v966_v43 = vpop.f32.mrf.mxu2  ;;  %v877_v7 = vpop.f32.mrf.mxu1 }
 0x189   :  { %4259 = vmatmul.msk.f32.gmra.mxu0 %vm92_vm0, %v5298_v18  ;;  %v1028_v18 = vsel %vm224_vm4, %v1026_v19, %v1027_v29  ;;  %v1006_v19 = vadd.f32 %v960_v51, %v914_v60 }
 0x18b   :  { %v5470_v14 = vpop.f32.mrf.mxu3 }
 0x18e   :  { %v5479_v57 = vpop.f32.mrf.mxu0 }
 0x190   :  { %4242 = vmatmul.msk.f32.gmra.mxu3 %vm92_vm0, %v1028_v18  ;;  %v969_v61 = vpop.f32.mrf.mxu2  ;;  %v880_v53 = vpop.f32.mrf.mxu1 }
 0x191   :  { %4260 = vmatmul.msk.f32.gmra.mxu0 %vm92_vm0, %v1124_v23  ;;  %v915_v23 = vadd.f32 %v871_v40, %v5339_v1  ;;  %v916_v40 = vadd.f32 %v874_v52, %v5347_v9  ;;  %vm3886_vm0 = vcmask 523264  }
 0x193   :  { %v5494_v55 = vpop.f32.mrf.mxu3  ;;  %v1007_v51 = vadd.f32 %v963_v58, %v915_v23 }
 0x196   :  { %v1151_v59 = vpop.f32.mrf.mxu0 }
 0x19b   :  { %v1055_v3 = vpop.f32.mrf.mxu3 }
 0x19c   :  { %v1103_v37 = vadd.f32 %v1055_v3, %v1005_v44  ;;  %v972_v3 = vpop.f32.mrf.mxu2 }
 0x19e   :  { %v1154_v11 = vpop.f32.mrf.mxu0  ;;  %v1199_v29 = vadd.f32 %v1151_v59, %v1103_v37 }
 0x1a0   :  { %v5509_v27 = vadd.f32 %v5505_v42, %v1199_v29  ;;  %v883_v29 = vpop.f32.mrf.mxu1 }
 0x1a2   :  { %v1236_v59 = vsel %vm1235_vm5, %v5509_v27, 0.0 }
 0x1a3   :  { %v1058_v45 = vpop.f32.mrf.mxu3 }
 0x1a4   :  { %v1104_v18 = vadd.f32 %v1058_v45, %v1006_v19  ;;  %v1008_v45 = vadd.f32 %v966_v43, %v916_v40  ;;  %v975_v0 = vpop.f32.mrf.mxu2 }
 0x1a6   :  { %v1200_v17 = vadd.f32 %v1154_v11, %v1104_v18  ;;  %v1157_v8 = vpop.f32.mrf.mxu0 }
 0x1a8   :  { %v5512_v13 = vadd.f32 %v5505_v42, %v1200_v17 }
 0x1aa   :  { %v1237_v4 = vsel %vm1235_vm5, %v5512_v13, 0.0 }
 0x1ab   :  { %v1238_v44 = vadd.f32 %v1237_v4, %v1236_v59  ;;  %v1061_v60 = vpop.f32.mrf.mxu3  ;;  %v917_v59 = vadd.f32 %v877_v7, %v5354_v28 }
 0x1ac   :  { %v1105_v1 = vadd.f32 %v1061_v60, %v1007_v51  ;;  %v886_v60 = vpop.f32.mrf.mxu1 }
 0x1ad   :  { %v1009_v52 = vadd.f32 %v969_v61, %v917_v59 }
 0x1ae   :  { %v1201_v37 = vadd.f32 %v1157_v8, %v1105_v1  ;;  %v1160_v11 = vpop.f32.mrf.mxu0 }
 0x1b0   :  { %v5520_v19 = vadd.f32 %v5505_v42, %v1201_v37 }
 0x1b2   :  { %v1239_v58 = vsel %vm1235_vm5, %v5520_v19, 0.0 }
 0x1b3   :  { %v1240_v18 = vadd.f32 %v1239_v58, %v1238_v44  ;;  %v1064_v23 = vpop.f32.mrf.mxu3  ;;  %v918_v44 = vadd.f32 %v880_v53, %v5361_v50  ;;  %v978_v58 = vpop.f32.mrf.mxu2 }
 0x1b4   :  { %v1106_v17 = vadd.f32 %v1064_v23, %v1008_v45  ;;  %v889_v59 = vpop.f32.mrf.mxu1 }
 0x1b5   :  { %v1010_v7 = vadd.f32 %v972_v3, %v918_v44 }
 0x1b6   :  { %v1202_v4 = vadd.f32 %v1160_v11, %v1106_v17  ;;  %v1163_v51 = vpop.f32.mrf.mxu0 }
 0x1b8   :  { %v5526_v9 = vadd.f32 %v5505_v42, %v1202_v4 }
 0x1ba   :  { %v1241_v8 = vsel %vm1235_vm5, %v5526_v9, 0.0 }
 0x1bb   :  { %v1242_v43 = vadd.f32 %v1241_v8, %v1240_v18  ;;  %v1067_v1 = vpop.f32.mrf.mxu3  ;;  %v919_v18 = vadd.f32 %v883_v29, %v5371_v30  ;;  %v981_v53 = vpop.f32.mrf.mxu2 }
 0x1bc   :  { %v1107_v40 = vadd.f32 %v1067_v1, %v1009_v52 }
 0x1be   :  { %v1203_v37 = vadd.f32 %v1163_v51, %v1107_v40  ;;  %v1166_v45 = vpop.f32.mrf.mxu0  ;;  %v1011_v51 = vadd.f32 %v975_v0, %v919_v18 }
 0x1c0   :  { %v5532_v28 = vadd.f32 %v5505_v42, %v1203_v37 }
 0x1c2   :  { %v1243_v11 = vsel %vm1235_vm5, %v5532_v28, 0.0 }
 0x1c3   :  { %v1244_v61 = vadd.f32 %v1243_v11, %v1242_v43  ;;  %v1070_v23 = vpop.f32.mrf.mxu3  ;;  %v920_v43 = vadd.f32 %v886_v60, %v5380_v16  ;;  %v984_v11 = vpop.f32.mrf.mxu2 }
 0x1c4   :  { %v1108_v17 = vadd.f32 %v1070_v23, %v1010_v7  ;;  %v892_v7 = vpop.f32.mrf.mxu1 }
 0x1c5   :  { %v1012_v29 = vadd.f32 %v978_v58, %v920_v43 }
 0x1c6   :  { %v1204_v4 = vadd.f32 %v1166_v45, %v1108_v17  ;;  %v1169_v52 = vpop.f32.mrf.mxu0 }
 0x1c8   :  { %v5538_v50 = vadd.f32 %v5505_v42, %v1204_v4  ;;  %v453_v4 = vadd.f32 %v5374_v12, %v5264_v46 }
 0x1ca   :  { %v1245_v8 = vsel %vm1235_vm5, %v5538_v50, 0.0 }
 0x1cb   :  { %v1246_v3 = vadd.f32 %v1245_v8, %v1244_v61  ;;  %v1073_v1 = vpop.f32.mrf.mxu3  ;;  %v987_v43 = vpop.f32.mrf.mxu2 }
 0x1cc   :  { %v1109_v40 = vadd.f32 %v1073_v1, %v1011_v51  ;;  %v895_v60 = vpop.f32.mrf.mxu1  ;;  %v459_v1 = vadd.f32 %v5400_v24, %v5288_v49 }
 0x1ce   :  { %v1205_v44 = vadd.f32 %v1169_v52, %v1109_v40  ;;  %v1172_v37 = vpop.f32.mrf.mxu0  ;;  %v456_v52 = vadd.f32 %v5386_v35, %v5276_v26  ;;  %v1616_v40 = vld [vmem:[#allocation5 + $0x18] sm:$0xff]  ;;  %v637_v26 = vadd.f32 %v5406_v15, %v459_v1  ;;  %v462_v35 = vadd.f32 %v5414_v21, %v5302_v22 }
 0x1cf   :  { %1663 = vmatpush.msra.mxu1 %v1616_v40 }
 0x1d0   :  { %v5544_v30 = vadd.f32 %v5505_v42, %v1205_v44  ;;  %v636_v46 = vadd.f32 %v5392_v54, %v456_v52 }
 0x1d2   :  { %v1247_v45 = vsel %vm1235_vm5, %v5544_v30, 0.0 }
 0x1d3   :  { %v1248_v0 = vadd.f32 %v1247_v45, %v1246_v3  ;;  %v1076_v23 = vpop.f32.mrf.mxu3  ;;  %v635_v3 = vadd.f32 %v5378_v10, %v453_v4  ;;  %v638_v45 = vadd.f32 %v5420_v20, %v462_v35 }
 0x1d4   :  { %v1110_v17 = vadd.f32 %v1076_v23, %v1012_v29  ;;  %v729_v29 = vadd.f32 %v5412_v62, %v637_v26  ;;  %v898_v49 = vpop.f32.mrf.mxu1 }
 0x1d5   :  { %v727_v12 = vadd.f32 %v5390_v6, %v635_v3  ;;  %v730_v15 = vadd.f32 %v5424_v5, %v638_v45 }
 0x1d6   :  { %v1206_v18 = vadd.f32 %v1172_v37, %v1110_v17  ;;  %v1175_v61 = vpop.f32.mrf.mxu0  ;;  %v728_v37 = vadd.f32 %v5402_v63, %v636_v46  ;;  %v827_v6 = vadd.f32 %v5404_v56, %v729_v29  ;;  %v990_v17 = vpop.f32.mrf.mxu2  ;;  %v732_v46 = vadd.f32 %v5444_v32, %v5286_v48 }
 0x1d7   :  { %v825_v10 = vadd.f32 %v5382_v25, %v727_v12  ;;  %v828_v25 = vadd.f32 %v5416_v41, %v730_v15 }
 0x1d8   :  { %v5551_v16 = vadd.f32 %v5505_v42, %v1206_v18  ;;  %v826_v54 = vadd.f32 %v5394_v34, %v728_v37  ;;  %v923_v63 = vadd.f32 %v895_v60, %v827_v6  ;;  %v731_v34 = vadd.f32 %v5432_v36, %v5274_v47 }
 0x1d9   :  { %v924_v20 = vadd.f32 %v898_v49, %v828_v25  ;;  %v830_v35 = vadd.f32 %v5434_v38, %v732_v46 }
 0x1da   :  { %v1249_v58 = vsel %vm1235_vm5, %v5551_v16, 0.0  ;;  %v922_v22 = vadd.f32 %v892_v7, %v826_v54 }
 0x1db   :  { %v1250_v51 = vadd.f32 %v1249_v58, %v1248_v0  ;;  %v1079_v8 = vpop.f32.mrf.mxu3  ;;  %v921_v0 = vadd.f32 %v889_v59, %v825_v10  ;;  %v1015_v58 = vadd.f32 %v987_v43, %v923_v63  ;;  %v1016_v40 = vadd.f32 %v990_v17, %v924_v20 }
 0x1dc   :  { %v1014_v62 = vadd.f32 %v984_v11, %v922_v22  ;;  %v901_v52 = vpop.f32.mrf.mxu1 }
 0x1dd   :  { %v1013_v21 = vadd.f32 %v981_v53, %v921_v0  ;;  %v829_v53 = vadd.f32 %v5426_v39, %v731_v34  ;;  %v733_v0 = vadd.f32 %v5470_v14, %v5300_v31  ;;  %v734_v14 = vadd.f32 %v5494_v55, %v5316_v33 }
 0x1de   :  { %v1178_v44 = vpop.f32.mrf.mxu0  ;;  %v993_v1 = vpop.f32.mrf.mxu2 }
 0x1df   :  { %v1111_v4 = vadd.f32 %v1079_v8, %v1013_v21  ;;  %v925_v43 = vadd.f32 %v901_v52, %v829_v53  ;;  %v831_v63 = vadd.f32 %v5452_v2, %v733_v0  ;;  %v4632_v53 = vmov 128.0  }
 0x1e0   :  { %4567 = vrcp.f32 %v4632_v53 }
 0x1e1   :  { %v1207_v3 = vadd.f32 %v1175_v61, %v1111_v4  ;;  %v1017_v26 = vadd.f32 %v993_v1, %v925_v43 }
 0x1e3   :  { %v1082_v24 = vpop.f32.mrf.mxu3  ;;  %v5577_v41 = vadd.f32 %v5505_v42, %v1207_v3 }
 0x1e4   :  { %v1112_v59 = vadd.f32 %v1082_v24, %v1014_v62  ;;  %v904_v12 = vpop.f32.mrf.mxu1 }
 0x1e5   :  { %v1251_v39 = vsel %vm1235_vm5, %v5577_v41, 0.0  ;;  %v926_v54 = vadd.f32 %v904_v12, %v830_v35 }
 0x1e6   :  { %v1181_v23 = vpop.f32.mrf.mxu0  ;;  %v1208_v7 = vadd.f32 %v1178_v44, %v1112_v59  ;;  %v996_v32 = vpop.f32.mrf.mxu2  ;;  %v1252_v10 = vadd.f32 %v1251_v39, %v1250_v51 }
 0x1e7   :  { %v1018_v21 = vadd.f32 %v996_v32, %v926_v54  ;;  %v4568_v43 = vpop.eup %4567 }
 0x1e8   :  { %v5582_v47 = vadd.f32 %v5505_v42, %v1208_v7  ;;  %v1274_v39 = vmul.f32 128.0, %v4568_v43  ;;  %vm1278_vm6 = vweird.f32 %v4568_v43 }
 0x1ea   :  { %v1253_v37 = vsel %vm1235_vm5, %v5582_v47, 0.0 }
 0x1eb   :  { %v1085_v18 = vpop.f32.mrf.mxu3  ;;  %v1254_v45 = vadd.f32 %v1253_v37, %v1252_v10  ;;  %v1275_v37 = vsub.f32 1.0, %v1274_v39 }
 0x1ec   :  { %v1113_v5 = vadd.f32 %v1085_v18, %v1015_v58  ;;  %v907_v22 = vpop.f32.mrf.mxu1 }
 0x1ed   :  { %v927_v31 = vadd.f32 %v907_v22, %v831_v63 }
 0x1ee   :  { %v1184_v56 = vpop.f32.mrf.mxu0  ;;  %v1209_v11 = vadd.f32 %v1181_v23, %v1113_v5  ;;  %v999_v52 = vpop.f32.mrf.mxu2 }
 0x1ef   :  { %v1019_v59 = vadd.f32 %v999_v52, %v927_v31 }
 0x1f0   :  { %v5587_v44 = vadd.f32 %v5505_v42, %v1209_v11 }
 0x1f2   :  { %v1255_v49 = vsel %vm1235_vm5, %v5587_v44, 0.0 }
 0x1f3   :  { %v1088_v60 = vpop.f32.mrf.mxu3  ;;  %v1256_v15 = vadd.f32 %v1255_v49, %v1254_v45 }
 0x1f4   :  { %v1114_v8 = vadd.f32 %v1088_v60, %v1016_v40  ;;  %v910_v2 = vpop.f32.mrf.mxu1 }
 0x1f6   :  { %v1210_v36 = vadd.f32 %v1184_v56, %v1114_v8  ;;  %v1187_v61 = vpop.f32.mrf.mxu0  ;;  %v832_v56 = vadd.f32 %v5479_v57, %v734_v14  ;;  %v1002_v11 = vpop.f32.mrf.mxu2 }
 0x1f8   :  { %v5593_v48 = vadd.f32 %v5505_v42, %v1210_v36  ;;  %v928_v7 = vadd.f32 %v910_v2, %v832_v56 }
 0x1fa   :  { %v1257_v38 = vsel %vm1235_vm5, %v5593_v48, 0.0  ;;  %v1020_v55 = vadd.f32 %v1002_v11, %v928_v7 }
 0x1fb   :  { %v1091_v29 = vpop.f32.mrf.mxu3  ;;  %v1258_v51 = vadd.f32 %v1257_v38, %v1256_v15 }
 0x1fc   :  { %v1115_v24 = vadd.f32 %v1091_v29, %v1017_v26  ;;  %v1276_v29 = vmul.f32 %v4568_v43, %v1275_v37 }
 0x1fe   :  { %v1211_v6 = vadd.f32 %v1187_v61, %v1115_v24  ;;  %v1190_v23 = vpop.f32.mrf.mxu0  ;;  %v1277_v45 = vadd.f32 %v4568_v43, %v1276_v29 }
 0x200   :  { %v1231_v17 = vadd.f32 %v5505_v42, %v1211_v6  ;;  %v5613_v38 = vsel %vm1278_vm6, %v4568_v43, %v1277_v45 }
 0x201   :  { %7506 = vst [vmem:[#allocation11_spill] sm:$0xff] %v5613_v38 }
 0x202   :  { %v1259_v25 = vsel %vm1235_vm5, %v1231_v17, 0.0 }
 0x203   :  { %v1260_v18 = vadd.f32 %v1259_v25, %v1258_v51  ;;  %v1094_v62 = vpop.f32.mrf.mxu3 }
 0x204   :  { %v1116_v4 = vadd.f32 %v1094_v62, %v1018_v21 }
 0x206   :  { %v1212_v58 = vadd.f32 %v1190_v23, %v1116_v4  ;;  %v1193_v34 = vpop.f32.mrf.mxu0 }
 0x208   :  { %v1232_v20 = vadd.f32 %v5505_v42, %v1212_v58 }
 0x20a   :  { %v1261_v3 = vsel %vm1235_vm5, %v1232_v20, 0.0 }
 0x20b   :  { %v1262_v5 = vadd.f32 %v1261_v3, %v1260_v18  ;;  %v1097_v1 = vpop.f32.mrf.mxu3 }
 0x20c   :  { %v1117_v40 = vadd.f32 %v1097_v1, %v1019_v59 }
 0x20e   :  { %v1213_v60 = vadd.f32 %v1193_v34, %v1117_v40  ;;  %v1196_v57 = vpop.f32.mrf.mxu0 }
 0x210   :  { %v1233_v33 = vadd.f32 %v5505_v42, %v1213_v60 }
 0x212   :  { %v1263_v8 = vsel %vm1235_vm5, %v1233_v33, 0.0 }
 0x213   :  { %v1264_v46 = vadd.f32 %v1263_v8, %v1262_v5  ;;  %v1100_v36 = vpop.f32.mrf.mxu3 }
 0x214   :  { %v1118_v61 = vadd.f32 %v1100_v36, %v1020_v55 }
 0x216   :  { %v1214_v12 = vadd.f32 %v1196_v57, %v1118_v61 }
 0x218   :  { %v1234_v26 = vadd.f32 %v5505_v42, %v1214_v12 }
 0x21a   :  { %v1265_v35 = vsel %vm1235_vm5, %v1234_v26, 0.0 }
 0x21b   :  { %v1266_v32 = vadd.f32 %v1265_v35, %v1264_v46 }
 0x21d   :  { %v1267_v10 = vrot.slane %v1266_v32, 4 }
 0x21f   :  { %v1268_v49 = vadd.f32 %v1267_v10, %v1266_v32 }
 0x221   :  { %v1269_v24 = vrot.slane %v1268_v49, 2 }
 0x223   :  { %v1270_v54 = vadd.f32 %v1269_v24, %v1268_v49 }
 0x225   :  { %v1271_v0 = vrot.slane %v1270_v54, 1 }
 0x227   :  { %v1272_v6 = vadd.f32 %v1271_v0, %v1270_v54 }
 0x229   :  { %v1280_v15 = vmul.f32 %v5613_v38, %v1272_v6 }
 0x22b   :  { %v5617_v23 = vsub.f32 %v5509_v27, %v1280_v15  ;;  %v5620_v42 = vsub.f32 %v5512_v13, %v1280_v15  ;;  %v5623_v22 = vsub.f32 %v5520_v19, %v1280_v15  ;;  %v5626_v51 = vsub.f32 %v5526_v9, %v1280_v15 }
 0x22c   :  { %v5629_v21 = vsub.f32 %v5532_v28, %v1280_v15  ;;  %v5632_v63 = vsub.f32 %v5538_v50, %v1280_v15  ;;  %v5635_v25 = vsub.f32 %v5544_v30, %v1280_v15  ;;  %v5638_v27 = vsub.f32 %v5551_v16, %v1280_v15 }
 0x22d   :  { %v5640_v13 = vsub.f32 %v1231_v17, %v1280_v15  ;;  %v5642_v18 = vsub.f32 %v1232_v20, %v1280_v15  ;;  %v5644_v19 = vsub.f32 %v1233_v33, %v1280_v15  ;;  %v5646_v9 = vsub.f32 %v1234_v26, %v1280_v15 }
 0x22e   :  { %v1297_v28 = vmul.f32 %v5617_v23, %v5617_v23  ;;  %v1298_v50 = vmul.f32 %v5620_v42, %v5620_v42  ;;  %v1299_v30 = vmul.f32 %v5623_v22, %v5623_v22  ;;  %v1300_v16 = vmul.f32 %v5626_v51, %v5626_v51 }
 0x22f   :  { %v1301_v52 = vmul.f32 %v5629_v21, %v5629_v21  ;;  %v1302_v58 = vmul.f32 %v5632_v63, %v5632_v63  ;;  %v5665_v59 = vsub.f32 %v5577_v41, %v1280_v15  ;;  %v1303_v56 = vmul.f32 %v5635_v25, %v5635_v25 }
 0x230   :  { %v1313_v17 = vsel %vm1235_vm5, %v1297_v28, 0.0  ;;  %v1314_v62 = vsel %vm1235_vm5, %v1298_v50, 0.0  ;;  %v1316_v31 = vsel %vm1235_vm5, %v1299_v30, 0.0  ;;  %v1318_v20 = vsel %vm1235_vm5, %v1300_v16, 0.0 }
 0x231   :  { %v1315_v4 = vadd.f32 %v1314_v62, %v1313_v17  ;;  %v1320_v3 = vsel %vm1235_vm5, %v1301_v52, 0.0  ;;  %v5671_v5 = vsub.f32 %v5582_v47, %v1280_v15  ;;  %v1304_v1 = vmul.f32 %v5638_v27, %v5638_v27 }
 0x232   :  { %v1322_v40 = vsel %vm1235_vm5, %v1302_v58, 0.0  ;;  %v5677_v7 = vsub.f32 %v5587_v44, %v1280_v15  ;;  %v1305_v41 = vmul.f32 %v5665_v59, %v5665_v59  ;;  %v1324_v60 = vsel %vm1235_vm5, %v1303_v56, 0.0  ;;  %v1533_v58 = vld [vmem:[#allocation5 + $0x8] sm:$0xff] }
 0x233   :  { %v1317_v14 = vadd.f32 %v1316_v31, %v1315_v4  ;;  %v5683_v33 = vsub.f32 %v5593_v48, %v1280_v15  ;;  %v1306_v47 = vmul.f32 %v5671_v5, %v5671_v5  ;;  %v1326_v55 = vsel %vm1235_vm5, %v1304_v1, 0.0  ;;  %1760 = vmatpush.msra.mxu2 %v1533_v58  ;;  %v1861_v56 = vld [vmem:[#allocation5 + $0x28] sm:$0xff] }
 0x234   :  { %v1307_v43 = vmul.f32 %v5677_v7, %v5677_v7  ;;  %v1328_v44 = vsel %vm1235_vm5, %v1305_v41, 0.0  ;;  %v1309_v48 = vmul.f32 %v5640_v13, %v5640_v13  ;;  %v1310_v26 = vmul.f32 %v5642_v18, %v5642_v18  ;;  %1908 = vmatpush.msrb.mxu3 %v1861_v56  ;;  %v1860_v41 = vld [vmem:[#allocation5 + $0x20] sm:$0xff] }
 0x235   :  { %v1319_v34 = vadd.f32 %v1318_v20, %v1317_v14  ;;  %v1308_v36 = vmul.f32 %v5683_v33, %v5683_v33  ;;  %v1330_v57 = vsel %vm1235_vm5, %v1306_v47, 0.0  ;;  %v1311_v32 = vmul.f32 %v5644_v19, %v5644_v19  ;;  %v1615_v14 = vld [vmem:[#allocation5 + $0x10] sm:$0xff] }
 0x236   :  { %v1332_v12 = vsel %vm1235_vm5, %v1307_v43, 0.0  ;;  %v1336_v10 = vsel %vm1235_vm5, %v1309_v48, 0.0  ;;  %v1312_v49 = vmul.f32 %v5646_v9, %v5646_v9  ;;  %v1338_v24 = vsel %vm1235_vm5, %v1310_v26, 0.0  ;;  %1664 = vmatpush.msra.mxu1 %v1615_v14  ;;  %1909 = vmatpush.msrb.mxu3 %v1860_v41  ;;  %v4559_v26 = vld [vmem:[%s7490_s3] ss:$0 sm:$0xff] }
 0x237   :  { %v1321_v2 = vadd.f32 %v1320_v3, %v1319_v34  ;;  %v1334_v35 = vsel %vm1235_vm5, %v1308_v36, 0.0  ;;  %v1340_v54 = vsel %vm1235_vm5, %v1311_v32, 0.0  ;;  %v7507_v17 = vmov 0.0   ;;  %v1532_v3 = vld [vmem:[#allocation5] sm:$0xff] }
 0x238   :  { %v1342_v6 = vsel %vm1235_vm5, %v1312_v49, 0.0  ;;  %1470 = vst.msk [vmem:[#allocation3 + $0x118] sm:$0x3] %vm1435_vm7, %v7507_v17  ;;  %1761 = vmatpush.msra.mxu2 %v1532_v3 }
 0x239   :  { %v1323_v53 = vadd.f32 %v1322_v40, %v1321_v2  ;;  %1472 = vst.msk [vmem:[#allocation3 + $0x128] sm:$0x3] %vm1435_vm7, %v7507_v17  ;;  %v1492_v2 = vld [vmem:[#allocation3] sm:$0xff] }
 0x23a   :  { %1436 = vst.msk [vmem:[#allocation3 + $0x8] sm:$0x3] %vm1435_vm7, %v7507_v17  ;;  %v1811_v1 = vrot.slane %v1492_v2, 2  ;;  %4277 = vmatmul.msk.f32.vlgmr.msra.gmra.mxu2 %vm1235_vm5, %v1492_v2 }
 0x23b   :  { %v1325_v11 = vadd.f32 %v1324_v60, %v1323_v53  ;;  %1438 = vst.msk [vmem:[#allocation3 + $0x18] sm:$0x3] %vm1435_vm7, %v7507_v17 }
 0x23c   :  { %1440 = vst.msk [vmem:[#allocation3 + $0x28] sm:$0x3] %vm1435_vm7, %v7507_v17 }
 0x23d   :  { %v1327_v8 = vadd.f32 %v1326_v55, %v1325_v11  ;;  %1442 = vst.msk [vmem:[#allocation3 + $0x38] sm:$0x3] %vm1435_vm7, %v7507_v17  ;;  %v1566_v55 = vrot.slane %v1492_v2, 1 }
 0x23e   :  { %1444 = vst.msk [vmem:[#allocation3 + $0x48] sm:$0x3] %vm1435_vm7, %v7507_v17 }
 0x23f   :  { %v1329_v46 = vadd.f32 %v1328_v44, %v1327_v8  ;;  %1446 = vst.msk [vmem:[#allocation3 + $0x58] sm:$0x3] %vm1435_vm7, %v7507_v17  ;;  %v1977_v8 = vld [vmem:[#allocation5 + $0x38] sm:$0xff]  ;;  %v2075_v44 = vld [vmem:[#allocation5 + $0x48] sm:$0xff] }
 0x240   :  { %1448 = vst.msk [vmem:[#allocation3 + $0x68] sm:$0x3] %vm1435_vm7, %v7507_v17  ;;  %1998 = vmatpush.msrb.mxu0 %v1977_v8  ;;  %2094 = vmatpush.msrb.mxu1 %v2075_v44 }
 0x241   :  { %v1331_v61 = vadd.f32 %v1330_v57, %v1329_v46  ;;  %1450 = vst.msk [vmem:[#allocation3 + $0x78] sm:$0x3] %vm1435_vm7, %v7507_v17  ;;  %v1493_v40 = vld [vmem:[#allocation3 + $0x8] sm:$0x3]  ;;  %v1976_v46 = vld [vmem:[#allocation5 + $0x30] sm:$0xff] }
 0x242   :  { %1452 = vst.msk [vmem:[#allocation3 + $0x88] sm:$0x3] %vm1435_vm7, %v7507_v17  ;;  %v1812_v60 = vrot.slane %v1493_v40, 2  ;;  %v1567_v43 = vrot.slane %v1493_v40, 1  ;;  %1999 = vmatpush.msrb.mxu0 %v1976_v46 }
 0x243   :  { %v1333_v39 = vadd.f32 %v1332_v12, %v1331_v61  ;;  %1454 = vst.msk [vmem:[#allocation3 + $0x98] sm:$0x3] %vm1435_vm7, %v7507_v17 }
 0x244   :  { %1456 = vst.msk [vmem:[#allocation3 + $0xa8] sm:$0x3] %vm1435_vm7, %v7507_v17  ;;  %v1813_v47 = vsel %vm476_vm3, %v1811_v1, %v1812_v60  ;;  %v1568_v57 = vsel %vm224_vm4, %v1566_v55, %v1567_v43 }
 0x245   :  { %v1335_v37 = vadd.f32 %v1334_v35, %v1333_v39  ;;  %1458 = vst.msk [vmem:[#allocation3 + $0xb8] sm:$0x3] %vm1435_vm7, %v7507_v17  ;;  %4293 = vmatmul.msk.f32.vlgmr.msrb.gmra.mxu3 %vm1235_vm5, %v1813_v47  ;;  %4261 = vmatmul.msk.f32.vlgmr.msra.gmra.mxu1 %vm1235_vm5, %v1568_v57 }
 0x246   :  { %1460 = vst.msk [vmem:[#allocation3 + $0xc8] sm:$0x3] %vm1435_vm7, %v7507_v17 }
 0x247   :  { %v1337_v29 = vadd.f32 %v1336_v10, %v1335_v37  ;;  %1462 = vst.msk [vmem:[#allocation3 + $0xd8] sm:$0x3] %vm1435_vm7, %v7507_v17 }
 0x248   :  { %1464 = vst.msk [vmem:[#allocation3 + $0xe8] sm:$0x3] %vm1435_vm7, %v7507_v17 }
 0x249   :  { %v1339_v45 = vadd.f32 %v1338_v24, %v1337_v29  ;;  %1466 = vst.msk [vmem:[#allocation3 + $0xf8] sm:$0x3] %vm1435_vm7, %v7507_v17 }
 0x24a   :  { %1468 = vst.msk [vmem:[#allocation3 + $0x108] sm:$0x3] %vm1435_vm7, %v7507_v17 }
 0x24b   :  { %v1341_v0 = vadd.f32 %v1340_v54, %v1339_v45  ;;  %1474 = vst.msk [vmem:[#allocation3 + $0x138] sm:$0x3] %vm1435_vm7, %v7507_v17 }
 0x24c   :  { %2747 = vst.msk [vmem:[#allocation4] sm:$0xff] %vm2555_vm11, %v7507_v17 }
 0x24d   :  { %v1343_v15 = vadd.f32 %v1342_v6, %v1341_v0  ;;  %2750 = vst.msk [vmem:[#allocation4 + $0x10] sm:$0xff] %vm2555_vm11, %v7507_v17 }
 0x24e   :  { %2752 = vst.msk [vmem:[#allocation4 + $0x20] sm:$0xff] %vm2555_vm11, %v7507_v17 }
 0x24f   :  { %v1344_v28 = vrot.slane %v1343_v15, 4  ;;  %2754 = vst.msk [vmem:[#allocation4 + $0x30] sm:$0xff] %vm2555_vm11, %v7507_v17 }
 0x250   :  { %2756 = vst.msk [vmem:[#allocation4 + $0x40] sm:$0xff] %vm2555_vm11, %v7507_v17 }
 0x251   :  { %v1345_v50 = vadd.f32 %v1344_v28, %v1343_v15  ;;  %2758 = vst.msk [vmem:[#allocation4 + $0x50] sm:$0xff] %vm2555_vm11, %v7507_v17 }
 0x252   :  { %2760 = vst.msk [vmem:[#allocation4 + $0x60] sm:$0xff] %vm2555_vm11, %v7507_v17 }
 0x253   :  { %v1346_v30 = vrot.slane %v1345_v50, 2  ;;  %2762 = vst.msk [vmem:[#allocation4 + $0x70] sm:$0xff] %vm2555_vm11, %v7507_v17 }
 0x254   :  { %2764 = vst.msk [vmem:[#allocation4 + $0x80] sm:$0xff] %vm2555_vm11, %v7507_v17 }
 0x255   :  { %v1347_v16 = vadd.f32 %v1346_v30, %v1345_v50  ;;  %2766 = vst.msk [vmem:[#allocation4 + $0x90] sm:$0xff] %vm2555_vm11, %v7507_v17 }
 0x256   :  { %2768 = vst.msk [vmem:[#allocation4 + $0xa0] sm:$0xff] %vm2555_vm11, %v7507_v17 }
 0x257   :  { %v1348_v62 = vrot.slane %v1347_v16, 1  ;;  %2770 = vst.msk [vmem:[#allocation4 + $0xb0] sm:$0xff] %vm2555_vm11, %v7507_v17 }
 0x258   :  { %2772 = vst.msk [vmem:[#allocation4 + $0xc0] sm:$0xff] %vm2555_vm11, %v7507_v17 }
 0x259   :  { %v1349_v4 = vadd.f32 %v1348_v62, %v1347_v16  ;;  %2774 = vst.msk [vmem:[#allocation4 + $0xd0] sm:$0xff] %vm2555_vm11, %v7507_v17 }
 0x25a   :  { %2776 = vst.msk [vmem:[#allocation4 + $0xe0] sm:$0xff] %vm2555_vm11, %v7507_v17 }
 0x25b   :  { %v1350_v52 = vmul.f32 %v1349_v4, %v5613_v38  ;;  %2778 = vst.msk [vmem:[#allocation4 + $0xf0] sm:$0xff] %vm2555_vm11, %v7507_v17 }
 0x25c   :  { %2780 = vst.msk [vmem:[#allocation4 + $0x100] sm:$0xff] %vm2555_vm11, %v7507_v17 }
 0x25d   :  { %v1351_v31 = vadd.f32 1e-05, %v1350_v52  ;;  %2782 = vst.msk [vmem:[#allocation4 + $0x110] sm:$0xff] %vm2555_vm11, %v7507_v17 }
 0x25e   :  { %2784 = vst.msk [vmem:[#allocation4 + $0x120] sm:$0xff] %vm2555_vm11, %v7507_v17 }
 0x25f   :  { %4569 = vrsqrt.f32 %v1351_v31  ;;  %vm1358_vm9 = vweird.f32 %v1351_v31  ;;  %2786 = vst.msk [vmem:[#allocation4 + $0x130] sm:$0xff] %vm2555_vm11, %v7507_v17 }
 0x265   :  { %v4570_v20 = vpop.eup %4569 }
 0x266   :  { %v1353_v34 = vmul.f32 %v4570_v20, %v1351_v31  ;;  %vm1359_vm8 = vweird.f32 %v4570_v20 }
 0x267   :  { %vm1360_vm10 = vmor %vm1358_vm9, %vm1359_vm8 }
 0x268   :  { %v1354_v53 = vmul.f32 %v4570_v20, %v1353_v34 }
 0x26a   :  { %v1355_v11 = vmul.f32 0.5, %v1354_v53 }
 0x26c   :  { %v1356_v36 = vsub.f32 1.5, %v1355_v11 }
 0x26e   :  { %v1357_v61 = vmul.f32 %v4570_v20, %v1356_v36 }
 0x270   :  { %v1361_v48 = vsel %vm1360_vm10, %v4570_v20, %v1357_v61 }
 0x271   :  { %v1364_v12 = vmul.f32 %v1361_v48, %v5623_v22  ;;  %v1365_v39 = vmul.f32 %v1361_v48, %v5626_v51  ;;  %v1366_v35 = vmul.f32 %v1361_v48, %v5629_v21  ;;  %v1367_v37 = vmul.f32 %v1361_v48, %v5632_v63 }
 0x272   :  { %v1368_v32 = vmul.f32 %v1361_v48, %v5635_v25  ;;  %v1369_v10 = vmul.f32 %v1361_v48, %v5638_v27  ;;  %v1370_v29 = vmul.f32 %v1361_v48, %v5665_v59  ;;  %v1371_v49 = vmul.f32 %v1361_v48, %v5671_v5  ;;  %v4560_v27 = vld [vmem:[%s7491_s4] ss:$0 sm:$0xff] }
 0x273   :  { %v1372_v22 = vmul.f32 %v1361_v48, %v5677_v7  ;;  %v1373_v51 = vmul.f32 %v1361_v48, %v5683_v33  ;;  %v1374_v24 = vmul.f32 %v1361_v48, %v5640_v13  ;;  %v1375_v45 = vmul.f32 %v1361_v48, %v5642_v18 }
 0x274   :  { %v1376_v21 = vmul.f32 %v1361_v48, %v5644_v19  ;;  %v1377_v63 = vmul.f32 %v1361_v48, %v5646_v9  ;;  %v1384_v54 = vmul.f32 %v4559_v26, %v1364_v12  ;;  %v1385_v25 = vmul.f32 %v4559_v26, %v1365_v39 }
 0x275   :  { %v1386_v59 = vmul.f32 %v4559_v26, %v1366_v35  ;;  %v1387_v5 = vmul.f32 %v4559_v26, %v1367_v37  ;;  %v1388_v0 = vmul.f32 %v4559_v26, %v1368_v32  ;;  %v1389_v33 = vmul.f32 %v4559_v26, %v1369_v10 }
 0x276   :  { %v1396_v7 = vmul.f32 %v4559_v26, %v1376_v21  ;;  %v1397_v6 = vmul.f32 %v4559_v26, %v1377_v63  ;;  %v1404_v15 = vadd.f32 %v4560_v27, %v1384_v54  ;;  %v1405_v13 = vadd.f32 %v4560_v27, %v1385_v25 }
 0x277   :  { %v1406_v28 = vadd.f32 %v4560_v27, %v1386_v59  ;;  %v1362_v18 = vmul.f32 %v1361_v48, %v5617_v23  ;;  %v1390_v19 = vmul.f32 %v4559_v26, %v1370_v29  ;;  %v1363_v9 = vmul.f32 %v1361_v48, %v5620_v42 }
 0x278   :  { %v1391_v50 = vmul.f32 %v4559_v26, %v1371_v49  ;;  %v1392_v30 = vmul.f32 %v4559_v26, %v1372_v22  ;;  %v1407_v16 = vadd.f32 %v4560_v27, %v1387_v5  ;;  %v1408_v62 = vadd.f32 %v4560_v27, %v1388_v0 }
 0x279   :  { %v1416_v4 = vadd.f32 %v4560_v27, %v1396_v7  ;;  %v1417_v52 = vadd.f32 %v4560_v27, %v1397_v6  ;;  %v1420_v31 = vmax.f32 %v1404_v15, 0.0  ;;  %v1393_v14 = vmul.f32 %v4559_v26, %v1373_v51 }
 0x27a   :  { %v1409_v58 = vadd.f32 %v4560_v27, %v1389_v33  ;;  %v1421_v20 = vmax.f32 %v1405_v13, 0.0  ;;  %v1422_v34 = vmax.f32 %v1406_v28, 0.0  ;;  %v1394_v56 = vmul.f32 %v4559_v26, %v1374_v24 }
 0x27b   :  { %v1410_v3 = vadd.f32 %v4560_v27, %v1390_v19  ;;  %1478 = vst.msk [vmem:[#allocation3 + $0x31] sm:$0xff] %vm1235_vm5, %v1420_v31  ;;  %v1395_v2 = vmul.f32 %v4559_v26, %v1375_v45  ;;  %v1411_v23 = vadd.f32 %v4560_v27, %v1391_v50  ;;  %v1423_v1 = vmax.f32 %v1407_v16, 0.0 }
 0x27c   :  { %v1432_v40 = vmax.f32 %v1416_v4, 0.0  ;;  %1479 = vst.msk [vmem:[#allocation3 + $0x41] sm:$0xff] %vm1235_vm5, %v1421_v20  ;;  %v1382_v42 = vmul.f32 %v4559_v26, %v1362_v18  ;;  %v1412_v53 = vadd.f32 %v4560_v27, %v1392_v30  ;;  %v1424_v41 = vmax.f32 %v1408_v62, 0.0 }
 0x27d   :  { %v1433_v60 = vmax.f32 %v1417_v52, 0.0  ;;  %1480 = vst.msk [vmem:[#allocation3 + $0x51] sm:$0xff] %vm1235_vm5, %v1422_v34  ;;  %v1383_v11 = vmul.f32 %v4559_v26, %v1363_v9  ;;  %v1413_v47 = vadd.f32 %v4560_v27, %v1393_v14  ;;  %v1425_v55 = vmax.f32 %v1409_v58, 0.0  ;;  %v2074_v58 = vld [vmem:[#allocation5 + $0x40] sm:$0xff] }
 0x27e   :  { %1490 = vst.msk [vmem:[#allocation3 + $0x111] sm:$0xff] %vm1235_vm5, %v1432_v40  ;;  %v1414_v8 = vadd.f32 %v4560_v27, %v1394_v56  ;;  %v1426_v43 = vmax.f32 %v1410_v3, 0.0  ;;  %v1415_v44 = vadd.f32 %v4560_v27, %v1395_v2  ;;  %v1427_v46 = vmax.f32 %v1411_v23, 0.0  ;;  %2095 = vmatpush.msrb.mxu1 %v2074_v58  ;;  %v2169_v58 = vld [vmem:[#allocation5 + $0x58] sm:$0xff] }
 0x27f   :  { %1491 = vst.msk [vmem:[#allocation3 + $0x121] sm:$0xff] %vm1235_vm5, %v1433_v60  ;;  %v1428_v36 = vmax.f32 %v1412_v53, 0.0  ;;  %v1402_v57 = vadd.f32 %v4560_v27, %v1382_v42  ;;  %v1403_v61 = vadd.f32 %v4560_v27, %v1383_v11  ;;  %v1429_v48 = vmax.f32 %v1413_v47, 0.0  ;;  %2188 = vmatpush.msrb.mxu2 %v2169_v58 }
 0x280   :  { %1481 = vst.msk [vmem:[#allocation3 + $0x61] sm:$0xff] %vm1235_vm5, %v1423_v1  ;;  %v1430_v12 = vmax.f32 %v1414_v8, 0.0  ;;  %v1431_v39 = vmax.f32 %v1415_v44, 0.0 }
 0x281   :  { %1482 = vst.msk [vmem:[#allocation3 + $0x71] sm:$0xff] %vm1235_vm5, %v1424_v41  ;;  %v1418_v26 = vmax.f32 %v1402_v57, 0.0  ;;  %v1419_v35 = vmax.f32 %v1403_v61, 0.0  ;;  %v1512_v57 = vld [vmem:[#allocation3 + $0xa0] sm:$0xff]  ;;  %v1513_v61 = vld [vmem:[#allocation3 + $0xa8] sm:$0x3] }
 0x282   :  { %1483 = vst.msk [vmem:[#allocation3 + $0x81] sm:$0xff] %vm1235_vm5, %v1425_v55  ;;  %v5822_v0 = vld [vmem:[#allocation3 + $0x30] sm:$0xff]  ;;  %v1499_v7 = vld [vmem:[#allocation3 + $0x38] sm:$0x3] }
 0x283   :  { %1484 = vst.msk [vmem:[#allocation3 + $0xb1] sm:$0xff] %vm1235_vm5, %v1426_v43  ;;  %v1575_v6 = vrot.slane %v5822_v0, 1  ;;  %v1576_v33 = vrot.slane %v1499_v7, 1  ;;  %v1820_v15 = vrot.slane %v5822_v0, 2  ;;  %v1821_v13 = vrot.slane %v1499_v7, 2  ;;  %v5840_v19 = vld [vmem:[#allocation3 + $0x40] sm:$0xff] }
 0x284   :  { %1485 = vst.msk [vmem:[#allocation3 + $0xc1] sm:$0xff] %vm1235_vm5, %v1427_v46  ;;  %v1501_v9 = vld [vmem:[#allocation3 + $0x48] sm:$0x3]  ;;  %v1578_v50 = vrot.slane %v5840_v19, 1  ;;  %v1823_v16 = vrot.slane %v5840_v19, 2  ;;  %v5858_v31 = vld [vmem:[#allocation3 + $0x50] sm:$0xff] }
 0x285   :  { %1486 = vst.msk [vmem:[#allocation3 + $0xd1] sm:$0xff] %vm1235_vm5, %v1428_v36  ;;  %v5831_v28 = vsel %vm224_vm4, %v1575_v6, %v1576_v33  ;;  %v5834_v18 = vsel %vm476_vm3, %v1820_v15, %v1821_v13  ;;  %v1579_v30 = vrot.slane %v1501_v9, 1  ;;  %v1824_v62 = vrot.slane %v1501_v9, 2  ;;  %v1503_v14 = vld [vmem:[#allocation3 + $0x58] sm:$0x3] }
 0x286   :  { %1487 = vst.msk [vmem:[#allocation3 + $0xe1] sm:$0xff] %vm1235_vm5, %v1429_v48  ;;  %v1581_v20 = vrot.slane %v5858_v31, 1  ;;  %v1582_v34 = vrot.slane %v1503_v14, 1  ;;  %v1826_v56 = vrot.slane %v5858_v31, 2  ;;  %v1827_v3 = vrot.slane %v1503_v14, 2 }
 0x287   :  { %1488 = vst.msk [vmem:[#allocation3 + $0xf1] sm:$0xff] %vm1235_vm5, %v1430_v12  ;;  %v5849_v4 = vsel %vm224_vm4, %v1578_v50, %v1579_v30  ;;  %v5852_v52 = vsel %vm476_vm3, %v1823_v16, %v1824_v62  ;;  %v5876_v1 = vld [vmem:[#allocation3 + $0x60] sm:$0xff]  ;;  %v1505_v40 = vld [vmem:[#allocation3 + $0x68] sm:$0x3] }
 0x288   :  { %1489 = vst.msk [vmem:[#allocation3 + $0x101] sm:$0xff] %vm1235_vm5, %v1431_v39  ;;  %v5867_v2 = vsel %vm224_vm4, %v1581_v20, %v1582_v34  ;;  %v5870_v23 = vsel %vm476_vm3, %v1826_v56, %v1827_v3  ;;  %v1584_v42 = vrot.slane %v5876_v1, 1  ;;  %v1585_v53 = vrot.slane %v1505_v40, 1  ;;  %v5894_v55 = vld [vmem:[#allocation3 + $0x70] sm:$0xff]  ;;  %v1507_v8 = vld [vmem:[#allocation3 + $0x78] sm:$0x3] }
 0x289   :  { %1476 = vst.msk [vmem:[#allocation3 + $0x11] sm:$0xff] %vm1235_vm5, %v1418_v26  ;;  %v1829_v41 = vrot.slane %v5876_v1, 2  ;;  %v1830_v60 = vrot.slane %v1505_v40, 2  ;;  %v1587_v43 = vrot.slane %v5894_v55, 1  ;;  %v1588_v44 = vrot.slane %v1507_v8, 1  ;;  %v2257_v40 = vld [vmem:[#allocation5 + $0x68] sm:$0xff] }
 0x28a   :  { %1477 = vst.msk [vmem:[#allocation3 + $0x21] sm:$0xff] %vm1235_vm5, %v1419_v35  ;;  %v5885_v11 = vsel %vm224_vm4, %v1584_v42, %v1585_v53  ;;  %v1832_v46 = vrot.slane %v5894_v55, 2  ;;  %v1833_v36 = vrot.slane %v1507_v8, 2  ;;  %v1590_v39 = vrot.slane %v1512_v57, 1  ;;  %2278 = vmatpush.msra.mxu3 %v2257_v40  ;;  %v2168_v8 = vld [vmem:[#allocation5 + $0x50] sm:$0xff] }
 0x28b   :  { %v5888_v47 = vsel %vm476_vm3, %v1829_v41, %v1830_v60  ;;  %v5903_v48 = vsel %vm224_vm4, %v1587_v43, %v1588_v44  ;;  %v1835_v26 = vrot.slane %v1512_v57, 2  ;;  %v1591_v35 = vrot.slane %v1513_v61, 1  ;;  %v5933_v6 = vld [vmem:[#allocation3 + $0xc0] sm:$0xff]  ;;  %v1517_v33 = vld [vmem:[#allocation3 + $0xc8] sm:$0x3]  ;;  %2189 = vmatpush.msrb.mxu2 %v2168_v8 }
 0x28c   :  { %v5906_v12 = vsel %vm476_vm3, %v1832_v46, %v1833_v36  ;;  %v1596_v15 = vrot.slane %v5933_v6, 1  ;;  %v1597_v13 = vrot.slane %v1517_v33, 1  ;;  %v1841_v9 = vrot.slane %v5933_v6, 2  ;;  %v5951_v62 = vld [vmem:[#allocation3 + $0xd0] sm:$0xff]  ;;  %v1519_v14 = vld [vmem:[#allocation3 + $0xd8] sm:$0x3] }
 0x28d   :  { %v1842_v50 = vrot.slane %v1517_v33, 2  ;;  %v1599_v20 = vrot.slane %v5951_v62, 1  ;;  %v1600_v34 = vrot.slane %v1519_v14, 1  ;;  %v1844_v56 = vrot.slane %v5951_v62, 2  ;;  %v5969_v41 = vld [vmem:[#allocation3 + $0xe0] sm:$0xff] }
 0x28e   :  { %v5942_v30 = vsel %vm224_vm4, %v1596_v15, %v1597_v13  ;;  %v1845_v3 = vrot.slane %v1519_v14, 2  ;;  %v1521_v60 = vld [vmem:[#allocation3 + $0xe8] sm:$0x3]  ;;  %v1602_v43 = vrot.slane %v5969_v41, 1  ;;  %v1847_v46 = vrot.slane %v5969_v41, 2 }
 0x28f   :  { %v5945_v16 = vsel %vm476_vm3, %v1841_v9, %v1842_v50  ;;  %v5960_v42 = vsel %vm224_vm4, %v1599_v20, %v1600_v34  ;;  %v1603_v44 = vrot.slane %v1521_v60, 1  ;;  %v1848_v36 = vrot.slane %v1521_v60, 2  ;;  %v6005_v33 = vld [vmem:[#allocation3 + $0x100] sm:$0xff]  ;;  %v1525_v15 = vld [vmem:[#allocation3 + $0x108] sm:$0x3]  ;;  %v6023_v34 = vld [vmem:[#allocation3 + $0x110] sm:$0xff] }
 0x290   :  { %v1494_v37 = vld [vmem:[#allocation3 + $0x10] sm:$0xff]  ;;  %v1495_v32 = vld [vmem:[#allocation3 + $0x18] sm:$0x3]  ;;  %v5963_v53 = vsel %vm476_vm3, %v1844_v56, %v1845_v3  ;;  %v1608_v13 = vrot.slane %v6005_v33, 1  ;;  %v1609_v9 = vrot.slane %v1525_v15, 1  ;;  %v1853_v50 = vrot.slane %v6005_v33, 2 }
 0x291   :  { %v1569_v10 = vrot.slane %v1494_v37, 1  ;;  %4278 = vmatmul.msk.f32.gmra.mxu2 %vm1235_vm5, %v1494_v37  ;;  %v1814_v29 = vrot.slane %v1494_v37, 2  ;;  %4309 = vmatmul.msk.f32.vlgmr.msrb.gmra.mxu0 %vm1235_vm5, %v1494_v37  ;;  %v1570_v49 = vrot.slane %v1495_v32, 1  ;;  %v1815_v22 = vrot.slane %v1495_v32, 2  ;;  %v5804_v45 = vld [vmem:[#allocation3 + $0x20] sm:$0xff] }
 0x292   :  { %v1497_v21 = vld [vmem:[#allocation3 + $0x28] sm:$0x3]  ;;  %v1572_v63 = vrot.slane %v5804_v45, 1  ;;  %v1817_v25 = vrot.slane %v5804_v45, 2  ;;  %v1836_v37 = vrot.slane %v1513_v61, 2  ;;  %v5912_v32 = vld [vmem:[#allocation3 + $0x80] sm:$0xff]  ;;  %v6014_v58 = vsel %vm224_vm4, %v1608_v13, %v1609_v9 }
 0x293   :  { %v5795_v51 = vsel %vm224_vm4, %v1569_v10, %v1570_v49  ;;  %v5798_v24 = vsel %vm476_vm3, %v1814_v29, %v1815_v22  ;;  %v1573_v54 = vrot.slane %v1497_v21, 1  ;;  %v1818_v27 = vrot.slane %v1497_v21, 2  ;;  %v1514_v49 = vld [vmem:[#allocation3 + $0xb0] sm:$0xff]  ;;  %v1515_v22 = vld [vmem:[#allocation3 + $0xb8] sm:$0x3]  ;;  %v2256_v61 = vld [vmem:[#allocation5 + $0x60] sm:$0xff] }
 0x294   :  { %4262 = vmatmul.msk.f32.gmra.mxu1 %vm1235_vm5, %v5795_v51  ;;  %4294 = vmatmul.msk.f32.gmra.mxu3 %vm1235_vm5, %v5798_v24  ;;  %v1592_v10 = vsel %vm224_vm4, %v1590_v39, %v1591_v35  ;;  %v1837_v29 = vsel %vm476_vm3, %v1835_v26, %v1836_v37  ;;  %v1593_v21 = vrot.slane %v1514_v49, 1  ;;  %v5978_v39 = vsel %vm224_vm4, %v1602_v43, %v1603_v44  ;;  %v5987_v35 = vld [vmem:[#allocation3 + $0xf0] sm:$0xff]  ;;  %v1523_v37 = vld [vmem:[#allocation3 + $0xf8] sm:$0x3] }
 0x295   :  { %v5813_v59 = vsel %vm224_vm4, %v1572_v63, %v1573_v54  ;;  %v5816_v5 = vsel %vm476_vm3, %v1817_v25, %v1818_v27  ;;  %v1838_v63 = vrot.slane %v1514_v49, 2  ;;  %v1594_v54 = vrot.slane %v1515_v22, 1  ;;  %2279 = vmatpush.msra.mxu3 %v2256_v61  ;;  %v1527_v56 = vld [vmem:[#allocation3 + $0x118] sm:$0x3] }
 0x296   :  { %v1839_v25 = vrot.slane %v1515_v22, 2  ;;  %v5981_v26 = vsel %vm476_vm3, %v1847_v46, %v1848_v36  ;;  %v1850_v22 = vrot.slane %v5987_v35, 2  ;;  %v1854_v14 = vrot.slane %v1525_v15, 2  ;;  %v6043_v36 = vld [vmem:[#allocation3 + $0x120] sm:$0xff] }
 0x297   :  { %v5924_v27 = vsel %vm224_vm4, %v1593_v21, %v1594_v54  ;;  %v1851_v21 = vrot.slane %v1523_v37, 2  ;;  %v1611_v3 = vrot.slane %v6023_v34, 1  ;;  %v1612_v40 = vrot.slane %v1527_v56, 1 }
 0x298   :  { %v5927_v7 = vsel %vm476_vm3, %v1838_v63, %v1839_v25  ;;  %v2354_v63 = vld [vmem:[#allocation5 + $0x70] sm:$0xff]  ;;  %v6017_v20 = vsel %vm476_vm3, %v1853_v50, %v1854_v14  ;;  %v1856_v60 = vrot.slane %v6023_v34, 2  ;;  %v1857_v8 = vrot.slane %v1527_v56, 2 }
 0x299   :  { %4279 = vmatmul.msk.f32.gmra.mxu2 %vm1235_vm5, %v5804_v45  ;;  %4310 = vmatmul.msk.f32.gmra.mxu0 %vm1235_vm5, %v5804_v45  ;;  %v5999_v25 = vsel %vm476_vm3, %v1850_v22, %v1851_v21  ;;  %v6032_v43 = vsel %vm224_vm4, %v1611_v3, %v1612_v40 }
 0x29a   :  { %v6035_v44 = vsel %vm476_vm3, %v1856_v60, %v1857_v8 }
 0x29c   :  { %4263 = vmatmul.msk.f32.gmra.mxu1 %vm1235_vm5, %v5813_v59  ;;  %4295 = vmatmul.msk.f32.gmra.mxu3 %vm1235_vm5, %v5816_v5 }
 0x2a1   :  { %4280 = vmatmul.msk.f32.gmra.mxu2 %vm1235_vm5, %v5822_v0  ;;  %4311 = vmatmul.msk.f32.gmra.mxu0 %vm1235_vm5, %v5822_v0 }
 0x2a4   :  { %4264 = vmatmul.msk.f32.gmra.mxu1 %vm1235_vm5, %v5831_v28  ;;  %4296 = vmatmul.msk.f32.gmra.mxu3 %vm1235_vm5, %v5834_v18 }
 0x2a9   :  { %4281 = vmatmul.msk.f32.gmra.mxu2 %vm1235_vm5, %v5840_v19  ;;  %4312 = vmatmul.msk.f32.gmra.mxu0 %vm1235_vm5, %v5840_v19 }
 0x2ac   :  { %4265 = vmatmul.msk.f32.gmra.mxu1 %vm1235_vm5, %v5849_v4  ;;  %4297 = vmatmul.msk.f32.gmra.mxu3 %vm1235_vm5, %v5852_v52 }
 0x2b1   :  { %4282 = vmatmul.msk.f32.gmra.mxu2 %vm1235_vm5, %v5858_v31  ;;  %4313 = vmatmul.msk.f32.gmra.mxu0 %vm1235_vm5, %v5858_v31 }
 0x2b4   :  { %4266 = vmatmul.msk.f32.gmra.mxu1 %vm1235_vm5, %v5867_v2  ;;  %4298 = vmatmul.msk.f32.gmra.mxu3 %vm1235_vm5, %v5870_v23 }
 0x2b9   :  { %4283 = vmatmul.msk.f32.gmra.mxu2 %vm1235_vm5, %v5876_v1  ;;  %4314 = vmatmul.msk.f32.gmra.mxu0 %vm1235_vm5, %v5876_v1 }
 0x2bc   :  { %4267 = vmatmul.msk.f32.gmra.mxu1 %vm1235_vm5, %v5885_v11  ;;  %4299 = vmatmul.msk.f32.gmra.mxu3 %vm1235_vm5, %v5888_v47 }
 0x2c1   :  { %4284 = vmatmul.msk.f32.gmra.mxu2 %vm1235_vm5, %v5894_v55  ;;  %4315 = vmatmul.msk.f32.gmra.mxu0 %vm1235_vm5, %v5894_v55 }
 0x2c2   :  { %v6041_v46 = vpop.f32.mrf.mxu1 }
 0x2c4   :  { %4268 = vmatmul.msk.f32.gmra.mxu1 %vm1235_vm5, %v5903_v48  ;;  %4300 = vmatmul.msk.f32.gmra.mxu3 %vm1235_vm5, %v5906_v12 }
 0x2c9   :  { %4285 = vmatmul.msk.f32.gmra.mxu2 %vm1235_vm5, %v1512_v57  ;;  %4316 = vmatmul.msk.f32.gmra.mxu0 %vm1235_vm5, %v5912_v32  ;;  %v2355_v57 = vld [vmem:[#allocation5 + $0x78] sm:$0xff] }
 0x2ca   :  { %2374 = vmatpush.msra.mxu0 %v2355_v57  ;;  %v6049_v57 = vpop.f32.mrf.mxu2 }
 0x2cc   :  { %4269 = vmatmul.msk.f32.gmra.mxu1 %vm1235_vm5, %v1592_v10  ;;  %4301 = vmatmul.msk.f32.gmra.mxu3 %vm1235_vm5, %v1837_v29  ;;  %v2449_v10 = vld [vmem:[#allocation5 + $0x88] sm:$0xff]  ;;  %v1605_v29 = vrot.slane %v5987_v35, 1 }
 0x2cd   :  { %2468 = vmatpush.msra.mxu1 %v2449_v10  ;;  %2375 = vmatpush.msra.mxu0 %v2354_v63 }
 0x2d1   :  { %4286 = vmatmul.msk.f32.gmra.mxu2 %vm1235_vm5, %v1514_v49  ;;  %4317 = vmatmul.msk.f32.gmra.mxu0 %vm1235_vm5, %v1514_v49  ;;  %v1606_v49 = vrot.slane %v1523_v37, 1  ;;  %v6057_v37 = vpop.f32.mrf.mxu3 }
 0x2d3   :  { %v5996_v54 = vsel %vm224_vm4, %v1605_v29, %v1606_v49 }
 0x2d4   :  { %4270 = vmatmul.msk.f32.gmra.mxu1 %vm1235_vm5, %v5924_v27  ;;  %4302 = vmatmul.msk.f32.gmra.mxu3 %vm1235_vm5, %v5927_v7 }
 0x2d9   :  { %4287 = vmatmul.msk.f32.gmra.mxu2 %vm1235_vm5, %v5933_v6  ;;  %4318 = vmatmul.msk.f32.gmra.mxu0 %vm1235_vm5, %v5933_v6 }
 0x2dc   :  { %4271 = vmatmul.msk.f32.gmra.mxu1 %vm1235_vm5, %v5942_v30  ;;  %4303 = vmatmul.msk.f32.gmra.mxu3 %vm1235_vm5, %v5945_v16 }
 0x2e1   :  { %4288 = vmatmul.msk.f32.gmra.mxu2 %vm1235_vm5, %v5951_v62  ;;  %4319 = vmatmul.msk.f32.gmra.mxu0 %vm1235_vm5, %v5951_v62 }
 0x2e4   :  { %4272 = vmatmul.msk.f32.gmra.mxu1 %vm1235_vm5, %v5960_v42  ;;  %4304 = vmatmul.msk.f32.gmra.mxu3 %vm1235_vm5, %v5963_v53 }
 0x2e9   :  { %4289 = vmatmul.msk.f32.gmra.mxu2 %vm1235_vm5, %v5969_v41  ;;  %4320 = vmatmul.msk.f32.gmra.mxu0 %vm1235_vm5, %v5969_v41 }
 0x2ec   :  { %4273 = vmatmul.msk.f32.gmra.mxu1 %vm1235_vm5, %v5978_v39  ;;  %4305 = vmatmul.msk.f32.gmra.mxu3 %vm1235_vm5, %v5981_v26 }
 0x2f1   :  { %4290 = vmatmul.msk.f32.gmra.mxu2 %vm1235_vm5, %v5987_v35  ;;  %4321 = vmatmul.msk.f32.gmra.mxu0 %vm1235_vm5, %v5987_v35 }
 0x2f4   :  { %4274 = vmatmul.msk.f32.gmra.mxu1 %vm1235_vm5, %v5996_v54  ;;  %4306 = vmatmul.msk.f32.gmra.mxu3 %vm1235_vm5, %v5999_v25 }
 0x2f9   :  { %4291 = vmatmul.msk.f32.gmra.mxu2 %vm1235_vm5, %v6005_v33  ;;  %4322 = vmatmul.msk.f32.gmra.mxu0 %vm1235_vm5, %v6005_v33 }
 0x2fc   :  { %4275 = vmatmul.msk.f32.gmra.mxu1 %vm1235_vm5, %v6014_v58  ;;  %4307 = vmatmul.msk.f32.gmra.mxu3 %vm1235_vm5, %v6017_v20 }
 0x301   :  { %4292 = vmatmul.msk.f32.gmra.mxu2 %vm1235_vm5, %v6023_v34  ;;  %4323 = vmatmul.msk.f32.gmra.mxu0 %vm1235_vm5, %v6023_v34 }
 0x304   :  { %4276 = vmatmul.msk.f32.gmra.mxu1 %vm1235_vm5, %v6032_v43  ;;  %4308 = vmatmul.msk.f32.gmra.mxu3 %vm1235_vm5, %v6035_v44 }
 0x309   :  { %4324 = vmatmul.msk.f32.gmra.mxu0 %vm1235_vm5, %v6043_v36  ;;  %4341 = vmatmul.msk.f32.vlgmr.msrb.gmra.mxu2 %vm1235_vm5, %v5798_v24 }
 0x30c   :  { %4325 = vmatmul.msk.f32.vlgmr.msrb.gmra.mxu1 %vm1235_vm5, %v5795_v51  ;;  %4357 = vmatmul.msk.f32.vlgmr.msra.gmra.mxu3 %vm1235_vm5, %v5804_v45 }
 0x30e   :  { %v6055_v61 = vpop.f32.mrf.mxu0 }
 0x311   :  { %v1669_v10 = vpop.f32.mrf.mxu1  ;;  %4342 = vmatmul.msk.f32.gmra.mxu2 %vm1235_vm5, %v5816_v5  ;;  %4373 = vmatmul.msk.f32.vlgmr.msra.gmra.mxu0 %vm1235_vm5, %v5813_v59 }
 0x314   :  { %v1766_v24 = vpop.f32.mrf.mxu2  ;;  %4326 = vmatmul.msk.f32.gmra.mxu1 %vm1235_vm5, %v5813_v59  ;;  %4358 = vmatmul.msk.f32.gmra.mxu3 %vm1235_vm5, %v5822_v0 }
 0x315   :  { %v1767_v51 = vadd.f32 %v1766_v24, %v1669_v10 }
 0x316   :  { %v2004_v45 = vpop.f32.mrf.mxu0 }
 0x317   :  { %v1914_v29 = vpop.f32.mrf.mxu3 }
 0x318   :  { %v1960_v49 = vadd.f32 %v1914_v29, %v1767_v51 }
 0x319   :  { %v1672_v22 = vpop.f32.mrf.mxu1  ;;  %4343 = vmatmul.msk.f32.gmra.mxu2 %vm1235_vm5, %v5834_v18  ;;  %4374 = vmatmul.msk.f32.gmra.mxu0 %vm1235_vm5, %v5831_v28 }
 0x31a   :  { %v6071_v21 = vadd.f32 %v2004_v45, %v1960_v49 }
 0x31c   :  { %v1769_v63 = vpop.f32.mrf.mxu2  ;;  %4327 = vmatmul.msk.f32.gmra.mxu1 %vm1235_vm5, %v5831_v28  ;;  %4359 = vmatmul.msk.f32.gmra.mxu3 %vm1235_vm5, %v5840_v19 }
 0x31d   :  { %v1770_v59 = vadd.f32 %v1769_v63, %v1672_v22 }
 0x31e   :  { %v2007_v0 = vpop.f32.mrf.mxu0 }
 0x31f   :  { %v1917_v15 = vpop.f32.mrf.mxu3 }
 0x320   :  { %v1961_v13 = vadd.f32 %v1917_v15, %v1770_v59 }
 0x321   :  { %v1675_v9 = vpop.f32.mrf.mxu1  ;;  %4344 = vmatmul.msk.f32.gmra.mxu2 %vm1235_vm5, %v5852_v52  ;;  %4375 = vmatmul.msk.f32.gmra.mxu0 %vm1235_vm5, %v5849_v4 }
 0x322   :  { %v6081_v50 = vadd.f32 %v2007_v0, %v1961_v13  ;;  %v1509_v0 = vld [vmem:[#allocation3 + $0x88] sm:$0x3]  ;;  %v2067_v13 = vrot.slane %v5912_v32, 1 }
 0x324   :  { %v1772_v14 = vpop.f32.mrf.mxu2  ;;  %4328 = vmatmul.msk.f32.gmra.mxu1 %vm1235_vm5, %v5849_v4  ;;  %4360 = vmatmul.msk.f32.gmra.mxu3 %vm1235_vm5, %v5858_v31  ;;  %v2448_v31 = vld [vmem:[#allocation5 + $0x80] sm:$0xff] }
 0x325   :  { %v1773_v28 = vadd.f32 %v1772_v14, %v1675_v9  ;;  %2469 = vmatpush.msra.mxu1 %v2448_v31  ;;  %v2068_v14 = vrot.slane %v1509_v0, 1 }
 0x326   :  { %v2010_v19 = vpop.f32.mrf.mxu0 }
 0x327   :  { %v1920_v56 = vpop.f32.mrf.mxu3 }
 0x328   :  { %v1962_v3 = vadd.f32 %v1920_v56, %v1773_v28 }
 0x329   :  { %v1678_v40 = vpop.f32.mrf.mxu1  ;;  %4345 = vmatmul.msk.f32.gmra.mxu2 %vm1235_vm5, %v5870_v23  ;;  %4376 = vmatmul.msk.f32.gmra.mxu0 %vm1235_vm5, %v5867_v2 }
 0x32a   :  { %v6091_v60 = vadd.f32 %v2010_v19, %v1962_v3  ;;  %v6119_v3 = vld [vmem:[#allocation3 + $0x98] sm:$0x3] }
 0x32c   :  { %v1775_v8 = vpop.f32.mrf.mxu2  ;;  %4329 = vmatmul.msk.f32.gmra.mxu1 %vm1235_vm5, %v5867_v2  ;;  %4361 = vmatmul.msk.f32.gmra.mxu3 %vm1235_vm5, %v5876_v1 }
 0x32d   :  { %v1776_v4 = vadd.f32 %v1775_v8, %v1678_v40 }
 0x32e   :  { %v2013_v10 = vpop.f32.mrf.mxu0 }
 0x32f   :  { %v1923_v24 = vpop.f32.mrf.mxu3 }
 0x330   :  { %v1963_v51 = vadd.f32 %v1923_v24, %v1776_v4  ;;  %v2069_v4 = vsel %vm224_vm4, %v2067_v13, %v2068_v14 }
 0x331   :  { %v1681_v45 = vpop.f32.mrf.mxu1  ;;  %4346 = vmatmul.msk.f32.gmra.mxu2 %vm1235_vm5, %v5888_v47  ;;  %4377 = vmatmul.msk.f32.gmra.mxu0 %vm1235_vm5, %v5885_v11 }
 0x332   :  { %v6101_v29 = vadd.f32 %v2013_v10, %v1963_v51  ;;  %v2348_v10 = vrot.slane %v6119_v3, 1 }
 0x334   :  { %v1778_v49 = vpop.f32.mrf.mxu2  ;;  %4330 = vmatmul.msk.f32.gmra.mxu1 %vm1235_vm5, %v5885_v11  ;;  %4362 = vmatmul.msk.f32.gmra.mxu3 %vm1235_vm5, %v5894_v55  ;;  %v2161_v11 = vrot.slane %v5912_v32, 2  ;;  %v2162_v55 = vrot.slane %v1509_v0, 2 }
 0x335   :  { %v1779_v2 = vadd.f32 %v1778_v49, %v1681_v45 }
 0x336   :  { %v2016_v1 = vpop.f32.mrf.mxu0  ;;  %v6122_v8 = vsel %vm476_vm3, %v2161_v11, %v2162_v55 }
 0x337   :  { %v1926_v22 = vpop.f32.mrf.mxu3 }
 0x338   :  { %v1964_v63 = vadd.f32 %v1926_v22, %v1779_v2 }
 0x339   :  { %v1684_v59 = vpop.f32.mrf.mxu1  ;;  %4347 = vmatmul.msk.f32.gmra.mxu2 %vm1235_vm5, %v5906_v12  ;;  %4378 = vmatmul.msk.f32.gmra.mxu0 %vm1235_vm5, %v5903_v48 }
 0x33a   :  { %v6111_v15 = vadd.f32 %v2016_v1, %v1964_v63 }
 0x33c   :  { %v1781_v9 = vpop.f32.mrf.mxu2  ;;  %4331 = vmatmul.msk.f32.gmra.mxu1 %vm1235_vm5, %v5903_v48  ;;  %4363 = vmatmul.msk.f32.gmra.mxu3 %vm1235_vm5, %v5912_v32  ;;  %v6128_v48 = vld [vmem:[#allocation3 + $0x90] sm:$0xff] }
 0x33d   :  { %v1782_v28 = vadd.f32 %v1781_v9, %v1684_v59  ;;  %v2347_v32 = vrot.slane %v6128_v48, 1 }
 0x33e   :  { %v2019_v19 = vpop.f32.mrf.mxu0 }
 0x33f   :  { %v1929_v56 = vpop.f32.mrf.mxu3  ;;  %v2349_v49 = vsel %vm224_vm4, %v2347_v32, %v2348_v10 }
 0x340   :  { %v1965_v40 = vadd.f32 %v1929_v56, %v1782_v28 }
 0x341   :  { %v1687_v31 = vpop.f32.mrf.mxu1  ;;  %4348 = vmatmul.msk.f32.gmra.mxu2 %vm1235_vm5, %v6122_v8  ;;  %4379 = vmatmul.msk.f32.gmra.mxu0 %vm1235_vm5, %v2069_v4 }
 0x342   :  { %v6132_v24 = vadd.f32 %v2019_v19, %v1965_v40 }
 0x344   :  { %v1784_v51 = vpop.f32.mrf.mxu2  ;;  %4332 = vmatmul.msk.f32.gmra.mxu1 %vm1235_vm5, %v2069_v4  ;;  %4364 = vmatmul.msk.f32.gmra.mxu3 %vm1235_vm5, %v6128_v48 }
 0x345   :  { %v1785_v45 = vadd.f32 %v1784_v51, %v1687_v31 }
 0x346   :  { %v2022_v22 = vpop.f32.mrf.mxu0 }
 0x347   :  { %v1932_v2 = vpop.f32.mrf.mxu3 }
 0x348   :  { %v1966_v1 = vadd.f32 %v1932_v2, %v1785_v45 }
 0x349   :  { %v6138_v63 = vpop.f32.mrf.mxu1  ;;  %4349 = vmatmul.msk.f32.gmra.mxu2 %vm1235_vm5, %v5927_v7  ;;  %4380 = vmatmul.msk.f32.gmra.mxu0 %vm1235_vm5, %v2349_v49 }
 0x34a   :  { %v6143_v59 = vadd.f32 %v2022_v22, %v1966_v1 }
 0x34c   :  { %4333 = vmatmul.msk.f32.gmra.mxu1 %vm1235_vm5, %v5924_v27  ;;  %4365 = vmatmul.msk.f32.gmra.mxu3 %vm1235_vm5, %v5933_v6  ;;  %v6235_v14 = vpop.f32.mrf.mxu2 }
 0x34e   :  { %v6243_v56 = vpop.f32.mrf.mxu0 }
 0x34f   :  { %v6239_v19 = vpop.f32.mrf.mxu3 }
 0x351   :  { %v6149_v0 = vpop.f32.mrf.mxu1  ;;  %4350 = vmatmul.msk.f32.gmra.mxu2 %vm1235_vm5, %v5945_v16  ;;  %4381 = vmatmul.msk.f32.gmra.mxu0 %vm1235_vm5, %v5942_v30 }
 0x354   :  { %4334 = vmatmul.msk.f32.gmra.mxu1 %vm1235_vm5, %v5942_v30  ;;  %4366 = vmatmul.msk.f32.gmra.mxu3 %vm1235_vm5, %v5951_v62  ;;  %v6245_v40 = vpop.f32.mrf.mxu2 }
 0x356   :  { %v6255_v32 = vpop.f32.mrf.mxu0 }
 0x357   :  { %v6251_v31 = vpop.f32.mrf.mxu3 }
 0x359   :  { %v6159_v7 = vpop.f32.mrf.mxu1  ;;  %4351 = vmatmul.msk.f32.gmra.mxu2 %vm1235_vm5, %v5963_v53  ;;  %4382 = vmatmul.msk.f32.gmra.mxu0 %vm1235_vm5, %v5960_v42 }
 0x35c   :  { %4335 = vmatmul.msk.f32.gmra.mxu1 %vm1235_vm5, %v5960_v42  ;;  %4367 = vmatmul.msk.f32.gmra.mxu3 %vm1235_vm5, %v5969_v41  ;;  %v1529_v42 = vld [vmem:[#allocation3 + $0x128] sm:$0x3]  ;;  %v2070_v41 = vrot.slane %v6043_v36, 1  ;;  %v6257_v10 = vpop.f32.mrf.mxu2 }
 0x35e   :  { %v6265_v45 = vpop.f32.mrf.mxu0 }
 0x361   :  { %v6169_v27 = vpop.f32.mrf.mxu1  ;;  %4352 = vmatmul.msk.f32.gmra.mxu2 %vm1235_vm5, %v5981_v26  ;;  %4383 = vmatmul.msk.f32.gmra.mxu0 %vm1235_vm5, %v5978_v39 }
 0x364   :  { %4336 = vmatmul.msk.f32.gmra.mxu1 %vm1235_vm5, %v5978_v39  ;;  %4368 = vmatmul.msk.f32.gmra.mxu3 %vm1235_vm5, %v5987_v35  ;;  %v2164_v39 = vrot.slane %v6043_v36, 2  ;;  %v2165_v35 = vrot.slane %v1529_v42, 2 }
 0x366   :  { %v6277_v1 = vpop.f32.mrf.mxu0 }
 0x367   :  { %7511 = vst [vmem:[#allocation15_spill] sm:$0xff] %v6277_v1 }
 0x369   :  { %v6179_v6 = vpop.f32.mrf.mxu1  ;;  %4353 = vmatmul.msk.f32.gmra.mxu2 %vm1235_vm5, %v5999_v25  ;;  %4384 = vmatmul.msk.f32.gmra.mxu0 %vm1235_vm5, %v5996_v54 }
 0x36c   :  { %4337 = vmatmul.msk.f32.gmra.mxu1 %vm1235_vm5, %v5996_v54  ;;  %4369 = vmatmul.msk.f32.gmra.mxu3 %vm1235_vm5, %v6005_v33  ;;  %v2071_v54 = vrot.slane %v1529_v42, 1  ;;  %v6211_v33 = vld [vmem:[#allocation3 + $0x138] sm:$0x3] }
 0x36d   :  { %v2351_v11 = vrot.slane %v6211_v33, 1 }
 0x371   :  { %v6189_v30 = vpop.f32.mrf.mxu1  ;;  %4354 = vmatmul.msk.f32.gmra.mxu2 %vm1235_vm5, %v6017_v20  ;;  %4385 = vmatmul.msk.f32.gmra.mxu0 %vm1235_vm5, %v6014_v58 }
 0x372   :  { %7508 = vst [vmem:[#allocation12_spill] sm:$0xff] %v6189_v30 }
 0x374   :  { %4338 = vmatmul.msk.f32.gmra.mxu1 %vm1235_vm5, %v6014_v58  ;;  %4370 = vmatmul.msk.f32.gmra.mxu3 %vm1235_vm5, %v6023_v34  ;;  %v6214_v58 = vsel %vm476_vm3, %v2164_v39, %v2165_v35  ;;  %v2072_v34 = vsel %vm224_vm4, %v2070_v41, %v2071_v54  ;;  %v2442_v41 = vrot.slane %v6119_v3, 2  ;;  %v6289_v39 = vpop.f32.mrf.mxu0 }
 0x375   :  { %7513 = vst [vmem:[#allocation17_spill] sm:$0xff] %v6289_v39 }
 0x379   :  { %v6199_v62 = vpop.f32.mrf.mxu1  ;;  %4355 = vmatmul.msk.f32.gmra.mxu2 %vm1235_vm5, %v6035_v44  ;;  %4386 = vmatmul.msk.f32.gmra.mxu0 %vm1235_vm5, %v6032_v43 }
 0x37a   :  { %7509 = vst [vmem:[#allocation13_spill] sm:$0xff] %v6199_v62  ;;  %v2445_v62 = vrot.slane %v6211_v33, 2 }
 0x37c   :  { %4339 = vmatmul.msk.f32.gmra.mxu1 %vm1235_vm5, %v6032_v43  ;;  %4371 = vmatmul.msk.f32.gmra.mxu3 %vm1235_vm5, %v6043_v36  ;;  %v6222_v43 = vld [vmem:[#allocation3 + $0x130] sm:$0xff] }
 0x37d   :  { %v2350_v36 = vrot.slane %v6222_v43, 1 }
 0x37f   :  { %v2352_v9 = vsel %vm224_vm4, %v2350_v36, %v2351_v11  ;;  %v6301_v11 = vpop.f32.mrf.mxu0 }
 0x380   :  { %7516 = vst [vmem:[#allocation20_spill] sm:$0xff] %v6301_v11 }
 0x381   :  { %v6217_v13 = vpop.f32.mrf.mxu1  ;;  %4356 = vmatmul.msk.f32.gmra.mxu2 %vm1235_vm5, %v6214_v58  ;;  %4387 = vmatmul.msk.f32.gmra.mxu0 %vm1235_vm5, %v2072_v34 }
 0x382   :  { %7510 = vst [vmem:[#allocation14_spill] sm:$0xff] %v6217_v13 }
 0x384   :  { %4340 = vmatmul.msk.f32.gmra.mxu1 %vm1235_vm5, %v2072_v34  ;;  %4372 = vmatmul.msk.f32.gmra.mxu3 %vm1235_vm5, %v6222_v43 }
 0x389   :  { %v6230_v55 = vpop.f32.mrf.mxu1  ;;  %4388 = vmatmul.msk.f32.gmra.mxu0 %vm1235_vm5, %v2352_v9  ;;  %v6311_v9 = vpop.f32.mrf.mxu0 }
 0x38a   :  { %7519 = vst [vmem:[#allocation23_spill] sm:$0xff] %v6311_v9 }
 0x38c   :  { %4389 = vmatmul.msk.f32.vlgmr.msra.gmra.mxu1 %vm1235_vm5, %v5816_v5 }
 0x391   :  { %v6237_v28 = vpop.f32.mrf.mxu1  ;;  %v6323_v38 = vpop.f32.mrf.mxu0 }
 0x392   :  { %7522 = vst [vmem:[#allocation26_spill] sm:$0xff] %v6323_v38 }
 0x394   :  { %4390 = vmatmul.msk.f32.gmra.mxu1 %vm1235_vm5, %v5834_v18  ;;  %v6261_v18 = vpop.f32.mrf.mxu3 }
 0x399   :  { %v6247_v4 = vpop.f32.mrf.mxu1  ;;  %v2377_v9 = vpop.f32.mrf.mxu0 }
 0x39c   :  { %4391 = vmatmul.msk.f32.gmra.mxu1 %vm1235_vm5, %v5852_v52  ;;  %v6269_v52 = vpop.f32.mrf.mxu2  ;;  %v6271_v49 = vpop.f32.mrf.mxu3 }
 0x3a1   :  { %v6253_v5 = vpop.f32.mrf.mxu1 }
 0x3a4   :  { %4392 = vmatmul.msk.f32.gmra.mxu1 %vm1235_vm5, %v5870_v23  ;;  %v6279_v23 = vpop.f32.mrf.mxu2  ;;  %v6283_v42 = vpop.f32.mrf.mxu3 }
 0x3a5   :  { %7512 = vst [vmem:[#allocation16_spill] sm:$0xff] %v6283_v42 }
 0x3a9   :  { %v6263_v51 = vpop.f32.mrf.mxu1 }
 0x3ac   :  { %4393 = vmatmul.msk.f32.gmra.mxu1 %vm1235_vm5, %v5888_v47  ;;  %v2441_v47 = vrot.slane %v6128_v48, 2  ;;  %v6291_v35 = vpop.f32.mrf.mxu2  ;;  %v6297_v34 = vpop.f32.mrf.mxu3 }
 0x3ad   :  { %7514 = vst [vmem:[#allocation18_spill] sm:$0xff] %v6291_v35 }
 0x3ae   :  { %v2443_v54 = vsel %vm476_vm3, %v2441_v47, %v2442_v41  ;;  %7515 = vst [vmem:[#allocation19_spill] sm:$0xff] %v6297_v34  ;;  %v2146_v34 = vadd.f32 %v6237_v28, %v6071_v21 }
 0x3b1   :  { %v6273_v2 = vpop.f32.mrf.mxu1 }
 0x3b4   :  { %4394 = vmatmul.msk.f32.gmra.mxu1 %vm1235_vm5, %v5906_v12  ;;  %v6307_v3 = vpop.f32.mrf.mxu3 }
 0x3b5   :  { %7518 = vst [vmem:[#allocation22_spill] sm:$0xff] %v6307_v3 }
 0x3b9   :  { %v6281_v22 = vpop.f32.mrf.mxu1 }
 0x3bc   :  { %4395 = vmatmul.msk.f32.gmra.mxu1 %vm1235_vm5, %v6122_v8  ;;  %v6303_v8 = vpop.f32.mrf.mxu2  ;;  %v6317_v41 = vpop.f32.mrf.mxu3 }
 0x3bd   :  { %7517 = vst [vmem:[#allocation21_spill] sm:$0xff] %v6303_v8 }
 0x3be   :  { %7521 = vst [vmem:[#allocation25_spill] sm:$0xff] %v6317_v41 }
 0x3c1   :  { %v6293_v12 = vpop.f32.mrf.mxu1 }
 0x3c4   :  { %4396 = vmatmul.msk.f32.gmra.mxu1 %vm1235_vm5, %v2443_v54  ;;  %v6315_v47 = vpop.f32.mrf.mxu2  ;;  %v2281_v3 = vpop.f32.mrf.mxu3 }
 0x3c5   :  { %7520 = vst [vmem:[#allocation24_spill] sm:$0xff] %v6315_v47 }
 0x3c9   :  { %v6299_v36 = vpop.f32.mrf.mxu1 }
 0x3cc   :  { %4397 = vmatmul.msk.f32.gmra.mxu1 %vm1235_vm5, %v5945_v16  ;;  %v2191_v16 = vpop.f32.mrf.mxu2  ;;  %v2284_v41 = vpop.f32.mrf.mxu3 }
 0x3d1   :  { %v6309_v48 = vpop.f32.mrf.mxu1 }
 0x3d4   :  { %4398 = vmatmul.msk.f32.gmra.mxu1 %vm1235_vm5, %v5963_v53  ;;  %v2194_v53 = vpop.f32.mrf.mxu2  ;;  %v2287_v38 = vpop.f32.mrf.mxu3 }
 0x3d9   :  { %v6319_v54 = vpop.f32.mrf.mxu1 }
 0x3dc   :  { %4399 = vmatmul.msk.f32.gmra.mxu1 %vm1235_vm5, %v5981_v26 }
 0x3e1   :  { %v6325_v13 = vpop.f32.mrf.mxu1 }
 0x3e2   :  { %7523 = vst [vmem:[#allocation27_spill] sm:$0xff] %v6325_v13 }
 0x3e4   :  { %4400 = vmatmul.msk.f32.gmra.mxu1 %vm1235_vm5, %v5999_v25  ;;  %v2380_v25 = vpop.f32.mrf.mxu0 }
 0x3e9   :  { %v6329_v11 = vpop.f32.mrf.mxu1 }
 0x3ea   :  { %7524 = vst [vmem:[#allocation28_spill] sm:$0xff] %v6329_v11 }
 0x3ec   :  { %4401 = vmatmul.msk.f32.gmra.mxu1 %vm1235_vm5, %v6017_v20  ;;  %v2197_v20 = vpop.f32.mrf.mxu2 }
 0x3f1   :  { %v6341_v26 = vpop.f32.mrf.mxu1 }
 0x3f2   :  { %7525 = vst [vmem:[#allocation29_spill] sm:$0xff] %v6341_v26  ;;  %v2383_v26 = vpop.f32.mrf.mxu0 }
 0x3f4   :  { %4402 = vmatmul.msk.f32.gmra.mxu1 %vm1235_vm5, %v6035_v44  ;;  %v1764_v44 = vadd.f32 %v6049_v57, %v6041_v46  ;;  %v2200_v8 = vpop.f32.mrf.mxu2  ;;  %v2290_v57 = vpop.f32.mrf.mxu3 }
 0x3f6   :  { %v1959_v46 = vadd.f32 %v6057_v37, %v1764_v44  ;;  %v2240_v37 = vadd.f32 %v2194_v53, %v2146_v34  ;;  %v2149_v53 = vadd.f32 %v6263_v51, %v6101_v29  ;;  %v2150_v29 = vadd.f32 %v6273_v2, %v6111_v15 }
 0x3f8   :  { %v2049_v33 = vadd.f32 %v6055_v61, %v1959_v46  ;;  %v2330_v42 = vadd.f32 %v2284_v41, %v2240_v37 }
 0x3f9   :  { %v6361_v47 = vpop.f32.mrf.mxu1 }
 0x3fa   :  { %7526 = vst [vmem:[#allocation30_spill] sm:$0xff] %v6361_v47  ;;  %v2444_v47 = vrot.slane %v6222_v43, 2  ;;  %v2145_v11 = vadd.f32 %v6230_v55, %v2049_v33  ;;  %v2386_v39 = vpop.f32.mrf.mxu0  ;;  %v2426_v46 = vadd.f32 %v2380_v25, %v2330_v42  ;;  %v2148_v55 = vadd.f32 %v6253_v5, %v6091_v60 }
 0x3fc   :  { %4403 = vmatmul.msk.f32.gmra.mxu1 %vm1235_vm5, %v6214_v58  ;;  %v2446_v43 = vsel %vm476_vm3, %v2444_v47, %v2445_v62  ;;  %v2203_v35 = vpop.f32.mrf.mxu2  ;;  %v2239_v30 = vadd.f32 %v2191_v16, %v2145_v11  ;;  %v2293_v17 = vpop.f32.mrf.mxu3  ;;  %v6401_v11 = vld [vmem:[%s7493_s6] ss:$0 sm:$0xff] }
 0x3fd   :  { %v2243_v33 = vadd.f32 %v2203_v35, %v2149_v53 }
 0x3fe   :  { %v2329_v62 = vadd.f32 %v2281_v3, %v2239_v30  ;;  %v2242_v30 = vadd.f32 %v2200_v8, %v2148_v55 }
 0x400   :  { %v2425_v28 = vadd.f32 %v2377_v9, %v2329_v62  ;;  %v2332_v16 = vadd.f32 %v2290_v57, %v2242_v30  ;;  %v2333_v57 = vadd.f32 %v2293_v17, %v2243_v33  ;;  %v2151_v17 = vadd.f32 %v6281_v22, %v6132_v24 }
 0x401   :  { %v6386_v58 = vpop.f32.mrf.mxu1  ;;  %v2152_v24 = vadd.f32 %v6293_v12, %v6143_v59 }
 0x402   :  { %7527 = vst [vmem:[#allocation31_spill] sm:$0xff] %v6386_v58  ;;  %v2147_v58 = vadd.f32 %v6247_v4, %v6081_v50  ;;  %v2389_v61 = vpop.f32.mrf.mxu0  ;;  %v2428_v37 = vadd.f32 %v2386_v39, %v2332_v16 }
 0x403   :  { %v2429_v55 = vadd.f32 %v2389_v61, %v2333_v57  ;;  %v1788_v61 = vadd.f32 %v6235_v14, %v6138_v63  ;;  %v1791_v14 = vadd.f32 %v6245_v40, %v6149_v0  ;;  %v1794_v0 = vadd.f32 %v6257_v10, %v6159_v7 }
 0x404   :  { %4404 = vmatmul.msk.f32.gmra.mxu1 %vm1235_vm5, %v2446_v43  ;;  %v2241_v47 = vadd.f32 %v2197_v20, %v2147_v58  ;;  %v2206_v13 = vpop.f32.mrf.mxu2  ;;  %v2296_v41 = vpop.f32.mrf.mxu3 }
 0x405   :  { %v1968_v57 = vadd.f32 %v6251_v31, %v1791_v14 }
 0x406   :  { %v2331_v1 = vadd.f32 %v2287_v38, %v2241_v47 }
 0x408   :  { %v2427_v42 = vadd.f32 %v2383_v26, %v2331_v1 }
 0x409   :  { %v2471_v44 = vpop.f32.mrf.mxu1 }
 0x40a   :  { %v2519_v34 = vadd.f32 %v2471_v44, %v2425_v28  ;;  %v2392_v38 = vpop.f32.mrf.mxu0 }
 0x40c   :  { %v6407_v4 = vadd.f32 %v6401_v11, %v2519_v34  ;;  %v2209_v9 = vpop.f32.mrf.mxu2  ;;  %v2299_v26 = vpop.f32.mrf.mxu3 }
 0x40e   :  { %v2556_v25 = vsel %vm2555_vm11, %v6407_v4, 0.0 }
 0x411   :  { %v2474_v21 = vpop.f32.mrf.mxu1 }
 0x412   :  { %v2520_v43 = vadd.f32 %v2474_v21, %v2426_v46  ;;  %v2395_v51 = vpop.f32.mrf.mxu0 }
 0x414   :  { %v6404_v50 = vadd.f32 %v6401_v11, %v2520_v43  ;;  %v2212_v46 = vpop.f32.mrf.mxu2  ;;  %v2244_v43 = vadd.f32 %v2206_v13, %v2150_v29  ;;  %v2302_v34 = vpop.f32.mrf.mxu3 }
 0x416   :  { %v2557_v60 = vsel %vm2555_vm11, %v6404_v50, 0.0  ;;  %v2334_v30 = vadd.f32 %v2296_v41, %v2244_v43 }
 0x417   :  { %v2558_v20 = vadd.f32 %v2557_v60, %v2556_v25 }
 0x418   :  { %v2430_v16 = vadd.f32 %v2392_v38, %v2334_v30  ;;  %v2246_v38 = vadd.f32 %v2212_v46, %v2152_v24 }
 0x419   :  { %v2477_v3 = vpop.f32.mrf.mxu1 }
 0x41a   :  { %v2521_v5 = vadd.f32 %v2477_v3, %v2427_v42  ;;  %v2398_v2 = vpop.f32.mrf.mxu0  ;;  %v2336_v12 = vadd.f32 %v2302_v34, %v2246_v38  ;;  %v7529_v38 = vld [vmem:[#allocation27_spill] sm:$0xff] }
 0x41c   :  { %v6416_v8 = vadd.f32 %v6401_v11, %v2521_v5  ;;  %v2215_v3 = vpop.f32.mrf.mxu2  ;;  %v2245_v5 = vadd.f32 %v2209_v9, %v2151_v17  ;;  %v2305_v41 = vpop.f32.mrf.mxu3 }
 0x41e   :  { %v2559_v1 = vsel %vm2555_vm11, %v6416_v8, 0.0  ;;  %v2335_v25 = vadd.f32 %v2299_v26, %v2245_v5 }
 0x41f   :  { %v2560_v58 = vadd.f32 %v2559_v1, %v2558_v20  ;;  %v1967_v20 = vadd.f32 %v6239_v19, %v1788_v61 }
 0x420   :  { %v2431_v33 = vadd.f32 %v2395_v51, %v2335_v25 }
 0x421   :  { %v2480_v44 = vpop.f32.mrf.mxu1  ;;  %v2057_v26 = vadd.f32 %v6243_v56, %v1967_v20  ;;  %v2058_v56 = vadd.f32 %v6255_v32, %v1968_v57  ;;  %v7528_v20 = vld [vmem:[#allocation15_spill] sm:$0xff] }
 0x422   :  { %v2522_v62 = vadd.f32 %v2480_v44, %v2428_v37 }
 0x423   :  { %v2153_v44 = vadd.f32 %v6299_v36, %v2057_v26  ;;  %v2154_v34 = vadd.f32 %v6309_v48, %v2058_v56 }
 0x424   :  { %v6423_v47 = vadd.f32 %v6401_v11, %v2522_v62  ;;  %v2218_v37 = vpop.f32.mrf.mxu2  ;;  %v2308_v62 = vpop.f32.mrf.mxu3 }
 0x425   :  { %v2247_v46 = vadd.f32 %v2215_v3, %v2153_v44  ;;  %v2248_v7 = vadd.f32 %v2218_v37, %v2154_v34 }
 0x426   :  { %v2561_v21 = vsel %vm2555_vm11, %v6423_v47, 0.0 }
 0x427   :  { %v2562_v28 = vadd.f32 %v2561_v21, %v2560_v58  ;;  %v2401_v58 = vpop.f32.mrf.mxu0  ;;  %v2432_v21 = vadd.f32 %v2398_v2, %v2336_v12  ;;  %v2933_v2 = vld [vmem:[#allocation7 + $0x38] sm:$0xff] }
 0x428   :  { %2978 = vmatpush.msra.mxu2 %v2933_v2 }
 0x429   :  { %v2483_v35 = vpop.f32.mrf.mxu1 }
 0x42a   :  { %v2523_v39 = vadd.f32 %v2483_v35, %v2429_v55  ;;  %v2337_v55 = vadd.f32 %v2305_v41, %v2247_v46  ;;  %v1969_v35 = vadd.f32 %v6261_v18, %v1794_v0  ;;  %v7534_v0 = vld [vmem:[#allocation28_spill] sm:$0xff] }
 0x42c   :  { %v6430_v15 = vadd.f32 %v6401_v11, %v2523_v39  ;;  %v2221_v43 = vpop.f32.mrf.mxu2  ;;  %v2311_v30 = vpop.f32.mrf.mxu3  ;;  %v2433_v10 = vadd.f32 %v2401_v58, %v2337_v55  ;;  %v2059_v48 = vadd.f32 %v6265_v45, %v1969_v35  ;;  %v1800_v45 = vadd.f32 %v6279_v23, %v6179_v6  ;;  %v7531_v23 = vld [vmem:[#allocation12_spill] sm:$0xff] }
 0x42e   :  { %v2563_v42 = vsel %vm2555_vm11, %v6430_v15, 0.0  ;;  %v2155_v5 = vadd.f32 %v6319_v54, %v2059_v48 }
 0x42f   :  { %v2564_v60 = vadd.f32 %v2563_v42, %v2562_v28  ;;  %v2404_v40 = vpop.f32.mrf.mxu0  ;;  %v1797_v42 = vadd.f32 %v6269_v52, %v6169_v27 }
 0x430   :  { %v2249_v25 = vadd.f32 %v2221_v43, %v2155_v5  ;;  %v7539_v5 = vld [vmem:[#allocation29_spill] sm:$0xff] }
 0x431   :  { %v2486_v13 = vpop.f32.mrf.mxu1  ;;  %v1970_v61 = vadd.f32 %v6271_v49, %v1797_v42  ;;  %v7530_v49 = vld [vmem:[#allocation16_spill] sm:$0xff] }
 0x432   :  { %v2524_v53 = vadd.f32 %v2486_v13, %v2430_v16  ;;  %v1971_v37 = vadd.f32 %v7530_v49, %v1800_v45  ;;  %v7538_v42 = vld [vmem:[#allocation20_spill] sm:$0xff] }
 0x433   :  { %v2060_v54 = vadd.f32 %v7528_v20, %v1970_v61  ;;  %v7541_v20 = vld [vmem:[#allocation14_spill] sm:$0xff] }
 0x434   :  { %v6439_v22 = vadd.f32 %v6401_v11, %v2524_v53  ;;  %v2224_v13 = vpop.f32.mrf.mxu2  ;;  %v2314_v27 = vpop.f32.mrf.mxu3 }
 0x435   :  { %v2156_v58 = vadd.f32 %v7529_v38, %v2060_v54  ;;  %v7542_v54 = vld [vmem:[#allocation24_spill] sm:$0xff] }
 0x436   :  { %v2565_v1 = vsel %vm2555_vm11, %v6439_v22, 0.0 }
 0x437   :  { %v2566_v9 = vadd.f32 %v2565_v1, %v2564_v60  ;;  %v2338_v60 = vadd.f32 %v2308_v62, %v2248_v7  ;;  %v2407_v18 = vpop.f32.mrf.mxu0  ;;  %v2250_v12 = vadd.f32 %v2224_v13, %v2156_v58  ;;  %v7532_v62 = vld [vmem:[#allocation18_spill] sm:$0xff]  ;;  %v7536_v7 = vld [vmem:[#allocation13_spill] sm:$0xff] }
 0x438   :  { %v1803_v57 = vadd.f32 %v7532_v62, %v7531_v23 }
 0x439   :  { %v2489_v63 = vpop.f32.mrf.mxu1  ;;  %v2434_v24 = vadd.f32 %v2404_v40, %v2338_v60 }
 0x43a   :  { %v2525_v59 = vadd.f32 %v2489_v63, %v2431_v33 }
 0x43c   :  { %v6449_v19 = vadd.f32 %v6401_v11, %v2525_v59  ;;  %v2227_v26 = vpop.f32.mrf.mxu2 }
 0x43e   :  { %v2567_v29 = vsel %vm2555_vm11, %v6449_v19, 0.0 }
 0x43f   :  { %v2568_v51 = vadd.f32 %v2567_v29, %v2566_v9  ;;  %v2339_v9 = vadd.f32 %v2311_v30, %v2249_v25  ;;  %v2410_v63 = vpop.f32.mrf.mxu0  ;;  %v7533_v29 = vld [vmem:[#allocation17_spill] sm:$0xff] }
 0x441   :  { %v2492_v28 = vpop.f32.mrf.mxu1  ;;  %v2435_v44 = vadd.f32 %v2407_v18, %v2339_v9  ;;  %v7543_v9 = vld [vmem:[#allocation23_spill] sm:$0xff] }
 0x442   :  { %v2526_v36 = vadd.f32 %v2492_v28, %v2432_v21  ;;  %v2317_v21 = vpop.f32.mrf.mxu3  ;;  %v2340_v28 = vadd.f32 %v2314_v27, %v2250_v12  ;;  %v7545_v12 = vld [vmem:[#allocation25_spill] sm:$0xff] }
 0x444   :  { %v6459_v31 = vadd.f32 %v6401_v11, %v2526_v36  ;;  %v7535_v36 = vld [vmem:[#allocation19_spill] sm:$0xff]  ;;  %v2436_v30 = vadd.f32 %v2410_v63, %v2340_v28 }
 0x445   :  { %v1972_v43 = vadd.f32 %v7535_v36, %v1803_v57 }
 0x446   :  { %v2569_v39 = vsel %vm2555_vm11, %v6459_v31, 0.0 }
 0x447   :  { %v2570_v17 = vadd.f32 %v2569_v39, %v2568_v51  ;;  %v2061_v51 = vadd.f32 %v7533_v29, %v1971_v37  ;;  %v2413_v39 = vpop.f32.mrf.mxu0  ;;  %v2062_v48 = vadd.f32 %v7538_v42, %v1972_v43 }
 0x449   :  { %v2495_v32 = vpop.f32.mrf.mxu1  ;;  %v2157_v56 = vadd.f32 %v7534_v0, %v2061_v51  ;;  %v2158_v18 = vadd.f32 %v7539_v5, %v2062_v48 }
 0x44a   :  { %v2527_v3 = vadd.f32 %v2495_v32, %v2433_v10  ;;  %v7537_v10 = vld [vmem:[#allocation21_spill] sm:$0xff]  ;;  %v2320_v61 = vpop.f32.mrf.mxu3 }
 0x44b   :  { %v2251_v35 = vadd.f32 %v2227_v26, %v2157_v56  ;;  %v1806_v32 = vadd.f32 %v7537_v10, %v7536_v7  ;;  %v7547_v56 = vld [vmem:[#allocation31_spill] sm:$0xff] }
 0x44c   :  { %v6469_v16 = vadd.f32 %v6401_v11, %v2527_v3 }
 0x44d   :  { %v2341_v60 = vadd.f32 %v2317_v21, %v2251_v35 }
 0x44e   :  { %v2571_v53 = vsel %vm2555_vm11, %v6469_v16, 0.0 }
 0x44f   :  { %v2572_v41 = vadd.f32 %v2571_v53, %v2570_v17  ;;  %v2230_v17 = vpop.f32.mrf.mxu2  ;;  %v7540_v53 = vld [vmem:[#allocation22_spill] sm:$0xff]  ;;  %v2416_v49 = vpop.f32.mrf.mxu0 }
 0x450   :  { %v2252_v27 = vadd.f32 %v2230_v17, %v2158_v18 }
 0x451   :  { %v2498_v52 = vpop.f32.mrf.mxu1 }
 0x452   :  { %v2528_v1 = vadd.f32 %v2498_v52, %v2434_v24  ;;  %v2437_v52 = vadd.f32 %v2413_v39, %v2341_v60  ;;  %v2342_v63 = vadd.f32 %v2320_v61, %v2252_v27  ;;  %v2323_v23 = vpop.f32.mrf.mxu3 }
 0x454   :  { %v6479_v33 = vadd.f32 %v6401_v11, %v2528_v1  ;;  %v1809_v1 = vadd.f32 %v7542_v54, %v7541_v20  ;;  %v2438_v29 = vadd.f32 %v2416_v49, %v2342_v63 }
 0x456   :  { %v2573_v14 = vsel %vm2555_vm11, %v6479_v33, 0.0 }
 0x457   :  { %v2574_v59 = vadd.f32 %v2573_v14, %v2572_v41  ;;  %v1973_v41 = vadd.f32 %v7540_v53, %v1806_v32  ;;  %v2233_v37 = vpop.f32.mrf.mxu2  ;;  %v7544_v14 = vld [vmem:[#allocation30_spill] sm:$0xff] }
 0x459   :  { %v2501_v6 = vpop.f32.mrf.mxu1  ;;  %v2063_v38 = vadd.f32 %v7543_v9, %v1973_v41 }
 0x45a   :  { %v2529_v46 = vadd.f32 %v2501_v6, %v2435_v44  ;;  %v1974_v44 = vadd.f32 %v7545_v12, %v1809_v1  ;;  %v7548_v1 = vld [vmem:[#allocation11_spill] sm:$0xff] }
 0x45b   :  { %v2159_v26 = vadd.f32 %v7544_v14, %v2063_v38 }
 0x45c   :  { %v6489_v40 = vadd.f32 %v6401_v11, %v2529_v46  ;;  %v7546_v46 = vld [vmem:[#allocation26_spill] sm:$0xff] }
 0x45d   :  { %v2253_v57 = vadd.f32 %v2233_v37, %v2159_v26  ;;  %v2064_v21 = vadd.f32 %v7546_v46, %v1974_v44 }
 0x45e   :  { %v2575_v55 = vsel %vm2555_vm11, %v6489_v40, 0.0 }
 0x45f   :  { %v2576_v34 = vadd.f32 %v2575_v55, %v2574_v59  ;;  %v2343_v0 = vadd.f32 %v2323_v23, %v2253_v57  ;;  %v2160_v36 = vadd.f32 %v7547_v56, %v2064_v21  ;;  %v2419_v55 = vpop.f32.mrf.mxu0 }
 0x461   :  { %v2504_v2 = vpop.f32.mrf.mxu1  ;;  %v2439_v17 = vadd.f32 %v2419_v55, %v2343_v0 }
 0x462   :  { %v2530_v3 = vadd.f32 %v2504_v2, %v2436_v30  ;;  %v2326_v2 = vpop.f32.mrf.mxu3 }
 0x464   :  { %v6499_v13 = vadd.f32 %v6401_v11, %v2530_v3 }
 0x466   :  { %v2577_v25 = vsel %vm2555_vm11, %v6499_v13, 0.0 }
 0x467   :  { %v2578_v24 = vadd.f32 %v2577_v25, %v2576_v34  ;;  %v2236_v34 = vpop.f32.mrf.mxu2  ;;  %v2422_v48 = vpop.f32.mrf.mxu0 }
 0x468   :  { %v2254_v30 = vadd.f32 %v2236_v34, %v2160_v36 }
 0x469   :  { %v2507_v45 = vpop.f32.mrf.mxu1 }
 0x46a   :  { %v2531_v58 = vadd.f32 %v2507_v45, %v2437_v52  ;;  %v2344_v32 = vadd.f32 %v2326_v2, %v2254_v30 }
 0x46c   :  { %v2551_v59 = vadd.f32 %v6401_v11, %v2531_v58  ;;  %v2440_v5 = vadd.f32 %v2422_v48, %v2344_v32 }
 0x46e   :  { %v2579_v6 = vsel %vm2555_vm11, %v2551_v59, 0.0 }
 0x46f   :  { %v2580_v62 = vadd.f32 %v2579_v6, %v2578_v24 }
 0x471   :  { %v2510_v51 = vpop.f32.mrf.mxu1 }
 0x472   :  { %v2532_v28 = vadd.f32 %v2510_v51, %v2438_v29 }
 0x474   :  { %v2552_v43 = vadd.f32 %v6401_v11, %v2532_v28 }
 0x476   :  { %v2581_v35 = vsel %vm2555_vm11, %v2552_v43, 0.0 }
 0x477   :  { %v2582_v39 = vadd.f32 %v2581_v35, %v2580_v62 }
 0x479   :  { %v2513_v7 = vpop.f32.mrf.mxu1 }
 0x47a   :  { %v2533_v10 = vadd.f32 %v2513_v7, %v2439_v17 }
 0x47c   :  { %v2553_v42 = vadd.f32 %v6401_v11, %v2533_v10 }
 0x47e   :  { %v2583_v3 = vsel %vm2555_vm11, %v2553_v42, 0.0 }
 0x47f   :  { %v2584_v60 = vadd.f32 %v2583_v3, %v2582_v39 }
 0x481   :  { %v2516_v18 = vpop.f32.mrf.mxu1 }
 0x482   :  { %v2534_v61 = vadd.f32 %v2516_v18, %v2440_v5 }
 0x484   :  { %v2554_v53 = vadd.f32 %v6401_v11, %v2534_v61 }
 0x486   :  { %v2585_v41 = vsel %vm2555_vm11, %v2554_v53, 0.0 }
 0x487   :  { %v2586_v25 = vadd.f32 %v2585_v41, %v2584_v60 }
 0x489   :  { %v2587_v24 = vrot.slane %v2586_v25, 4 }
 0x48b   :  { %v2588_v27 = vadd.f32 %v2587_v24, %v2586_v25 }
 0x48d   :  { %v2589_v52 = vrot.slane %v2588_v27, 2 }
 0x48f   :  { %v2590_v45 = vadd.f32 %v2589_v52, %v2588_v27 }
 0x491   :  { %v2591_v20 = vrot.slane %v2590_v45, 1 }
 0x493   :  { %v2592_v54 = vadd.f32 %v2591_v20, %v2590_v45 }
 0x495   :  { %v2593_v9 = vmul.f32 %v2592_v54, %v7548_v1 }
 0x497   :  { %v6521_v38 = vsub.f32 %v6407_v4, %v2593_v9  ;;  %v6524_v58 = vsub.f32 %v6404_v50, %v2593_v9  ;;  %v6527_v49 = vsub.f32 %v6416_v8, %v2593_v9  ;;  %v6530_v11 = vsub.f32 %v6423_v47, %v2593_v9 }
 0x498   :  { %v6533_v37 = vsub.f32 %v6430_v15, %v2593_v9  ;;  %v6536_v63 = vsub.f32 %v6439_v22, %v2593_v9  ;;  %v6539_v14 = vsub.f32 %v6449_v19, %v2593_v9  ;;  %v6542_v4 = vsub.f32 %v6459_v31, %v2593_v9 }
 0x499   :  { %v6545_v50 = vsub.f32 %v6469_v16, %v2593_v9  ;;  %v6548_v8 = vsub.f32 %v6479_v33, %v2593_v9  ;;  %v6551_v47 = vsub.f32 %v6489_v40, %v2593_v9  ;;  %v6554_v15 = vsub.f32 %v6499_v13, %v2593_v9 }
 0x49a   :  { %v6556_v22 = vsub.f32 %v2551_v59, %v2593_v9  ;;  %v6558_v26 = vsub.f32 %v2552_v43, %v2593_v9  ;;  %v6560_v19 = vsub.f32 %v2553_v42, %v2593_v9  ;;  %v6562_v31 = vsub.f32 %v2554_v53, %v2593_v9 }
 0x49b   :  { %v2610_v16 = vmul.f32 %v6521_v38, %v6521_v38  ;;  %v2611_v33 = vmul.f32 %v6524_v58, %v6524_v58  ;;  %v2612_v40 = vmul.f32 %v6527_v49, %v6527_v49  ;;  %v2613_v13 = vmul.f32 %v6530_v11, %v6530_v11 }
 0x49c   :  { %v2614_v6 = vmul.f32 %v6533_v37, %v6533_v37  ;;  %v2615_v57 = vmul.f32 %v6536_v63, %v6536_v63  ;;  %v2616_v46 = vmul.f32 %v6539_v14, %v6539_v14  ;;  %v2617_v0 = vmul.f32 %v6542_v4, %v6542_v4 }
 0x49d   :  { %v2626_v59 = vsel %vm2555_vm11, %v2610_v16, 0.0  ;;  %v2627_v12 = vsel %vm2555_vm11, %v2611_v33, 0.0  ;;  %v2629_v23 = vsel %vm2555_vm11, %v2612_v40, 0.0  ;;  %v2631_v29 = vsel %vm2555_vm11, %v2613_v13, 0.0 }
 0x49e   :  { %v2628_v44 = vadd.f32 %v2627_v12, %v2626_v59  ;;  %v2633_v21 = vsel %vm2555_vm11, %v2614_v6, 0.0  ;;  %v2635_v56 = vsel %vm2555_vm11, %v2615_v57, 0.0  ;;  %v2618_v43 = vmul.f32 %v6545_v50, %v6545_v50  ;;  %v2932_v6 = vld [vmem:[#allocation7 + $0x30] sm:$0xff]  ;;  %v2848_v57 = vld [vmem:[#allocation7 + $0x18] sm:$0xff] }
 0x49f   :  { %v2637_v55 = vsel %vm2555_vm11, %v2616_v46, 0.0  ;;  %v2619_v35 = vmul.f32 %v6548_v8, %v6548_v8  ;;  %v2639_v39 = vsel %vm2555_vm11, %v2617_v0, 0.0  ;;  %v2620_v17 = vmul.f32 %v6551_v47, %v6551_v47  ;;  %2979 = vmatpush.msra.mxu2 %v2932_v6  ;;  %3075 = vmatpush.msrb.mxu3 %v2848_v57  ;;  %v2931_v46 = vld [vmem:[#allocation7 + $0x28] sm:$0xff] }
 0x4a0   :  { %v2630_v62 = vadd.f32 %v2629_v23, %v2628_v44  ;;  %v2641_v2 = vsel %vm2555_vm11, %v2618_v43, 0.0  ;;  %v2621_v10 = vmul.f32 %v6554_v15, %v6554_v15  ;;  %v2622_v48 = vmul.f32 %v6556_v22, %v6556_v22 }
 0x4a1   :  { %v2643_v32 = vsel %vm2555_vm11, %v2619_v35, 0.0  ;;  %v2645_v3 = vsel %vm2555_vm11, %v2620_v17, 0.0  ;;  %v2623_v5 = vmul.f32 %v6558_v26, %v6558_v26  ;;  %v2624_v53 = vmul.f32 %v6560_v19, %v6560_v19  ;;  %2980 = vmatpush.msra.mxu2 %v2931_v46 }
 0x4a2   :  { %v2632_v51 = vadd.f32 %v2631_v29, %v2630_v62  ;;  %v2647_v18 = vsel %vm2555_vm11, %v2621_v10, 0.0  ;;  %v2649_v41 = vsel %vm2555_vm11, %v2622_v48, 0.0  ;;  %v2625_v24 = vmul.f32 %v6562_v31, %v6562_v31  ;;  %v2847_v29 = vld [vmem:[#allocation7 + $0x10] sm:$0xff]  ;;  %v3298_v10 = vld [vmem:[#allocation7 + $0x78] sm:$0xff] }
 0x4a3   :  { %v2651_v27 = vsel %vm2555_vm11, %v2623_v5, 0.0  ;;  %v2653_v45 = vsel %vm2555_vm11, %v2624_v53, 0.0  ;;  %v7549_v59 = vmov 0.0   ;;  %3076 = vmatpush.msrb.mxu3 %v2847_v29  ;;  %3317 = vmatpush.msrb.mxu1 %v3298_v10  ;;  %v3398_v5 = vld [vmem:[#allocation7 + $0x98] sm:$0xff] }
 0x4a4   :  { %v2634_v28 = vadd.f32 %v2633_v21, %v2632_v51  ;;  %v2655_v54 = vsel %vm2555_vm11, %v2625_v24, 0.0  ;;  %2783 = vst.msk [vmem:[#allocation4 + $0x118] sm:$0x3] %vm2748_vm12, %v7549_v59  ;;  %v2846_v21 = vld [vmem:[#allocation7 + $0x8] sm:$0xff] }
 0x4a5   :  { %2785 = vst.msk [vmem:[#allocation4 + $0x128] sm:$0x3] %vm2748_vm12, %v7549_v59  ;;  %3077 = vmatpush.msrb.mxu3 %v2846_v21 }
 0x4a6   :  { %v2636_v36 = vadd.f32 %v2635_v56, %v2634_v28  ;;  %2749 = vst.msk [vmem:[#allocation4 + $0x8] sm:$0x3] %vm2748_vm12, %v7549_v59  ;;  %v2805_v28 = vld [vmem:[#allocation4] sm:$0xff]  ;;  %v3180_v56 = vld [vmem:[#allocation7 + $0x58] sm:$0xff] }
 0x4a7   :  { %2751 = vst.msk [vmem:[#allocation4 + $0x18] sm:$0x3] %vm2748_vm12, %v7549_v59  ;;  %v2881_v43 = vrot.slane %v2805_v28, 1  ;;  %3225 = vmatpush.msrb.mxu0 %v3180_v56 }
 0x4a8   :  { %v2638_v34 = vadd.f32 %v2637_v55, %v2636_v36  ;;  %2753 = vst.msk [vmem:[#allocation4 + $0x28] sm:$0x3] %vm2748_vm12, %v7549_v59  ;;  %v2930_v55 = vld [vmem:[#allocation7 + $0x20] sm:$0xff] }
 0x4a9   :  { %2755 = vst.msk [vmem:[#allocation4 + $0x38] sm:$0x3] %vm2748_vm12, %v7549_v59  ;;  %2981 = vmatpush.msra.mxu2 %v2930_v55 }
 0x4aa   :  { %v2640_v30 = vadd.f32 %v2639_v39, %v2638_v34  ;;  %2757 = vst.msk [vmem:[#allocation4 + $0x48] sm:$0x3] %vm2748_vm12, %v7549_v59  ;;  %v2845_v34 = vld [vmem:[#allocation7] sm:$0xff] }
 0x4ab   :  { %2759 = vst.msk [vmem:[#allocation4 + $0x58] sm:$0x3] %vm2748_vm12, %v7549_v59  ;;  %3078 = vmatpush.msrb.mxu3 %v2845_v34  ;;  %3415 = vmatpush.msrb.mxu2 %v3398_v5 }
 0x4ac   :  { %v2642_v7 = vadd.f32 %v2641_v2, %v2640_v30  ;;  %2761 = vst.msk [vmem:[#allocation4 + $0x68] sm:$0x3] %vm2748_vm12, %v7549_v59  ;;  %v3179_v30 = vld [vmem:[#allocation7 + $0x50] sm:$0xff]  ;;  %4421 = vmatmul.msk.f32.vlgmr.msrb.gmra.mxu3 %vm2555_vm11, %v2805_v28 }
 0x4ad   :  { %2763 = vst.msk [vmem:[#allocation4 + $0x78] sm:$0x3] %vm2748_vm12, %v7549_v59  ;;  %v2806_v36 = vld [vmem:[#allocation4 + $0x8] sm:$0x3]  ;;  %3226 = vmatpush.msrb.mxu0 %v3179_v30 }
 0x4ae   :  { %v2644_v42 = vadd.f32 %v2643_v32, %v2642_v7  ;;  %2765 = vst.msk [vmem:[#allocation4 + $0x88] sm:$0x3] %vm2748_vm12, %v7549_v59  ;;  %v2882_v35 = vrot.slane %v2806_v36, 1  ;;  %v3178_v7 = vld [vmem:[#allocation7 + $0x48] sm:$0xff]  ;;  %v3177_v32 = vld [vmem:[#allocation7 + $0x40] sm:$0xff]  ;;  %v3129_v48 = vrot.slane %v2806_v36, 2 }
 0x4af   :  { %2767 = vst.msk [vmem:[#allocation4 + $0x98] sm:$0x3] %vm2748_vm12, %v7549_v59  ;;  %3227 = vmatpush.msrb.mxu0 %v3178_v7 }
 0x4b0   :  { %v2646_v60 = vadd.f32 %v2645_v3, %v2644_v42  ;;  %2769 = vst.msk [vmem:[#allocation4 + $0xa8] sm:$0x3] %vm2748_vm12, %v7549_v59  ;;  %v2883_v17 = vsel %vm224_vm4, %v2881_v43, %v2882_v35  ;;  %v3128_v42 = vrot.slane %v2805_v28, 2  ;;  %v3297_v3 = vld [vmem:[#allocation7 + $0x70] sm:$0xff] }
 0x4b1   :  { %2771 = vst.msk [vmem:[#allocation4 + $0xb8] sm:$0x3] %vm2748_vm12, %v7549_v59  ;;  %4405 = vmatmul.msk.f32.vlgmr.msra.gmra.mxu2 %vm2555_vm11, %v2883_v17  ;;  %3228 = vmatpush.msrb.mxu0 %v3177_v32 }
 0x4b2   :  { %v2648_v61 = vadd.f32 %v2647_v18, %v2646_v60  ;;  %2773 = vst.msk [vmem:[#allocation4 + $0xc8] sm:$0x3] %vm2748_vm12, %v7549_v59  ;;  %v3130_v18 = vsel %vm476_vm3, %v3128_v42, %v3129_v48  ;;  %3318 = vmatpush.msrb.mxu1 %v3297_v3 }
 0x4b3   :  { %2775 = vst.msk [vmem:[#allocation4 + $0xd8] sm:$0x3] %vm2748_vm12, %v7549_v59  ;;  %4437 = vmatmul.msk.f32.vlgmr.msrb.gmra.mxu0 %vm2555_vm11, %v3130_v18 }
 0x4b4   :  { %v2650_v25 = vadd.f32 %v2649_v41, %v2648_v61  ;;  %2777 = vst.msk [vmem:[#allocation4 + $0xe8] sm:$0x3] %vm2748_vm12, %v7549_v59  ;;  %v3296_v61 = vld [vmem:[#allocation7 + $0x68] sm:$0xff]  ;;  %v3295_v41 = vld [vmem:[#allocation7 + $0x60] sm:$0xff] }
 0x4b5   :  { %2779 = vst.msk [vmem:[#allocation4 + $0xf8] sm:$0x3] %vm2748_vm12, %v7549_v59  ;;  %3319 = vmatpush.msrb.mxu1 %v3296_v61 }
 0x4b6   :  { %v2652_v52 = vadd.f32 %v2651_v27, %v2650_v25  ;;  %2781 = vst.msk [vmem:[#allocation4 + $0x108] sm:$0x3] %vm2748_vm12, %v7549_v59 }
 0x4b7   :  { %2787 = vst.msk [vmem:[#allocation4 + $0x138] sm:$0x3] %vm2748_vm12, %v7549_v59  ;;  %3320 = vmatpush.msrb.mxu1 %v3295_v41 }
 0x4b8   :  { %v2654_v20 = vadd.f32 %v2653_v45, %v2652_v52  ;;  %v4562_v52 = vld [vmem:[%s7494_s7] ss:$0 sm:$0xff] }
 0x4ba   :  { %v2656_v9 = vadd.f32 %v2655_v54, %v2654_v20 }
 0x4bc   :  { %v2657_v16 = vrot.slane %v2656_v9, 4 }
 0x4be   :  { %v2658_v33 = vadd.f32 %v2657_v16, %v2656_v9 }
 0x4c0   :  { %v2659_v40 = vrot.slane %v2658_v33, 2 }
 0x4c2   :  { %v2660_v13 = vadd.f32 %v2659_v40, %v2658_v33 }
 0x4c4   :  { %v2661_v12 = vrot.slane %v2660_v13, 1 }
 0x4c6   :  { %v2662_v44 = vadd.f32 %v2661_v12, %v2660_v13 }
 0x4c8   :  { %v2663_v23 = vmul.f32 %v2662_v44, %v7548_v1 }
 0x4ca   :  { %v2664_v62 = vadd.f32 1e-05, %v2663_v23 }
 0x4cc   :  { %4571 = vrsqrt.f32 %v2664_v62  ;;  %vm2671_vm14 = vweird.f32 %v2664_v62 }
 0x4d2   :  { %v4572_v51 = vpop.eup %4571 }
 0x4d3   :  { %v2666_v0 = vmul.f32 %v4572_v51, %v2664_v62  ;;  %vm2672_vm13 = vweird.f32 %v4572_v51 }
 0x4d4   :  { %vm2673_vm15 = vmor %vm2671_vm14, %vm2672_vm13 }
 0x4d5   :  { %v2667_v39 = vmul.f32 %v4572_v51, %v2666_v0 }
 0x4d7   :  { %v2668_v2 = vmul.f32 0.5, %v2667_v39 }
 0x4d9   :  { %v2669_v60 = vsub.f32 1.5, %v2668_v2 }
 0x4db   :  { %v2670_v53 = vmul.f32 %v4572_v51, %v2669_v60 }
 0x4dd   :  { %v2674_v25 = vsel %vm2673_vm15, %v4572_v51, %v2670_v53 }
 0x4de   :  { %v2677_v24 = vmul.f32 %v2674_v25, %v6527_v49  ;;  %v2678_v27 = vmul.f32 %v2674_v25, %v6530_v11  ;;  %v2679_v45 = vmul.f32 %v2674_v25, %v6533_v37  ;;  %v2680_v20 = vmul.f32 %v2674_v25, %v6536_v63 }
 0x4df   :  { %v2681_v54 = vmul.f32 %v2674_v25, %v6539_v14  ;;  %v2682_v9 = vmul.f32 %v2674_v25, %v6542_v4  ;;  %v2683_v16 = vmul.f32 %v2674_v25, %v6545_v50  ;;  %v2684_v33 = vmul.f32 %v2674_v25, %v6548_v8  ;;  %v4563_v4 = vld [vmem:[%s7495_s8] ss:$0 sm:$0xff] }
 0x4e0   :  { %v2685_v49 = vmul.f32 %v2674_v25, %v6551_v47  ;;  %v2686_v11 = vmul.f32 %v2674_v25, %v6554_v15  ;;  %v2687_v40 = vmul.f32 %v2674_v25, %v6556_v22  ;;  %v2688_v13 = vmul.f32 %v2674_v25, %v6558_v26 }
 0x4e1   :  { %v2689_v37 = vmul.f32 %v2674_v25, %v6560_v19  ;;  %v2690_v63 = vmul.f32 %v2674_v25, %v6562_v31  ;;  %v2697_v14 = vmul.f32 %v4562_v52, %v2677_v24  ;;  %v2698_v59 = vmul.f32 %v4562_v52, %v2678_v27 }
 0x4e2   :  { %v2699_v50 = vmul.f32 %v4562_v52, %v2679_v45  ;;  %v2700_v8 = vmul.f32 %v4562_v52, %v2680_v20  ;;  %v2701_v12 = vmul.f32 %v4562_v52, %v2681_v54  ;;  %v2702_v15 = vmul.f32 %v4562_v52, %v2682_v9  ;;  %v3397_v45 = vld [vmem:[#allocation7 + $0x90] sm:$0xff] }
 0x4e3   :  { %v2709_v47 = vmul.f32 %v4562_v52, %v2689_v37  ;;  %v2710_v44 = vmul.f32 %v4562_v52, %v2690_v63  ;;  %v2717_v6 = vadd.f32 %v4563_v4, %v2697_v14  ;;  %v2718_v22 = vadd.f32 %v4563_v4, %v2698_v59  ;;  %3416 = vmatpush.msrb.mxu2 %v3397_v45 }
 0x4e4   :  { %v2719_v23 = vadd.f32 %v4563_v4, %v2699_v50  ;;  %v2675_v26 = vmul.f32 %v2674_v25, %v6521_v38  ;;  %v2703_v19 = vmul.f32 %v4562_v52, %v2683_v16  ;;  %v2676_v31 = vmul.f32 %v2674_v25, %v6524_v58 }
 0x4e5   :  { %v2704_v62 = vmul.f32 %v4562_v52, %v2684_v33  ;;  %v2705_v57 = vmul.f32 %v4562_v52, %v2685_v49  ;;  %v2720_v29 = vadd.f32 %v4563_v4, %v2700_v8  ;;  %v2721_v51 = vadd.f32 %v4563_v4, %v2701_v12 }
 0x4e6   :  { %v2729_v46 = vadd.f32 %v4563_v4, %v2709_v47  ;;  %v2730_v21 = vadd.f32 %v4563_v4, %v2710_v44  ;;  %v2733_v28 = vmax.f32 %v2717_v6, 0.0  ;;  %v2706_v0 = vmul.f32 %v4562_v52, %v2686_v11 }
 0x4e7   :  { %v2722_v56 = vadd.f32 %v4563_v4, %v2702_v15  ;;  %v2734_v36 = vmax.f32 %v2718_v22, 0.0  ;;  %v2735_v43 = vmax.f32 %v2719_v23, 0.0  ;;  %v2707_v55 = vmul.f32 %v4562_v52, %v2687_v40 }
 0x4e8   :  { %v2723_v34 = vadd.f32 %v4563_v4, %v2703_v19  ;;  %2791 = vst.msk [vmem:[#allocation4 + $0x31] sm:$0xff] %vm2555_vm11, %v2733_v28  ;;  %v2708_v35 = vmul.f32 %v4562_v52, %v2688_v13  ;;  %v2724_v38 = vadd.f32 %v4563_v4, %v2704_v62  ;;  %v2736_v39 = vmax.f32 %v2720_v29, 0.0 }
 0x4e9   :  { %v2745_v30 = vmax.f32 %v2729_v46, 0.0  ;;  %2792 = vst.msk [vmem:[#allocation4 + $0x41] sm:$0xff] %vm2555_vm11, %v2734_v36  ;;  %v2695_v58 = vmul.f32 %v4562_v52, %v2675_v26  ;;  %v2725_v17 = vadd.f32 %v4563_v4, %v2705_v57  ;;  %v2737_v2 = vmax.f32 %v2721_v51, 0.0 }
 0x4ea   :  { %v2746_v7 = vmax.f32 %v2730_v21, 0.0  ;;  %2793 = vst.msk [vmem:[#allocation4 + $0x51] sm:$0xff] %vm2555_vm11, %v2735_v43  ;;  %v2696_v10 = vmul.f32 %v4562_v52, %v2676_v31  ;;  %v2726_v32 = vadd.f32 %v4563_v4, %v2706_v0  ;;  %v2738_v42 = vmax.f32 %v2722_v56, 0.0  ;;  %v3396_v56 = vld [vmem:[#allocation7 + $0x88] sm:$0xff] }
 0x4eb   :  { %2803 = vst.msk [vmem:[#allocation4 + $0x111] sm:$0xff] %vm2555_vm11, %v2745_v30  ;;  %v2727_v48 = vadd.f32 %v4563_v4, %v2707_v55  ;;  %v2739_v3 = vmax.f32 %v2723_v34, 0.0  ;;  %v2728_v60 = vadd.f32 %v4563_v4, %v2708_v35  ;;  %v2740_v5 = vmax.f32 %v2724_v38, 0.0  ;;  %3417 = vmatpush.msrb.mxu2 %v3396_v56 }
 0x4ec   :  { %2804 = vst.msk [vmem:[#allocation4 + $0x121] sm:$0xff] %vm2555_vm11, %v2746_v7  ;;  %v2741_v18 = vmax.f32 %v2725_v17, 0.0  ;;  %v2715_v61 = vadd.f32 %v4563_v4, %v2695_v58  ;;  %v2716_v53 = vadd.f32 %v4563_v4, %v2696_v10  ;;  %v2742_v41 = vmax.f32 %v2726_v32, 0.0 }
 0x4ed   :  { %2794 = vst.msk [vmem:[#allocation4 + $0x61] sm:$0xff] %vm2555_vm11, %v2736_v39  ;;  %v2743_v25 = vmax.f32 %v2727_v48, 0.0  ;;  %v2744_v24 = vmax.f32 %v2728_v60, 0.0 }
 0x4ee   :  { %2795 = vst.msk [vmem:[#allocation4 + $0x71] sm:$0xff] %vm2555_vm11, %v2737_v2  ;;  %v2731_v27 = vmax.f32 %v2715_v61, 0.0  ;;  %v2732_v52 = vmax.f32 %v2716_v53, 0.0  ;;  %v2825_v61 = vld [vmem:[#allocation4 + $0xa0] sm:$0xff]  ;;  %v2826_v53 = vld [vmem:[#allocation4 + $0xa8] sm:$0x3] }
 0x4ef   :  { %2796 = vst.msk [vmem:[#allocation4 + $0x81] sm:$0xff] %vm2555_vm11, %v2738_v42  ;;  %v6726_v12 = vld [vmem:[#allocation4 + $0x30] sm:$0xff]  ;;  %v2812_v47 = vld [vmem:[#allocation4 + $0x38] sm:$0x3]  ;;  %v3153_v45 = vrot.slane %v2826_v53, 2 }
 0x4f0   :  { %2797 = vst.msk [vmem:[#allocation4 + $0xb1] sm:$0xff] %vm2555_vm11, %v2739_v3  ;;  %v2890_v44 = vrot.slane %v6726_v12, 1  ;;  %v2891_v15 = vrot.slane %v2812_v47, 1  ;;  %v3137_v6 = vrot.slane %v6726_v12, 2  ;;  %v3138_v22 = vrot.slane %v2812_v47, 2  ;;  %v6744_v19 = vld [vmem:[#allocation4 + $0x40] sm:$0xff] }
 0x4f1   :  { %2798 = vst.msk [vmem:[#allocation4 + $0xc1] sm:$0xff] %vm2555_vm11, %v2740_v5  ;;  %v2814_v31 = vld [vmem:[#allocation4 + $0x48] sm:$0x3]  ;;  %v2893_v62 = vrot.slane %v6744_v19, 1  ;;  %v3140_v29 = vrot.slane %v6744_v19, 2  ;;  %v6762_v28 = vld [vmem:[#allocation4 + $0x50] sm:$0xff] }
 0x4f2   :  { %2799 = vst.msk [vmem:[#allocation4 + $0xd1] sm:$0xff] %vm2555_vm11, %v2741_v18  ;;  %v6735_v23 = vsel %vm224_vm4, %v2890_v44, %v2891_v15  ;;  %v6738_v26 = vsel %vm476_vm3, %v3137_v6, %v3138_v22  ;;  %v2894_v57 = vrot.slane %v2814_v31, 1  ;;  %v3141_v51 = vrot.slane %v2814_v31, 2  ;;  %v2816_v0 = vld [vmem:[#allocation4 + $0x58] sm:$0x3] }
 0x4f3   :  { %2800 = vst.msk [vmem:[#allocation4 + $0xe1] sm:$0xff] %vm2555_vm11, %v2742_v41  ;;  %v2896_v36 = vrot.slane %v6762_v28, 1  ;;  %v2897_v43 = vrot.slane %v2816_v0, 1  ;;  %v3143_v55 = vrot.slane %v6762_v28, 2  ;;  %v3144_v34 = vrot.slane %v2816_v0, 2 }
 0x4f4   :  { %2801 = vst.msk [vmem:[#allocation4 + $0xf1] sm:$0xff] %vm2555_vm11, %v2743_v25  ;;  %v6753_v46 = vsel %vm224_vm4, %v2893_v62, %v2894_v57  ;;  %v6756_v21 = vsel %vm476_vm3, %v3140_v29, %v3141_v51  ;;  %v6780_v39 = vld [vmem:[#allocation4 + $0x60] sm:$0xff]  ;;  %v2818_v30 = vld [vmem:[#allocation4 + $0x68] sm:$0x3] }
 0x4f5   :  { %2802 = vst.msk [vmem:[#allocation4 + $0x101] sm:$0xff] %vm2555_vm11, %v2744_v24  ;;  %v6771_v35 = vsel %vm224_vm4, %v2896_v36, %v2897_v43  ;;  %v6774_v38 = vsel %vm476_vm3, %v3143_v55, %v3144_v34  ;;  %v2899_v58 = vrot.slane %v6780_v39, 1  ;;  %v2900_v17 = vrot.slane %v2818_v30, 1  ;;  %v6798_v42 = vld [vmem:[#allocation4 + $0x70] sm:$0xff]  ;;  %v2820_v48 = vld [vmem:[#allocation4 + $0x78] sm:$0x3] }
 0x4f6   :  { %2789 = vst.msk [vmem:[#allocation4 + $0x11] sm:$0xff] %vm2555_vm11, %v2731_v27  ;;  %v3146_v2 = vrot.slane %v6780_v39, 2  ;;  %v3147_v7 = vrot.slane %v2818_v30, 2  ;;  %v2902_v3 = vrot.slane %v6798_v42, 1  ;;  %v2903_v60 = vrot.slane %v2820_v48, 1  ;;  %v3494_v34 = vld [vmem:[#allocation7 + $0xb8] sm:$0xff] }
 0x4f7   :  { %2790 = vst.msk [vmem:[#allocation4 + $0x21] sm:$0xff] %vm2555_vm11, %v2732_v52  ;;  %v6789_v10 = vsel %vm224_vm4, %v2899_v58, %v2900_v17  ;;  %v3149_v5 = vrot.slane %v6798_v42, 2  ;;  %v3150_v18 = vrot.slane %v2820_v48, 2  ;;  %v2905_v24 = vrot.slane %v2825_v61, 1  ;;  %3511 = vmatpush.msra.mxu3 %v3494_v34  ;;  %v3584_v48 = vld [vmem:[#allocation7 + $0xd8] sm:$0xff] }
 0x4f8   :  { %v6792_v32 = vsel %vm476_vm3, %v3146_v2, %v3147_v7  ;;  %v6807_v41 = vsel %vm224_vm4, %v2902_v3, %v2903_v60  ;;  %v3152_v27 = vrot.slane %v2825_v61, 2  ;;  %v2906_v52 = vrot.slane %v2826_v53, 1  ;;  %v6837_v44 = vld [vmem:[#allocation4 + $0xc0] sm:$0xff]  ;;  %v2830_v15 = vld [vmem:[#allocation4 + $0xc8] sm:$0x3]  ;;  %v3492_v3 = vld [vmem:[#allocation7 + $0xa8] sm:$0xff]  ;;  %3603 = vmatpush.msra.mxu0 %v3584_v48 }
 0x4f9   :  { %v6810_v25 = vsel %vm476_vm3, %v3149_v5, %v3150_v18  ;;  %v2911_v6 = vrot.slane %v6837_v44, 1  ;;  %v2912_v22 = vrot.slane %v2830_v15, 1  ;;  %v3158_v31 = vrot.slane %v6837_v44, 2  ;;  %v6855_v51 = vld [vmem:[#allocation4 + $0xd0] sm:$0xff]  ;;  %v2832_v0 = vld [vmem:[#allocation4 + $0xd8] sm:$0x3] }
 0x4fa   :  { %v3159_v62 = vrot.slane %v2830_v15, 2  ;;  %v2914_v56 = vrot.slane %v6855_v51, 1  ;;  %v2915_v36 = vrot.slane %v2832_v0, 1  ;;  %v3161_v43 = vrot.slane %v6855_v51, 2  ;;  %v6869_v17 = vld [vmem:[#allocation4 + $0xe0] sm:$0xff]  ;;  %v6927_v48 = vld [vmem:[#allocation4 + $0x110] sm:$0xff] }
 0x4fb   :  { %v6846_v57 = vsel %vm224_vm4, %v2911_v6, %v2912_v22  ;;  %v3162_v55 = vrot.slane %v2832_v0, 2  ;;  %v2834_v2 = vld [vmem:[#allocation4 + $0xe8] sm:$0x3]  ;;  %v3493_v7 = vld [vmem:[#allocation7 + $0xb0] sm:$0xff]  ;;  %v2917_v5 = vrot.slane %v6869_v17, 1  ;;  %v3682_v6 = vld [vmem:[#allocation7 + $0xe8] sm:$0xff] }
 0x4fc   :  { %v6849_v29 = vsel %vm476_vm3, %v3158_v31, %v3159_v62  ;;  %v6864_v30 = vsel %vm224_vm4, %v2914_v56, %v2915_v36  ;;  %3512 = vmatpush.msra.mxu3 %v3493_v7  ;;  %v3583_v60 = vld [vmem:[#allocation7 + $0xd0] sm:$0xff]  ;;  %v2918_v18 = vrot.slane %v2834_v2, 1  ;;  %v3165_v53 = vrot.slane %v2834_v2, 2  ;;  %v3681_v22 = vld [vmem:[#allocation7 + $0xe0] sm:$0xff]  ;;  %v2838_v56 = vld [vmem:[#allocation4 + $0x108] sm:$0x3] }
 0x4fd   :  { %v2807_v20 = vld [vmem:[#allocation4 + $0x10] sm:$0xff]  ;;  %v2808_v54 = vld [vmem:[#allocation4 + $0x18] sm:$0x3]  ;;  %v6867_v58 = vsel %vm476_vm3, %v3161_v43, %v3162_v55  ;;  %3604 = vmatpush.msra.mxu0 %v3583_v60  ;;  %v6909_v0 = vld [vmem:[#allocation4 + $0x100] sm:$0xff]  ;;  %v2924_v43 = vrot.slane %v2838_v56, 1  ;;  %v3171_v34 = vrot.slane %v2838_v56, 2 }
 0x4fe   :  { %v2884_v9 = vrot.slane %v2807_v20, 1  ;;  %4422 = vmatmul.msk.f32.gmra.mxu3 %vm2555_vm11, %v2807_v20  ;;  %v3131_v16 = vrot.slane %v2807_v20, 2  ;;  %4453 = vmatmul.msk.f32.vlgmr.msrb.gmra.mxu1 %vm2555_vm11, %v2807_v20  ;;  %v2885_v33 = vrot.slane %v2808_v54, 1  ;;  %v3132_v49 = vrot.slane %v2808_v54, 2  ;;  %v6708_v13 = vld [vmem:[#allocation4 + $0x20] sm:$0xff] }
 0x4ff   :  { %v2810_v37 = vld [vmem:[#allocation4 + $0x28] sm:$0x3]  ;;  %v2887_v63 = vrot.slane %v6708_v13, 1  ;;  %v3134_v59 = vrot.slane %v6708_v13, 2  ;;  %v6816_v20 = vld [vmem:[#allocation4 + $0x80] sm:$0xff]  ;;  %v2907_v54 = vsel %vm224_vm4, %v2905_v24, %v2906_v52  ;;  %3513 = vmatpush.msra.mxu3 %v3492_v3  ;;  %v3491_v24 = vld [vmem:[#allocation7 + $0xa0] sm:$0xff] }
 0x500   :  { %v6699_v11 = vsel %vm224_vm4, %v2884_v9, %v2885_v33  ;;  %v6702_v40 = vsel %vm476_vm3, %v3131_v16, %v3132_v49  ;;  %v2888_v14 = vrot.slane %v2810_v37, 1  ;;  %v3135_v4 = vrot.slane %v2810_v37, 2  ;;  %v2827_v16 = vld [vmem:[#allocation4 + $0xb0] sm:$0xff]  ;;  %v2828_v33 = vld [vmem:[#allocation4 + $0xb8] sm:$0x3]  ;;  %v3684_v52 = vld [vmem:[#allocation7 + $0xf8] sm:$0xff] }
 0x501   :  { %4406 = vmatmul.msk.f32.gmra.mxu2 %vm2555_vm11, %v6699_v11  ;;  %4438 = vmatmul.msk.f32.gmra.mxu0 %vm2555_vm11, %v6702_v40  ;;  %v3154_v9 = vsel %vm476_vm3, %v3152_v27, %v3153_v45  ;;  %v3395_v49 = vld [vmem:[#allocation7 + $0x80] sm:$0xff]  ;;  %v2908_v37 = vrot.slane %v2827_v16, 1  ;;  %v3582_v27 = vld [vmem:[#allocation7 + $0xc8] sm:$0xff]  ;;  %v2923_v36 = vrot.slane %v6909_v0, 1  ;;  %v3170_v55 = vrot.slane %v6909_v0, 2 }
 0x502   :  { %v6717_v50 = vsel %vm224_vm4, %v2887_v63, %v2888_v14  ;;  %v6720_v8 = vsel %vm476_vm3, %v3134_v59, %v3135_v4  ;;  %3418 = vmatpush.msrb.mxu2 %v3395_v49  ;;  %v3155_v63 = vrot.slane %v2827_v16, 2  ;;  %v2909_v14 = vrot.slane %v2828_v33, 1  ;;  %3514 = vmatpush.msra.mxu3 %v3491_v24  ;;  %v3581_v45 = vld [vmem:[#allocation7 + $0xc0] sm:$0xff]  ;;  %v3683_v49 = vld [vmem:[#allocation7 + $0xf0] sm:$0xff]  ;;  %v2840_v3 = vld [vmem:[#allocation4 + $0x118] sm:$0x3] }
 0x503   :  { %v3156_v59 = vrot.slane %v2828_v33, 2  ;;  %3605 = vmatpush.msra.mxu0 %v3582_v27  ;;  %3701 = vmatpush.msra.mxu1 %v3684_v52  ;;  %v2836_v33 = vld [vmem:[#allocation4 + $0xf8] sm:$0x3]  ;;  %v6918_v2 = vsel %vm224_vm4, %v2923_v36, %v2924_v43  ;;  %v6921_v7 = vsel %vm476_vm3, %v3170_v55, %v3171_v34  ;;  %v2926_v60 = vrot.slane %v6927_v48, 1  ;;  %v6947_v52 = vld [vmem:[#allocation4 + $0x120] sm:$0xff] }
 0x504   :  { %v6828_v4 = vsel %vm224_vm4, %v2908_v37, %v2909_v14  ;;  %v3780_v37 = vld [vmem:[#allocation7 + $0x118] sm:$0xff]  ;;  %v2921_v14 = vrot.slane %v2836_v33, 1  ;;  %v3168_v15 = vrot.slane %v2836_v33, 2  ;;  %v3779_v33 = vld [vmem:[#allocation7 + $0x110] sm:$0xff] }
 0x505   :  { %v6831_v47 = vsel %vm476_vm3, %v3155_v63, %v3156_v59  ;;  %3606 = vmatpush.msra.mxu0 %v3581_v45  ;;  %3702 = vmatpush.msra.mxu1 %v3683_v49 }
 0x506   :  { %4423 = vmatmul.msk.f32.gmra.mxu3 %vm2555_vm11, %v6708_v13  ;;  %4454 = vmatmul.msk.f32.gmra.mxu1 %vm2555_vm11, %v6708_v13 }
 0x507   :  { %3797 = vmatpush.msra.mxu2 %v3780_v37  ;;  %3703 = vmatpush.msra.mxu1 %v3682_v6 }
 0x509   :  { %4407 = vmatmul.msk.f32.gmra.mxu2 %vm2555_vm11, %v6717_v50  ;;  %4439 = vmatmul.msk.f32.gmra.mxu0 %vm2555_vm11, %v6720_v8 }
 0x50a   :  { %3704 = vmatpush.msra.mxu1 %v3681_v22  ;;  %3798 = vmatpush.msra.mxu2 %v3779_v33 }
 0x50e   :  { %4424 = vmatmul.msk.f32.gmra.mxu3 %vm2555_vm11, %v6726_v12  ;;  %4455 = vmatmul.msk.f32.gmra.mxu1 %vm2555_vm11, %v6726_v12 }
 0x511   :  { %4408 = vmatmul.msk.f32.gmra.mxu2 %vm2555_vm11, %v6735_v23  ;;  %4440 = vmatmul.msk.f32.gmra.mxu0 %vm2555_vm11, %v6738_v26 }
 0x516   :  { %4425 = vmatmul.msk.f32.gmra.mxu3 %vm2555_vm11, %v6744_v19  ;;  %4456 = vmatmul.msk.f32.gmra.mxu1 %vm2555_vm11, %v6744_v19 }
 0x519   :  { %4409 = vmatmul.msk.f32.gmra.mxu2 %vm2555_vm11, %v6753_v46  ;;  %4441 = vmatmul.msk.f32.gmra.mxu0 %vm2555_vm11, %v6756_v21 }
 0x51e   :  { %4426 = vmatmul.msk.f32.gmra.mxu3 %vm2555_vm11, %v6762_v28  ;;  %4457 = vmatmul.msk.f32.gmra.mxu1 %vm2555_vm11, %v6762_v28 }
 0x521   :  { %4410 = vmatmul.msk.f32.gmra.mxu2 %vm2555_vm11, %v6771_v35  ;;  %4442 = vmatmul.msk.f32.gmra.mxu0 %vm2555_vm11, %v6774_v38 }
 0x526   :  { %4427 = vmatmul.msk.f32.gmra.mxu3 %vm2555_vm11, %v6780_v39  ;;  %4458 = vmatmul.msk.f32.gmra.mxu1 %vm2555_vm11, %v6780_v39 }
 0x529   :  { %4411 = vmatmul.msk.f32.gmra.mxu2 %vm2555_vm11, %v6789_v10  ;;  %4443 = vmatmul.msk.f32.gmra.mxu0 %vm2555_vm11, %v6792_v32 }
 0x52e   :  { %4428 = vmatmul.msk.f32.gmra.mxu3 %vm2555_vm11, %v6798_v42  ;;  %4459 = vmatmul.msk.f32.gmra.mxu1 %vm2555_vm11, %v6798_v42 }
 0x52f   :  { %v6953_v45 = vpop.f32.mrf.mxu3 }
 0x530   :  { %v6945_v27 = vpop.f32.mrf.mxu0 }
 0x531   :  { %4412 = vmatmul.msk.f32.gmra.mxu2 %vm2555_vm11, %v6807_v41  ;;  %4444 = vmatmul.msk.f32.gmra.mxu0 %vm2555_vm11, %v6810_v25 }
 0x534   :  { %v6961_v37 = vpop.f32.mrf.mxu2 }
 0x536   :  { %4429 = vmatmul.msk.f32.gmra.mxu3 %vm2555_vm11, %v2825_v61  ;;  %4460 = vmatmul.msk.f32.gmra.mxu1 %vm2555_vm11, %v6816_v20  ;;  %v3164_v61 = vrot.slane %v6869_v17, 2 }
 0x539   :  { %4413 = vmatmul.msk.f32.gmra.mxu2 %vm2555_vm11, %v2907_v54  ;;  %4445 = vmatmul.msk.f32.gmra.mxu0 %vm2555_vm11, %v3154_v9  ;;  %v6882_v54 = vsel %vm224_vm4, %v2917_v5, %v2918_v18  ;;  %v6885_v9 = vsel %vm476_vm3, %v3164_v61, %v3165_v53  ;;  %v2927_v5 = vrot.slane %v2840_v3, 1  ;;  %v3173_v18 = vrot.slane %v6927_v48, 2 }
 0x53a   :  { %v3174_v61 = vrot.slane %v2840_v3, 2 }
 0x53b   :  { %v6936_v53 = vsel %vm224_vm4, %v2926_v60, %v2927_v5 }
 0x53c   :  { %v6939_v24 = vsel %vm476_vm3, %v3173_v18, %v3174_v61 }
 0x53e   :  { %4430 = vmatmul.msk.f32.gmra.mxu3 %vm2555_vm11, %v2827_v16  ;;  %4461 = vmatmul.msk.f32.gmra.mxu1 %vm2555_vm11, %v2827_v16  ;;  %v6887_v16 = vld [vmem:[#allocation4 + $0xf0] sm:$0xff] }
 0x53f   :  { %v2920_v63 = vrot.slane %v6887_v16, 1  ;;  %v3167_v59 = vrot.slane %v6887_v16, 2 }
 0x541   :  { %4414 = vmatmul.msk.f32.gmra.mxu2 %vm2555_vm11, %v6828_v4  ;;  %4446 = vmatmul.msk.f32.gmra.mxu0 %vm2555_vm11, %v6831_v47  ;;  %v6900_v31 = vsel %vm224_vm4, %v2920_v63, %v2921_v14  ;;  %v6903_v62 = vsel %vm476_vm3, %v3167_v59, %v3168_v15 }
 0x546   :  { %4431 = vmatmul.msk.f32.gmra.mxu3 %vm2555_vm11, %v6837_v44  ;;  %4462 = vmatmul.msk.f32.gmra.mxu1 %vm2555_vm11, %v6837_v44 }
 0x549   :  { %4415 = vmatmul.msk.f32.gmra.mxu2 %vm2555_vm11, %v6846_v57  ;;  %4447 = vmatmul.msk.f32.gmra.mxu0 %vm2555_vm11, %v6849_v29 }
 0x54e   :  { %4432 = vmatmul.msk.f32.gmra.mxu3 %vm2555_vm11, %v6855_v51  ;;  %4463 = vmatmul.msk.f32.gmra.mxu1 %vm2555_vm11, %v6855_v51 }
 0x551   :  { %4416 = vmatmul.msk.f32.gmra.mxu2 %vm2555_vm11, %v6864_v30  ;;  %4448 = vmatmul.msk.f32.gmra.mxu0 %vm2555_vm11, %v6867_v58 }
 0x556   :  { %4433 = vmatmul.msk.f32.gmra.mxu3 %vm2555_vm11, %v6869_v17  ;;  %4464 = vmatmul.msk.f32.gmra.mxu1 %vm2555_vm11, %v6869_v17 }
 0x559   :  { %4417 = vmatmul.msk.f32.gmra.mxu2 %vm2555_vm11, %v6882_v54  ;;  %4449 = vmatmul.msk.f32.gmra.mxu0 %vm2555_vm11, %v6885_v9 }
 0x55e   :  { %4434 = vmatmul.msk.f32.gmra.mxu3 %vm2555_vm11, %v6887_v16  ;;  %4465 = vmatmul.msk.f32.gmra.mxu1 %vm2555_vm11, %v6887_v16 }
 0x561   :  { %4418 = vmatmul.msk.f32.gmra.mxu2 %vm2555_vm11, %v6900_v31  ;;  %4450 = vmatmul.msk.f32.gmra.mxu0 %vm2555_vm11, %v6903_v62 }
 0x566   :  { %4435 = vmatmul.msk.f32.gmra.mxu3 %vm2555_vm11, %v6909_v0  ;;  %4466 = vmatmul.msk.f32.gmra.mxu1 %vm2555_vm11, %v6909_v0 }
 0x569   :  { %4419 = vmatmul.msk.f32.gmra.mxu2 %vm2555_vm11, %v6918_v2  ;;  %4451 = vmatmul.msk.f32.gmra.mxu0 %vm2555_vm11, %v6921_v7 }
 0x56e   :  { %4436 = vmatmul.msk.f32.gmra.mxu3 %vm2555_vm11, %v6927_v48  ;;  %4467 = vmatmul.msk.f32.gmra.mxu1 %vm2555_vm11, %v6927_v48 }
 0x571   :  { %4420 = vmatmul.msk.f32.gmra.mxu2 %vm2555_vm11, %v6936_v53  ;;  %4452 = vmatmul.msk.f32.gmra.mxu0 %vm2555_vm11, %v6939_v24 }
 0x576   :  { %4468 = vmatmul.msk.f32.gmra.mxu1 %vm2555_vm11, %v6947_v52  ;;  %4485 = vmatmul.msk.f32.vlgmr.msra.gmra.mxu3 %vm2555_vm11, %v6702_v40 }
 0x579   :  { %4469 = vmatmul.msk.f32.vlgmr.msrb.gmra.mxu2 %vm2555_vm11, %v6699_v11  ;;  %4501 = vmatmul.msk.f32.vlgmr.msra.gmra.mxu0 %vm2555_vm11, %v6708_v13 }
 0x57b   :  { %v6959_v49 = vpop.f32.mrf.mxu1 }
 0x57e   :  { %v3233_v63 = vpop.f32.mrf.mxu0  ;;  %4486 = vmatmul.msk.f32.gmra.mxu3 %vm2555_vm11, %v6720_v8  ;;  %4517 = vmatmul.msk.f32.vlgmr.msra.gmra.mxu1 %vm2555_vm11, %v6717_v50 }
 0x581   :  { %v3083_v40 = vpop.f32.mrf.mxu3  ;;  %4470 = vmatmul.msk.f32.gmra.mxu2 %vm2555_vm11, %v6717_v50  ;;  %4502 = vmatmul.msk.f32.gmra.mxu0 %vm2555_vm11, %v6726_v12 }
 0x583   :  { %v3325_v11 = vpop.f32.mrf.mxu1 }
 0x584   :  { %v2986_v13 = vpop.f32.mrf.mxu2 }
 0x585   :  { %v3084_v14 = vadd.f32 %v3083_v40, %v2986_v13 }
 0x586   :  { %v3236_v59 = vpop.f32.mrf.mxu0  ;;  %4487 = vmatmul.msk.f32.gmra.mxu3 %vm2555_vm11, %v6738_v26  ;;  %4518 = vmatmul.msk.f32.gmra.mxu1 %vm2555_vm11, %v6735_v23 }
 0x587   :  { %v3279_v15 = vadd.f32 %v3233_v63, %v3084_v14 }
 0x589   :  { %v3086_v6 = vpop.f32.mrf.mxu3  ;;  %4471 = vmatmul.msk.f32.gmra.mxu2 %vm2555_vm11, %v6735_v23  ;;  %4503 = vmatmul.msk.f32.gmra.mxu0 %vm2555_vm11, %v6744_v19  ;;  %v6979_v50 = vadd.f32 %v3325_v11, %v3279_v15 }
 0x58b   :  { %v3328_v12 = vpop.f32.mrf.mxu1 }
 0x58c   :  { %v2989_v22 = vpop.f32.mrf.mxu2 }
 0x58d   :  { %v3087_v56 = vadd.f32 %v3086_v6, %v2989_v22  ;;  %v2822_v6 = vld [vmem:[#allocation4 + $0x88] sm:$0x3]  ;;  %v3388_v22 = vrot.slane %v6816_v20, 1 }
 0x58e   :  { %v3239_v36 = vpop.f32.mrf.mxu0  ;;  %4488 = vmatmul.msk.f32.gmra.mxu3 %vm2555_vm11, %v6756_v21  ;;  %4519 = vmatmul.msk.f32.gmra.mxu1 %vm2555_vm11, %v6753_v46 }
 0x58f   :  { %v3280_v43 = vadd.f32 %v3236_v59, %v3087_v56 }
 0x591   :  { %v3089_v55 = vpop.f32.mrf.mxu3  ;;  %4472 = vmatmul.msk.f32.gmra.mxu2 %vm2555_vm11, %v6753_v46  ;;  %4504 = vmatmul.msk.f32.gmra.mxu0 %vm2555_vm11, %v6762_v28  ;;  %v6989_v23 = vadd.f32 %v3328_v12, %v3280_v43  ;;  %v3778_v46 = vld [vmem:[#allocation7 + $0x108] sm:$0xff] }
 0x592   :  { %3799 = vmatpush.msra.mxu2 %v3778_v46 }
 0x593   :  { %v3331_v19 = vpop.f32.mrf.mxu1 }
 0x594   :  { %v2992_v34 = vpop.f32.mrf.mxu2 }
 0x595   :  { %v3090_v3 = vadd.f32 %v3089_v55, %v2992_v34  ;;  %v7023_v34 = vld [vmem:[#allocation4 + $0x98] sm:$0x3] }
 0x596   :  { %v3242_v60 = vpop.f32.mrf.mxu0  ;;  %4489 = vmatmul.msk.f32.gmra.mxu3 %vm2555_vm11, %v6774_v38  ;;  %4520 = vmatmul.msk.f32.gmra.mxu1 %vm2555_vm11, %v6771_v35 }
 0x597   :  { %v3281_v5 = vadd.f32 %v3239_v36, %v3090_v3  ;;  %v3389_v36 = vrot.slane %v2822_v6, 1 }
 0x599   :  { %v3092_v18 = vpop.f32.mrf.mxu3  ;;  %4473 = vmatmul.msk.f32.gmra.mxu2 %vm2555_vm11, %v6771_v35  ;;  %4505 = vmatmul.msk.f32.gmra.mxu0 %vm2555_vm11, %v6780_v39  ;;  %v6999_v28 = vadd.f32 %v3331_v19, %v3281_v5  ;;  %v3390_v5 = vsel %vm224_vm4, %v3388_v22, %v3389_v36 }
 0x59b   :  { %v3334_v61 = vpop.f32.mrf.mxu1 }
 0x59c   :  { %v2995_v33 = vpop.f32.mrf.mxu2 }
 0x59d   :  { %v3093_v63 = vadd.f32 %v3092_v18, %v2995_v33 }
 0x59e   :  { %v3245_v40 = vpop.f32.mrf.mxu0  ;;  %4490 = vmatmul.msk.f32.gmra.mxu3 %vm2555_vm11, %v6792_v32  ;;  %4521 = vmatmul.msk.f32.gmra.mxu1 %vm2555_vm11, %v6789_v10 }
 0x59f   :  { %v3282_v11 = vadd.f32 %v3242_v60, %v3093_v63 }
 0x5a1   :  { %v3095_v13 = vpop.f32.mrf.mxu3  ;;  %4474 = vmatmul.msk.f32.gmra.mxu2 %vm2555_vm11, %v6789_v10  ;;  %4506 = vmatmul.msk.f32.gmra.mxu0 %vm2555_vm11, %v6798_v42  ;;  %v7009_v35 = vadd.f32 %v3334_v61, %v3282_v11  ;;  %v3484_v10 = vrot.slane %v6816_v20, 2  ;;  %v3485_v42 = vrot.slane %v2822_v6, 2  ;;  %v3675_v61 = vrot.slane %v7023_v34, 1  ;;  %v3777_v6 = vld [vmem:[#allocation7 + $0x100] sm:$0xff] }
 0x5a2   :  { %3800 = vmatpush.msra.mxu2 %v3777_v6 }
 0x5a3   :  { %v3337_v39 = vpop.f32.mrf.mxu1  ;;  %v7026_v60 = vsel %vm476_vm3, %v3484_v10, %v3485_v42 }
 0x5a4   :  { %v2998_v14 = vpop.f32.mrf.mxu2 }
 0x5a5   :  { %v3096_v59 = vadd.f32 %v3095_v13, %v2998_v14 }
 0x5a6   :  { %v3248_v15 = vpop.f32.mrf.mxu0  ;;  %4491 = vmatmul.msk.f32.gmra.mxu3 %vm2555_vm11, %v6810_v25  ;;  %4522 = vmatmul.msk.f32.gmra.mxu1 %vm2555_vm11, %v6807_v41 }
 0x5a7   :  { %v3283_v12 = vadd.f32 %v3245_v40, %v3096_v59 }
 0x5a9   :  { %v3098_v56 = vpop.f32.mrf.mxu3  ;;  %4475 = vmatmul.msk.f32.gmra.mxu2 %vm2555_vm11, %v6807_v41  ;;  %4507 = vmatmul.msk.f32.gmra.mxu0 %vm2555_vm11, %v6816_v20  ;;  %v7021_v43 = vadd.f32 %v3337_v39, %v3283_v12  ;;  %v7032_v41 = vld [vmem:[#allocation4 + $0x90] sm:$0xff] }
 0x5aa   :  { %v3674_v46 = vrot.slane %v7032_v41, 1 }
 0x5ab   :  { %v3340_v55 = vpop.f32.mrf.mxu1 }
 0x5ac   :  { %v3001_v19 = vpop.f32.mrf.mxu2  ;;  %v3676_v11 = vsel %vm224_vm4, %v3674_v46, %v3675_v61 }
 0x5ad   :  { %v3099_v3 = vadd.f32 %v3098_v56, %v3001_v19 }
 0x5ae   :  { %v3251_v18 = vpop.f32.mrf.mxu0  ;;  %4492 = vmatmul.msk.f32.gmra.mxu3 %vm2555_vm11, %v7026_v60  ;;  %4523 = vmatmul.msk.f32.gmra.mxu1 %vm2555_vm11, %v3390_v5 }
 0x5af   :  { %v3284_v20 = vadd.f32 %v3248_v15, %v3099_v3 }
 0x5b1   :  { %v3101_v33 = vpop.f32.mrf.mxu3  ;;  %4476 = vmatmul.msk.f32.gmra.mxu2 %vm2555_vm11, %v3390_v5  ;;  %4508 = vmatmul.msk.f32.gmra.mxu0 %vm2555_vm11, %v7032_v41  ;;  %v7039_v63 = vadd.f32 %v3340_v55, %v3284_v20 }
 0x5b3   :  { %v3343_v40 = vpop.f32.mrf.mxu1 }
 0x5b4   :  { %v3004_v13 = vpop.f32.mrf.mxu2 }
 0x5b5   :  { %v3102_v39 = vadd.f32 %v3101_v33, %v3004_v13 }
 0x5b6   :  { %v3254_v14 = vpop.f32.mrf.mxu0  ;;  %4493 = vmatmul.msk.f32.gmra.mxu3 %vm2555_vm11, %v6831_v47  ;;  %4524 = vmatmul.msk.f32.gmra.mxu1 %vm2555_vm11, %v3676_v11 }
 0x5b7   :  { %v3285_v59 = vadd.f32 %v3251_v18, %v3102_v39 }
 0x5b9   :  { %v3104_v15 = vpop.f32.mrf.mxu3  ;;  %4477 = vmatmul.msk.f32.gmra.mxu2 %vm2555_vm11, %v6828_v4  ;;  %4509 = vmatmul.msk.f32.gmra.mxu0 %vm2555_vm11, %v6837_v44  ;;  %v7049_v12 = vadd.f32 %v3343_v40, %v3285_v59 }
 0x5bb   :  { %v3346_v22 = vpop.f32.mrf.mxu1 }
 0x5bc   :  { %v3007_v10 = vpop.f32.mrf.mxu2 }
 0x5bd   :  { %v3105_v56 = vadd.f32 %v3104_v15, %v3007_v10 }
 0x5be   :  { %v3257_v42 = vpop.f32.mrf.mxu0  ;;  %4494 = vmatmul.msk.f32.gmra.mxu3 %vm2555_vm11, %v6849_v29  ;;  %4525 = vmatmul.msk.f32.gmra.mxu1 %vm2555_vm11, %v6846_v57 }
 0x5bf   :  { %v3286_v47 = vadd.f32 %v3254_v14, %v3105_v56 }
 0x5c1   :  { %v3107_v36 = vpop.f32.mrf.mxu3  ;;  %4478 = vmatmul.msk.f32.gmra.mxu2 %vm2555_vm11, %v6846_v57  ;;  %4510 = vmatmul.msk.f32.gmra.mxu0 %vm2555_vm11, %v6855_v51  ;;  %v7059_v4 = vadd.f32 %v3346_v22, %v3286_v47 }
 0x5c3   :  { %v3349_v44 = vpop.f32.mrf.mxu1 }
 0x5c4   :  { %v3010_v55 = vpop.f32.mrf.mxu2 }
 0x5c5   :  { %v3108_v19 = vadd.f32 %v3107_v36, %v3010_v55 }
 0x5c6   :  { %v3260_v3 = vpop.f32.mrf.mxu0  ;;  %4495 = vmatmul.msk.f32.gmra.mxu3 %vm2555_vm11, %v6867_v58  ;;  %4526 = vmatmul.msk.f32.gmra.mxu1 %vm2555_vm11, %v6864_v30 }
 0x5c7   :  { %v3287_v5 = vadd.f32 %v3257_v42, %v3108_v19  ;;  %v3391_v19 = vrot.slane %v6947_v52, 1 }
 0x5c9   :  { %v3110_v18 = vpop.f32.mrf.mxu3  ;;  %4479 = vmatmul.msk.f32.gmra.mxu2 %vm2555_vm11, %v6864_v30  ;;  %4511 = vmatmul.msk.f32.gmra.mxu0 %vm2555_vm11, %v6869_v17  ;;  %v7069_v57 = vadd.f32 %v3349_v44, %v3287_v5  ;;  %v2842_v44 = vld [vmem:[#allocation4 + $0x128] sm:$0x3] }
 0x5ca   :  { %v3392_v5 = vrot.slane %v2842_v44, 1 }
 0x5cb   :  { %v3352_v51 = vpop.f32.mrf.mxu1 }
 0x5cc   :  { %v3013_v20 = vpop.f32.mrf.mxu2 }
 0x5cd   :  { %v3111_v46 = vadd.f32 %v3110_v18, %v3013_v20 }
 0x5ce   :  { %v3263_v61 = vpop.f32.mrf.mxu0  ;;  %4496 = vmatmul.msk.f32.gmra.mxu3 %vm2555_vm11, %v6885_v9  ;;  %4527 = vmatmul.msk.f32.gmra.mxu1 %vm2555_vm11, %v6882_v54 }
 0x5cf   :  { %v3288_v33 = vadd.f32 %v3260_v3, %v3111_v46  ;;  %v7113_v46 = vld [vmem:[#allocation4 + $0x130] sm:$0xff] }
 0x5d1   :  { %v3113_v40 = vpop.f32.mrf.mxu3  ;;  %4480 = vmatmul.msk.f32.gmra.mxu2 %vm2555_vm11, %v6882_v54  ;;  %4512 = vmatmul.msk.f32.gmra.mxu0 %vm2555_vm11, %v6887_v16  ;;  %v7079_v30 = vadd.f32 %v3352_v51, %v3288_v33 }
 0x5d3   :  { %v3355_v17 = vpop.f32.mrf.mxu1 }
 0x5d4   :  { %v3016_v11 = vpop.f32.mrf.mxu2 }
 0x5d5   :  { %v3114_v13 = vadd.f32 %v3113_v40, %v3016_v11  ;;  %v3677_v11 = vrot.slane %v7113_v46, 1 }
 0x5d6   :  { %v3266_v39 = vpop.f32.mrf.mxu0  ;;  %4497 = vmatmul.msk.f32.gmra.mxu3 %vm2555_vm11, %v6903_v62  ;;  %4528 = vmatmul.msk.f32.gmra.mxu1 %vm2555_vm11, %v6900_v31 }
 0x5d7   :  { %v3289_v14 = vadd.f32 %v3263_v61, %v3114_v13  ;;  %v7115_v61 = vld [vmem:[#allocation4 + $0x138] sm:$0x3] }
 0x5d8   :  { %v3678_v13 = vrot.slane %v7115_v61, 1 }
 0x5d9   :  { %v3116_v59 = vpop.f32.mrf.mxu3  ;;  %4481 = vmatmul.msk.f32.gmra.mxu2 %vm2555_vm11, %v6900_v31  ;;  %4513 = vmatmul.msk.f32.gmra.mxu0 %vm2555_vm11, %v6909_v0  ;;  %v7089_v54 = vadd.f32 %v3355_v17, %v3289_v14  ;;  %v3393_v17 = vsel %vm224_vm4, %v3391_v19, %v3392_v5 }
 0x5db   :  { %v3358_v16 = vpop.f32.mrf.mxu1 }
 0x5dc   :  { %v3019_v15 = vpop.f32.mrf.mxu2 }
 0x5dd   :  { %v3117_v6 = vadd.f32 %v3116_v59, %v3019_v15  ;;  %v3081_v59 = vadd.f32 %v6953_v45, %v6961_v37  ;;  %v3679_v15 = vsel %vm224_vm4, %v3677_v11, %v3678_v13 }
 0x5de   :  { %v3269_v22 = vpop.f32.mrf.mxu0  ;;  %4498 = vmatmul.msk.f32.gmra.mxu3 %vm2555_vm11, %v6921_v7  ;;  %4529 = vmatmul.msk.f32.gmra.mxu1 %vm2555_vm11, %v6918_v2 }
 0x5df   :  { %v3290_v10 = vadd.f32 %v3266_v39, %v3117_v6 }
 0x5e1   :  { %v3119_v56 = vpop.f32.mrf.mxu3  ;;  %4482 = vmatmul.msk.f32.gmra.mxu2 %vm2555_vm11, %v6918_v2  ;;  %4514 = vmatmul.msk.f32.gmra.mxu0 %vm2555_vm11, %v6927_v48  ;;  %v7099_v31 = vadd.f32 %v3358_v16, %v3290_v10  ;;  %v3487_v2 = vrot.slane %v6947_v52, 2  ;;  %v3488_v48 = vrot.slane %v2842_v44, 2  ;;  %v3278_v10 = vadd.f32 %v6945_v27, %v3081_v59 }
 0x5e3   :  { %v3361_v0 = vpop.f32.mrf.mxu1  ;;  %v7118_v40 = vsel %vm476_vm3, %v3487_v2, %v3488_v48 }
 0x5e4   :  { %v3022_v42 = vpop.f32.mrf.mxu2 }
 0x5e5   :  { %v3120_v47 = vadd.f32 %v3119_v56, %v3022_v42 }
 0x5e6   :  { %v3272_v36 = vpop.f32.mrf.mxu0  ;;  %4499 = vmatmul.msk.f32.gmra.mxu3 %vm2555_vm11, %v6939_v24  ;;  %4530 = vmatmul.msk.f32.gmra.mxu1 %vm2555_vm11, %v6936_v53 }
 0x5e7   :  { %v3291_v55 = vadd.f32 %v3269_v22, %v3120_v47 }
 0x5e9   :  { %v3122_v3 = vpop.f32.mrf.mxu3  ;;  %4483 = vmatmul.msk.f32.gmra.mxu2 %vm2555_vm11, %v6936_v53  ;;  %4515 = vmatmul.msk.f32.gmra.mxu0 %vm2555_vm11, %v6947_v52  ;;  %v7111_v18 = vadd.f32 %v3361_v0, %v3291_v55 }
 0x5eb   :  { %v3364_v51 = vpop.f32.mrf.mxu1 }
 0x5ec   :  { %v3025_v20 = vpop.f32.mrf.mxu2 }
 0x5ed   :  { %v3123_v33 = vadd.f32 %v3122_v3, %v3025_v20 }
 0x5ee   :  { %v3275_v53 = vpop.f32.mrf.mxu0  ;;  %4500 = vmatmul.msk.f32.gmra.mxu3 %vm2555_vm11, %v7118_v40  ;;  %4531 = vmatmul.msk.f32.gmra.mxu1 %vm2555_vm11, %v3393_v17 }
 0x5ef   :  { %v3292_v52 = vadd.f32 %v3272_v36, %v3123_v33  ;;  %v3370_v36 = vadd.f32 %v6959_v49, %v3278_v10 }
 0x5f1   :  { %v3125_v39 = vpop.f32.mrf.mxu3  ;;  %4484 = vmatmul.msk.f32.gmra.mxu2 %vm2555_vm11, %v3393_v17  ;;  %4516 = vmatmul.msk.f32.gmra.mxu0 %vm2555_vm11, %v7113_v46  ;;  %v7129_v14 = vadd.f32 %v3364_v51, %v3292_v52 }
 0x5f3   :  { %v3367_v16 = vpop.f32.mrf.mxu1 }
 0x5f4   :  { %v3028_v6 = vpop.f32.mrf.mxu2 }
 0x5f5   :  { %v3126_v22 = vadd.f32 %v3125_v39, %v3028_v6 }
 0x5f6   :  { %4532 = vmatmul.msk.f32.gmra.mxu1 %vm2555_vm11, %v3679_v15  ;;  %v3608_v0 = vpop.f32.mrf.mxu0 }
 0x5f7   :  { %v3293_v56 = vadd.f32 %v3275_v53, %v3126_v22 }
 0x5f9   :  { %v3516_v42 = vpop.f32.mrf.mxu3  ;;  %4533 = vmatmul.msk.f32.vlgmr.msra.gmra.mxu2 %vm2555_vm11, %v6720_v8  ;;  %v7138_v47 = vadd.f32 %v3367_v16, %v3293_v56 }
 0x5fb   :  { %v3706_v45 = vpop.f32.mrf.mxu1 }
 0x5fc   :  { %v3420_v37 = vpop.f32.mrf.mxu2 }
 0x5fd   :  { %v3468_v44 = vadd.f32 %v3420_v37, %v3370_v36 }
 0x5fe   :  { %v3611_v27 = vpop.f32.mrf.mxu0 }
 0x5ff   :  { %v3564_v55 = vadd.f32 %v3516_v42, %v3468_v44 }
 0x601   :  { %v3519_v19 = vpop.f32.mrf.mxu3  ;;  %4534 = vmatmul.msk.f32.gmra.mxu2 %vm2555_vm11, %v6738_v26  ;;  %v3656_v2 = vadd.f32 %v3608_v0, %v3564_v55 }
 0x603   :  { %v7143_v3 = vadd.f32 %v3706_v45, %v3656_v2  ;;  %v3709_v48 = vpop.f32.mrf.mxu1 }
 0x604   :  { %v3423_v5 = vpop.f32.mrf.mxu2 }
 0x605   :  { %v3469_v8 = vadd.f32 %v3423_v5, %v6979_v50 }
 0x606   :  { %v3614_v17 = vpop.f32.mrf.mxu0 }
 0x607   :  { %v3565_v51 = vadd.f32 %v3519_v19, %v3469_v8 }
 0x609   :  { %4535 = vmatmul.msk.f32.gmra.mxu2 %vm2555_vm11, %v6756_v21  ;;  %v3657_v49 = vadd.f32 %v3611_v27, %v3565_v51  ;;  %v3522_v20 = vpop.f32.mrf.mxu3 }
 0x60b   :  { %v7148_v33 = vadd.f32 %v3709_v48, %v3657_v49  ;;  %v3712_v52 = vpop.f32.mrf.mxu1 }
 0x60c   :  { %v3426_v53 = vpop.f32.mrf.mxu2 }
 0x60d   :  { %v3470_v26 = vadd.f32 %v3426_v53, %v6989_v23 }
 0x60e   :  { %v3617_v16 = vpop.f32.mrf.mxu0 }
 0x60f   :  { %v3566_v11 = vadd.f32 %v3522_v20, %v3470_v26 }
 0x611   :  { %4536 = vmatmul.msk.f32.gmra.mxu2 %vm2555_vm11, %v6774_v38  ;;  %v3658_v13 = vadd.f32 %v3614_v17, %v3566_v11  ;;  %v3525_v50 = vpop.f32.mrf.mxu3 }
 0x613   :  { %v7153_v39 = vadd.f32 %v3712_v52, %v3658_v13  ;;  %v3715_v6 = vpop.f32.mrf.mxu1 }
 0x614   :  { %v3429_v59 = vpop.f32.mrf.mxu2 }
 0x615   :  { %v3471_v21 = vadd.f32 %v3429_v59, %v6999_v28 }
 0x616   :  { %v3620_v42 = vpop.f32.mrf.mxu0 }
 0x617   :  { %v3567_v15 = vadd.f32 %v3525_v50, %v3471_v21 }
 0x619   :  { %4537 = vmatmul.msk.f32.gmra.mxu2 %vm2555_vm11, %v6792_v32  ;;  %v3659_v22 = vadd.f32 %v3617_v16, %v3567_v15  ;;  %v3528_v38 = vpop.f32.mrf.mxu3  ;;  %v3770_v32 = vrot.slane %v7032_v41, 2 }
 0x61b   :  { %v7158_v23 = vadd.f32 %v3715_v6, %v3659_v22  ;;  %v3718_v28 = vpop.f32.mrf.mxu1 }
 0x61c   :  { %v3432_v10 = vpop.f32.mrf.mxu2 }
 0x61d   :  { %v3472_v56 = vadd.f32 %v3432_v10, %v7009_v35  ;;  %v3771_v35 = vrot.slane %v7023_v34, 2 }
 0x61e   :  { %v3623_v20 = vpop.f32.mrf.mxu0 }
 0x61f   :  { %v3568_v0 = vadd.f32 %v3528_v38, %v3472_v56 }
 0x621   :  { %4538 = vmatmul.msk.f32.gmra.mxu2 %vm2555_vm11, %v6810_v25  ;;  %v3660_v36 = vadd.f32 %v3620_v42, %v3568_v0  ;;  %v3772_v25 = vsel %vm476_vm3, %v3770_v32, %v3771_v35  ;;  %v3531_v51 = vpop.f32.mrf.mxu3 }
 0x623   :  { %v7163_v45 = vadd.f32 %v3718_v28, %v3660_v36  ;;  %v3721_v52 = vpop.f32.mrf.mxu1 }
 0x624   :  { %v3435_v37 = vpop.f32.mrf.mxu2 }
 0x625   :  { %v7166_v44 = vadd.f32 %v3435_v37, %v7021_v43 }
 0x626   :  { %v3626_v59 = vpop.f32.mrf.mxu0 }
 0x627   :  { %v3569_v56 = vadd.f32 %v3531_v51, %v7166_v44 }
 0x629   :  { %4539 = vmatmul.msk.f32.gmra.mxu2 %vm2555_vm11, %v7026_v60  ;;  %v3661_v28 = vadd.f32 %v3623_v20, %v3569_v56 }
 0x62b   :  { %v3724_v6 = vpop.f32.mrf.mxu1 }
 0x62c   :  { %v3438_v55 = vpop.f32.mrf.mxu2 }
 0x62d   :  { %v7173_v19 = vadd.f32 %v3438_v55, %v7039_v63  ;;  %v3759_v55 = vadd.f32 %v3721_v52, %v3661_v28 }
 0x62e   :  { %v3629_v42 = vpop.f32.mrf.mxu0 }
 0x631   :  { %4540 = vmatmul.msk.f32.gmra.mxu2 %vm2555_vm11, %v3772_v25 }
 0x633   :  { %v3727_v37 = vpop.f32.mrf.mxu1 }
 0x634   :  { %v3441_v2 = vpop.f32.mrf.mxu2 }
 0x635   :  { %v7178_v27 = vadd.f32 %v3441_v2, %v7049_v12 }
 0x639   :  { %4541 = vmatmul.msk.f32.gmra.mxu2 %vm2555_vm11, %v6849_v29 }
 0x63c   :  { %v3444_v43 = vpop.f32.mrf.mxu2 }
 0x63d   :  { %v7183_v60 = vadd.f32 %v3444_v43, %v7059_v4 }
 0x641   :  { %4542 = vmatmul.msk.f32.gmra.mxu2 %vm2555_vm11, %v6867_v58 }
 0x644   :  { %v3447_v34 = vpop.f32.mrf.mxu2 }
 0x645   :  { %v7188_v41 = vadd.f32 %v3447_v34, %v7069_v57  ;;  %v3632_v34 = vpop.f32.mrf.mxu0 }
 0x649   :  { %4543 = vmatmul.msk.f32.gmra.mxu2 %vm2555_vm11, %v6885_v9 }
 0x64c   :  { %v3450_v63 = vpop.f32.mrf.mxu2 }
 0x64d   :  { %v7193_v12 = vadd.f32 %v3450_v63, %v7079_v30 }
 0x651   :  { %4544 = vmatmul.msk.f32.gmra.mxu2 %vm2555_vm11, %v6903_v62  ;;  %v3773_v62 = vrot.slane %v7113_v46, 2  ;;  %v7226_v46 = vld [vmem:[%s7497_s10] ss:$0 sm:$0xff] }
 0x654   :  { %v3453_v29 = vpop.f32.mrf.mxu2 }
 0x655   :  { %v7198_v4 = vadd.f32 %v3453_v29, %v7089_v54  ;;  %v3774_v54 = vrot.slane %v7115_v61, 2 }
 0x659   :  { %4545 = vmatmul.msk.f32.gmra.mxu2 %vm2555_vm11, %v6921_v7 }
 0x65c   :  { %v3456_v58 = vpop.f32.mrf.mxu2 }
 0x65d   :  { %v7203_v57 = vadd.f32 %v3456_v58, %v7099_v31  ;;  %v3775_v31 = vsel %vm476_vm3, %v3773_v62, %v3774_v54  ;;  %v3730_v62 = vpop.f32.mrf.mxu1 }
 0x661   :  { %4546 = vmatmul.msk.f32.gmra.mxu2 %vm2555_vm11, %v6939_v24 }
 0x664   :  { %v3459_v9 = vpop.f32.mrf.mxu2 }
 0x665   :  { %v7208_v30 = vadd.f32 %v3459_v9, %v7111_v18 }
 0x669   :  { %4547 = vmatmul.msk.f32.gmra.mxu2 %vm2555_vm11, %v7118_v40 }
 0x66c   :  { %v3462_v48 = vpop.f32.mrf.mxu2 }
 0x66d   :  { %v7215_v7 = vadd.f32 %v3462_v48, %v7129_v14 }
 0x671   :  { %4548 = vmatmul.msk.f32.gmra.mxu2 %vm2555_vm11, %v3775_v31 }
 0x674   :  { %v3465_v24 = vpop.f32.mrf.mxu2 }
 0x675   :  { %v7220_v5 = vadd.f32 %v3465_v24, %v7138_v47 }
 0x67c   :  { %v3802_v18 = vpop.f32.mrf.mxu2 }
 0x67d   :  { %v3850_v8 = vadd.f32 %v3802_v18, %v7143_v3 }
 0x67f   :  { %v7229_v40 = vadd.f32 %v7226_v46, %v3850_v8  ;;  %v3635_v8 = vpop.f32.mrf.mxu0 }
 0x681   :  { %v3887_v47 = vsel %vm3886_vm0, %v7229_v40, 0.0 }
 0x684   :  { %v3805_v61 = vpop.f32.mrf.mxu2 }
 0x685   :  { %v3851_v14 = vadd.f32 %v3805_v61, %v7148_v33  ;;  %v3534_v33 = vpop.f32.mrf.mxu3 }
 0x686   :  { %v3570_v35 = vadd.f32 %v3534_v33, %v7173_v19 }
 0x687   :  { %v7233_v49 = vadd.f32 %v7226_v46, %v3851_v14 }
 0x689   :  { %v3888_v3 = vsel %vm3886_vm0, %v7233_v49, 0.0 }
 0x68a   :  { %v3889_v17 = vadd.f32 %v3888_v3, %v3887_v47 }
 0x68c   :  { %v3808_v53 = vpop.f32.mrf.mxu2 }
 0x68d   :  { %v3852_v26 = vadd.f32 %v3808_v53, %v7153_v39  ;;  %v3537_v22 = vpop.f32.mrf.mxu3 }
 0x68e   :  { %v3571_v58 = vadd.f32 %v3537_v22, %v7178_v27  ;;  %v3733_v27 = vpop.f32.mrf.mxu1 }
 0x68f   :  { %v7241_v11 = vadd.f32 %v7226_v46, %v3852_v26 }
 0x690   :  { %v3663_v24 = vadd.f32 %v3629_v42, %v3571_v58 }
 0x691   :  { %v3890_v13 = vsel %vm3886_vm0, %v7241_v11, 0.0 }
 0x692   :  { %v3891_v50 = vadd.f32 %v3890_v13, %v3889_v17  ;;  %v3761_v51 = vadd.f32 %v3727_v37, %v3663_v24 }
 0x694   :  { %v3811_v21 = vpop.f32.mrf.mxu2 }
 0x695   :  { %v3853_v16 = vadd.f32 %v3811_v21, %v7158_v23  ;;  %v3540_v25 = vpop.f32.mrf.mxu3 }
 0x696   :  { %v3572_v14 = vadd.f32 %v3540_v25, %v7183_v60 }
 0x697   :  { %v7247_v15 = vadd.f32 %v7226_v46, %v3853_v16 }
 0x698   :  { %v3664_v17 = vadd.f32 %v3632_v34, %v3572_v14 }
 0x699   :  { %v3892_v39 = vsel %vm3886_vm0, %v7247_v15, 0.0 }
 0x69a   :  { %v3893_v10 = vadd.f32 %v3892_v39, %v3891_v50  ;;  %v3762_v13 = vadd.f32 %v3730_v62, %v3664_v17  ;;  %v3638_v50 = vpop.f32.mrf.mxu0 }
 0x69c   :  { %v3814_v38 = vpop.f32.mrf.mxu2 }
 0x69d   :  { %v3854_v0 = vadd.f32 %v3814_v38, %v7163_v45  ;;  %v3662_v45 = vadd.f32 %v3626_v59, %v3570_v35  ;;  %v3543_v19 = vpop.f32.mrf.mxu3 }
 0x69e   :  { %v3573_v33 = vadd.f32 %v3543_v19, %v7188_v41 }
 0x69f   :  { %v7254_v36 = vadd.f32 %v7226_v46, %v3854_v0  ;;  %v3760_v9 = vadd.f32 %v3724_v6, %v3662_v45  ;;  %v3736_v6 = vpop.f32.mrf.mxu1 }
 0x6a0   :  { %v3665_v16 = vadd.f32 %v3635_v8, %v3573_v33 }
 0x6a1   :  { %v3894_v23 = vsel %vm3886_vm0, %v7254_v36, 0.0 }
 0x6a2   :  { %v3895_v32 = vadd.f32 %v3894_v23, %v3893_v10  ;;  %v3763_v38 = vadd.f32 %v3733_v27, %v3665_v16  ;;  %v3641_v41 = vpop.f32.mrf.mxu0 }
 0x6a4   :  { %v3817_v2 = vpop.f32.mrf.mxu2 }
 0x6a5   :  { %v3855_v43 = vadd.f32 %v3817_v2, %v3759_v55  ;;  %v3546_v53 = vpop.f32.mrf.mxu3 }
 0x6a6   :  { %v3574_v56 = vadd.f32 %v3546_v53, %v7193_v12 }
 0x6a7   :  { %v7260_v44 = vadd.f32 %v7226_v46, %v3855_v43 }
 0x6a8   :  { %v3666_v23 = vadd.f32 %v3638_v50, %v3574_v56 }
 0x6a9   :  { %v3896_v63 = vsel %vm3886_vm0, %v7260_v44, 0.0 }
 0x6aa   :  { %v3897_v29 = vadd.f32 %v3896_v63, %v3895_v32  ;;  %v3739_v32 = vpop.f32.mrf.mxu1  ;;  %v3764_v25 = vadd.f32 %v3736_v6, %v3666_v23  ;;  %v3644_v63 = vpop.f32.mrf.mxu0 }
 0x6ac   :  { %v3820_v54 = vpop.f32.mrf.mxu2 }
 0x6ad   :  { %v3856_v48 = vadd.f32 %v3820_v54, %v3760_v9  ;;  %v3549_v22 = vpop.f32.mrf.mxu3 }
 0x6ae   :  { %v3575_v55 = vadd.f32 %v3549_v22, %v7198_v4 }
 0x6af   :  { %v7266_v31 = vadd.f32 %v7226_v46, %v3856_v48 }
 0x6b0   :  { %v3667_v34 = vadd.f32 %v3641_v41, %v3575_v55 }
 0x6b1   :  { %v3898_v18 = vsel %vm3886_vm0, %v7266_v31, 0.0 }
 0x6b2   :  { %v3899_v61 = vadd.f32 %v3898_v18, %v3897_v29  ;;  %v3765_v62 = vadd.f32 %v3739_v32, %v3667_v34  ;;  %v3742_v54 = vpop.f32.mrf.mxu1 }
 0x6b4   :  { %v3823_v47 = vpop.f32.mrf.mxu2 }
 0x6b5   :  { %v3857_v3 = vadd.f32 %v3823_v47, %v3761_v51  ;;  %v3552_v2 = vpop.f32.mrf.mxu3 }
 0x6b6   :  { %v3576_v9 = vadd.f32 %v3552_v2, %v7203_v57 }
 0x6b7   :  { %v7272_v20 = vadd.f32 %v7226_v46, %v3857_v3 }
 0x6b8   :  { %v3668_v18 = vadd.f32 %v3644_v63, %v3576_v9 }
 0x6b9   :  { %v3900_v26 = vsel %vm3886_vm0, %v7272_v20, 0.0 }
 0x6ba   :  { %v3901_v52 = vadd.f32 %v3900_v26, %v3899_v61  ;;  %v3647_v61 = vpop.f32.mrf.mxu0  ;;  %v3766_v47 = vadd.f32 %v3742_v54, %v3668_v18  ;;  %v3745_v17 = vpop.f32.mrf.mxu1 }
 0x6bc   :  { %v3826_v59 = vpop.f32.mrf.mxu2 }
 0x6bd   :  { %v3858_v21 = vadd.f32 %v3826_v59, %v3762_v13  ;;  %v3555_v4 = vpop.f32.mrf.mxu3 }
 0x6be   :  { %v3577_v51 = vadd.f32 %v3555_v4, %v7208_v30 }
 0x6bf   :  { %v7278_v60 = vadd.f32 %v7226_v46, %v3858_v21 }
 0x6c0   :  { %v3669_v53 = vadd.f32 %v3647_v61, %v3577_v51 }
 0x6c1   :  { %v3902_v39 = vsel %vm3886_vm0, %v7278_v60, 0.0 }
 0x6c2   :  { %v3903_v10 = vadd.f32 %v3902_v39, %v3901_v52  ;;  %v3767_v50 = vadd.f32 %v3745_v17, %v3669_v53  ;;  %v3650_v59 = vpop.f32.mrf.mxu0  ;;  %v3748_v39 = vpop.f32.mrf.mxu1 }
 0x6c4   :  { %v3829_v0 = vpop.f32.mrf.mxu2 }
 0x6c5   :  { %v3859_v42 = vadd.f32 %v3829_v0, %v3763_v38  ;;  %v3558_v26 = vpop.f32.mrf.mxu3 }
 0x6c6   :  { %v3578_v13 = vadd.f32 %v3558_v26, %v7215_v7 }
 0x6c7   :  { %v7284_v28 = vadd.f32 %v7226_v46, %v3859_v42 }
 0x6c8   :  { %v3670_v30 = vadd.f32 %v3650_v59, %v3578_v13 }
 0x6c9   :  { %v3904_v37 = vsel %vm3886_vm0, %v7284_v28, 0.0 }
 0x6ca   :  { %v3905_v35 = vadd.f32 %v3904_v37, %v3903_v10  ;;  %v3768_v0 = vadd.f32 %v3748_v39, %v3670_v30  ;;  %v3653_v42 = vpop.f32.mrf.mxu0  ;;  %v3751_v32 = vpop.f32.mrf.mxu1 }
 0x6cc   :  { %v3832_v43 = vpop.f32.mrf.mxu2 }
 0x6cd   :  { %v3860_v45 = vadd.f32 %v3832_v43, %v3764_v25  ;;  %v3561_v10 = vpop.f32.mrf.mxu3 }
 0x6ce   :  { %v3579_v38 = vadd.f32 %v3561_v10, %v7220_v5 }
 0x6cf   :  { %v7290_v12 = vadd.f32 %v7226_v46, %v3860_v45 }
 0x6d0   :  { %v3671_v37 = vadd.f32 %v3653_v42, %v3579_v38 }
 0x6d1   :  { %v3906_v29 = vsel %vm3886_vm0, %v7290_v12, 0.0 }
 0x6d2   :  { %v3907_v58 = vadd.f32 %v3906_v29, %v3905_v35  ;;  %v3769_v25 = vadd.f32 %v3751_v32, %v3671_v37 }
 0x6d4   :  { %v3835_v48 = vpop.f32.mrf.mxu2 }
 0x6d5   :  { %v3861_v19 = vadd.f32 %v3835_v48, %v3765_v62 }
 0x6d7   :  { %v3881_v24 = vadd.f32 %v7226_v46, %v3861_v19 }
 0x6d9   :  { %v3908_v8 = vsel %vm3886_vm0, %v3881_v24, 0.0 }
 0x6da   :  { %v3909_v14 = vadd.f32 %v3908_v8, %v3907_v58 }
 0x6dc   :  { %v3838_v3 = vpop.f32.mrf.mxu2 }
 0x6dd   :  { %v3862_v27 = vadd.f32 %v3838_v3, %v3766_v47 }
 0x6df   :  { %v3882_v57 = vadd.f32 %v7226_v46, %v3862_v27 }
 0x6e1   :  { %v3910_v52 = vsel %vm3886_vm0, %v3882_v57, 0.0 }
 0x6e2   :  { %v3911_v33 = vadd.f32 %v3910_v52, %v3909_v14 }
 0x6e4   :  { %v3841_v21 = vpop.f32.mrf.mxu2 }
 0x6e5   :  { %v3863_v16 = vadd.f32 %v3841_v21, %v3767_v50 }
 0x6e7   :  { %v3883_v6 = vadd.f32 %v7226_v46, %v3863_v16 }
 0x6e9   :  { %v3912_v22 = vsel %vm3886_vm0, %v3883_v6, 0.0 }
 0x6ea   :  { %v3913_v56 = vadd.f32 %v3912_v22, %v3911_v33 }
 0x6ec   :  { %v3844_v41 = vpop.f32.mrf.mxu2 }
 0x6ed   :  { %v3864_v23 = vadd.f32 %v3844_v41, %v3768_v0 }
 0x6ef   :  { %v3884_v7 = vadd.f32 %v7226_v46, %v3864_v23 }
 0x6f1   :  { %v3914_v35 = vsel %vm3886_vm0, %v3884_v7, 0.0 }
 0x6f2   :  { %v3915_v55 = vadd.f32 %v3914_v35, %v3913_v56 }
 0x6f4   :  { %v3847_v2 = vpop.f32.mrf.mxu2 }
 0x6f5   :  { %v3865_v43 = vadd.f32 %v3847_v2, %v3769_v25 }
 0x6f7   :  { %v3885_v45 = vadd.f32 %v7226_v46, %v3865_v43 }
 0x6f9   :  { %v3916_v34 = vsel %vm3886_vm0, %v3885_v45, 0.0 }
 0x6fa   :  { %v3917_v63 = vadd.f32 %v3916_v34, %v3915_v55 }
 0x6fc   :  { %v3918_v5 = vrot.slane %v3917_v63, 4 }
 0x6fe   :  { %v3919_v29 = vadd.f32 %v3918_v5, %v3917_v63 }
 0x700   :  { %v3920_v58 = vrot.slane %v3919_v29, 2 }
 0x702   :  { %v3921_v9 = vadd.f32 %v3920_v58, %v3919_v29 }
 0x704   :  { %v3922_v62 = vrot.slane %v3921_v9, 1 }
 0x706   :  { %v3923_v54 = vadd.f32 %v3922_v62, %v3921_v9 }
 0x708   :  { %v3924_v48 = vmul.f32 %v3923_v54, %v7548_v1 }
 0x70a   :  { %v7310_v19 = vsub.f32 %v7229_v40, %v3924_v48  ;;  %v7313_v4 = vsub.f32 %v7233_v49, %v3924_v48  ;;  %v7316_v18 = vsub.f32 %v7241_v11, %v3924_v48  ;;  %v7319_v46 = vsub.f32 %v7247_v15, %v3924_v48 }
 0x70b   :  { %v7322_v8 = vsub.f32 %v7254_v36, %v3924_v48  ;;  %v7325_v61 = vsub.f32 %v7260_v44, %v3924_v48  ;;  %v7328_v14 = vsub.f32 %v7266_v31, %v3924_v48  ;;  %v7331_v40 = vsub.f32 %v7272_v20, %v3924_v48 }
 0x70c   :  { %v7334_v49 = vsub.f32 %v7278_v60, %v3924_v48  ;;  %v7337_v11 = vsub.f32 %v7284_v28, %v3924_v48  ;;  %v7340_v15 = vsub.f32 %v7290_v12, %v3924_v48  ;;  %v7342_v36 = vsub.f32 %v3881_v24, %v3924_v48 }
 0x70d   :  { %v7344_v51 = vsub.f32 %v3882_v57, %v3924_v48  ;;  %v7346_v44 = vsub.f32 %v3883_v6, %v3924_v48  ;;  %v7348_v31 = vsub.f32 %v3884_v7, %v3924_v48  ;;  %v7350_v47 = vsub.f32 %v3885_v45, %v3924_v48 }
 0x70e   :  { %v3941_v20 = vmul.f32 %v7310_v19, %v7310_v19  ;;  %v3942_v60 = vmul.f32 %v7313_v4, %v7313_v4  ;;  %v3943_v28 = vmul.f32 %v7316_v18, %v7316_v18  ;;  %v3944_v12 = vmul.f32 %v7319_v46, %v7319_v46 }
 0x70f   :  { %v3945_v17 = vmul.f32 %v7322_v8, %v7322_v8  ;;  %v3946_v26 = vmul.f32 %v7325_v61, %v7325_v61  ;;  %v3947_v13 = vmul.f32 %v7328_v14, %v7328_v14  ;;  %v3948_v21 = vmul.f32 %v7331_v40, %v7331_v40 }
 0x710   :  { %v3957_v24 = vsel %vm3886_vm0, %v3941_v20, 0.0  ;;  %v3958_v3 = vsel %vm3886_vm0, %v3942_v60, 0.0  ;;  %v3960_v57 = vsel %vm3886_vm0, %v3943_v28, 0.0  ;;  %v3962_v52 = vsel %vm3886_vm0, %v3944_v12, 0.0 }
 0x711   :  { %v3959_v27 = vadd.f32 %v3958_v3, %v3957_v24  ;;  %v3964_v50 = vsel %vm3886_vm0, %v3945_v17, 0.0  ;;  %v3966_v16 = vsel %vm3886_vm0, %v3946_v26, 0.0  ;;  %v3949_v30 = vmul.f32 %v7334_v49, %v7334_v49 }
 0x712   :  { %v3968_v39 = vsel %vm3886_vm0, %v3947_v13, 0.0  ;;  %v3950_v10 = vmul.f32 %v7337_v11, %v7337_v11  ;;  %v3970_v56 = vsel %vm3886_vm0, %v3948_v21, 0.0  ;;  %v3951_v0 = vmul.f32 %v7340_v15, %v7340_v15 }
 0x713   :  { %v3961_v53 = vadd.f32 %v3960_v57, %v3959_v27  ;;  %v3972_v42 = vsel %vm3886_vm0, %v3949_v30, 0.0  ;;  %v3952_v23 = vmul.f32 %v7342_v36, %v7342_v36  ;;  %v3953_v32 = vmul.f32 %v7344_v51, %v7344_v51 }
 0x714   :  { %v3974_v37 = vsel %vm3886_vm0, %v3950_v10, 0.0  ;;  %v3976_v35 = vsel %vm3886_vm0, %v3951_v0, 0.0  ;;  %v3954_v25 = vmul.f32 %v7346_v44, %v7346_v44  ;;  %v3955_v45 = vmul.f32 %v7348_v31, %v7348_v31 }
 0x715   :  { %v3963_v33 = vadd.f32 %v3962_v52, %v3961_v53  ;;  %v3978_v2 = vsel %vm3886_vm0, %v3952_v23, 0.0  ;;  %v3980_v34 = vsel %vm3886_vm0, %v3953_v32, 0.0  ;;  %v3956_v5 = vmul.f32 %v7350_v47, %v7350_v47 }
 0x716   :  { %v3982_v29 = vsel %vm3886_vm0, %v3954_v25, 0.0  ;;  %v3984_v9 = vsel %vm3886_vm0, %v3955_v45, 0.0 }
 0x717   :  { %v3965_v59 = vadd.f32 %v3964_v50, %v3963_v33  ;;  %v3986_v54 = vsel %vm3886_vm0, %v3956_v5, 0.0 }
 0x719   :  { %v3967_v6 = vadd.f32 %v3966_v16, %v3965_v59 }
 0x71b   :  { %v3969_v22 = vadd.f32 %v3968_v39, %v3967_v6  ;;  %v4565_v6 = vld [vmem:[%s7498_s11] ss:$0 sm:$0xff] }
 0x71d   :  { %v3971_v38 = vadd.f32 %v3970_v56, %v3969_v22 }
 0x71f   :  { %v3973_v41 = vadd.f32 %v3972_v42, %v3971_v38 }
 0x721   :  { %v3975_v7 = vadd.f32 %v3974_v37, %v3973_v41 }
 0x723   :  { %v3977_v55 = vadd.f32 %v3976_v35, %v3975_v7 }
 0x725   :  { %v3979_v43 = vadd.f32 %v3978_v2, %v3977_v55 }
 0x727   :  { %v3981_v63 = vadd.f32 %v3980_v34, %v3979_v43 }
 0x729   :  { %v3983_v58 = vadd.f32 %v3982_v29, %v3981_v63 }
 0x72b   :  { %v3985_v62 = vadd.f32 %v3984_v9, %v3983_v58 }
 0x72d   :  { %v3987_v48 = vadd.f32 %v3986_v54, %v3985_v62 }
 0x72f   :  { %v3988_v20 = vrot.slane %v3987_v48, 4 }
 0x731   :  { %v3989_v60 = vadd.f32 %v3988_v20, %v3987_v48 }
 0x733   :  { %v3990_v28 = vrot.slane %v3989_v60, 2 }
 0x735   :  { %v3991_v12 = vadd.f32 %v3990_v28, %v3989_v60 }
 0x737   :  { %v3992_v24 = vrot.slane %v3991_v12, 1 }
 0x739   :  { %v3993_v3 = vadd.f32 %v3992_v24, %v3991_v12 }
 0x73b   :  { %v3994_v27 = vmul.f32 %v3993_v3, %v7548_v1 }
 0x73d   :  { %v3995_v17 = vadd.f32 1e-05, %v3994_v27 }
 0x73f   :  { %4573 = vrsqrt.f32 %v3995_v17  ;;  %vm4002_vm2 = vweird.f32 %v3995_v17 }
 0x745   :  { %v4574_v57 = vpop.eup %4573 }
 0x746   :  { %v3997_v53 = vmul.f32 %v4574_v57, %v3995_v17  ;;  %vm4003_vm1 = vweird.f32 %v4574_v57 }
 0x747   :  { %vm4004_vm3 = vmor %vm4002_vm2, %vm4003_vm1 }
 0x748   :  { %v3998_v26 = vmul.f32 %v4574_v57, %v3997_v53 }
 0x74a   :  { %v3999_v52 = vmul.f32 0.5, %v3998_v26 }
 0x74c   :  { %v4000_v33 = vsub.f32 1.5, %v3999_v52 }
 0x74e   :  { %v4001_v13 = vmul.f32 %v4574_v57, %v4000_v33 }
 0x750   :  { %v4005_v50 = vsel %vm4004_vm3, %v4574_v57, %v4001_v13 }
 0x751   :  { %v4006_v59 = vmul.f32 %v4005_v50, %v7310_v19  ;;  %v4007_v21 = vmul.f32 %v4005_v50, %v7313_v4  ;;  %v4008_v16 = vmul.f32 %v4005_v50, %v7316_v18  ;;  %v4009_v1 = vmul.f32 %v4005_v50, %v7319_v46 }
 0x752   :  { %v4010_v30 = vmul.f32 %v4005_v50, %v7322_v8  ;;  %v4011_v39 = vmul.f32 %v4005_v50, %v7325_v61  ;;  %v4012_v22 = vmul.f32 %v4005_v50, %v7328_v14  ;;  %v4013_v10 = vmul.f32 %v4005_v50, %v7331_v40  ;;  %v4566_v40 = vld [vmem:[%s7499_s12] ss:$0 sm:$0xff] }
 0x753   :  { %v4014_v19 = vmul.f32 %v4005_v50, %v7334_v49  ;;  %v4015_v4 = vmul.f32 %v4005_v50, %v7337_v11  ;;  %v4016_v18 = vmul.f32 %v4005_v50, %v7340_v15  ;;  %v4017_v46 = vmul.f32 %v4005_v50, %v7342_v36 }
 0x754   :  { %v4018_v56 = vmul.f32 %v4005_v50, %v7344_v51  ;;  %v4019_v38 = vmul.f32 %v4005_v50, %v7346_v44  ;;  %v4020_v8 = vmul.f32 %v4005_v50, %v7348_v31  ;;  %v4021_v61 = vmul.f32 %v4005_v50, %v7350_v47 }
 0x755   :  { %v4026_v0 = vmul.f32 %v4565_v6, %v4006_v59  ;;  %v4027_v14 = vmul.f32 %v4565_v6, %v4007_v21  ;;  %v4028_v42 = vmul.f32 %v4565_v6, %v4008_v16  ;;  %v4029_v49 = vmul.f32 %v4565_v6, %v4009_v1 }
 0x756   :  { %v4030_v11 = vmul.f32 %v4565_v6, %v4010_v30  ;;  %v4031_v15 = vmul.f32 %v4565_v6, %v4011_v39  ;;  %v4032_v41 = vmul.f32 %v4565_v6, %v4012_v22  ;;  %v4033_v37 = vmul.f32 %v4565_v6, %v4013_v10 }
 0x757   :  { %v4046_v36 = vadd.f32 %v4566_v40, %v4026_v0  ;;  %v4047_v23 = vadd.f32 %v4566_v40, %v4027_v14  ;;  %v4048_v51 = vadd.f32 %v4566_v40, %v4028_v42  ;;  %v4049_v44 = vadd.f32 %v4566_v40, %v4029_v49 }
 0x758   :  { %v4034_v7 = vmul.f32 %v4565_v6, %v4014_v19  ;;  %v4050_v31 = vadd.f32 %v4566_v40, %v4030_v11  ;;  %v4035_v32 = vmul.f32 %v4565_v6, %v4015_v4  ;;  %v4036_v47 = vmul.f32 %v4565_v6, %v4016_v18 }
 0x759   :  { %v4051_v35 = vadd.f32 %v4566_v40, %v4031_v15  ;;  %v4052_v55 = vadd.f32 %v4566_v40, %v4032_v41  ;;  %v4062_v25 = vmax.f32 %v4046_v36, 0.0  ;;  %v4063_v2 = vmax.f32 %v4047_v23, 0.0 }
 0x75a   :  { %v4064_v43 = vmax.f32 %v4048_v51, 0.0  ;;  %v4037_v45 = vmul.f32 %v4565_v6, %v4017_v46  ;;  %v4053_v34 = vadd.f32 %v4566_v40, %v4033_v37  ;;  %v4065_v63 = vmax.f32 %v4049_v44, 0.0 }
 0x75b   :  { %v4038_v5 = vmul.f32 %v4565_v6, %v4018_v56  ;;  %v4054_v29 = vadd.f32 %v4566_v40, %v4034_v7  ;;  %v4066_v58 = vmax.f32 %v4050_v31, 0.0  ;;  %4078 = vst.msk [vmem:[%s7500_s13] sm:$0xff] %vm3886_vm0, %v4062_v25  ;;  %v4039_v9 = vmul.f32 %v4565_v6, %v4019_v38 }
 0x75c   :  { %v4055_v62 = vadd.f32 %v4566_v40, %v4035_v32  ;;  %v4067_v54 = vmax.f32 %v4051_v35, 0.0  ;;  %4079 = vst.msk [vmem:[%s7500_s13 + $0x8] sm:$0xff] %vm3886_vm0, %v4063_v2  ;;  %v4040_v48 = vmul.f32 %v4565_v6, %v4020_v8  ;;  %v4056_v20 = vadd.f32 %v4566_v40, %v4036_v47 }
 0x75d   :  { %v4068_v60 = vmax.f32 %v4052_v55, 0.0  ;;  %4080 = vst.msk [vmem:[%s7500_s13 + $0x10] sm:$0xff] %vm3886_vm0, %v4064_v43  ;;  %v4041_v28 = vmul.f32 %v4565_v6, %v4021_v61  ;;  %v4057_v12 = vadd.f32 %v4566_v40, %v4037_v45  ;;  %v4069_v24 = vmax.f32 %v4053_v34, 0.0 }
 0x75e   :  { %4081 = vst.msk [vmem:[%s7500_s13 + $0x18] sm:$0xff] %vm3886_vm0, %v4065_v63  ;;  %v4058_v3 = vadd.f32 %v4566_v40, %v4038_v5  ;;  %v4070_v27 = vmax.f32 %v4054_v29, 0.0  ;;  %v4059_v17 = vadd.f32 %v4566_v40, %v4039_v9  ;;  %v4071_v57 = vmax.f32 %v4055_v62, 0.0 }
 0x75f   :  { %4082 = vst.msk [vmem:[%s7500_s13 + $0x20] sm:$0xff] %vm3886_vm0, %v4066_v58  ;;  %v4060_v53 = vadd.f32 %v4566_v40, %v4040_v48  ;;  %v4072_v26 = vmax.f32 %v4056_v20, 0.0  ;;  %v4061_v52 = vadd.f32 %v4566_v40, %v4041_v28  ;;  %v4073_v33 = vmax.f32 %v4057_v12, 0.0 }
 0x760   :  { %4083 = vst.msk [vmem:[%s7500_s13 + $0x28] sm:$0xff] %vm3886_vm0, %v4067_v54  ;;  %v4074_v13 = vmax.f32 %v4058_v3, 0.0  ;;  %v4075_v50 = vmax.f32 %v4059_v17, 0.0 }
 0x761   :  { %4084 = vst.msk [vmem:[%s7500_s13 + $0x30] sm:$0xff] %vm3886_vm0, %v4068_v60  ;;  %v4076_v59 = vmax.f32 %v4060_v53, 0.0  ;;  %v4077_v21 = vmax.f32 %v4061_v52, 0.0 }
 0x762   :  { %4085 = vst.msk [vmem:[%s7500_s13 + $0x38] sm:$0xff] %vm3886_vm0, %v4069_v24 }
 0x763   :  { %4086 = vst.msk [vmem:[%s7500_s13 + $0x40] sm:$0xff] %vm3886_vm0, %v4070_v27 }
 0x764   :  { %4087 = vst.msk [vmem:[%s7500_s13 + $0x48] sm:$0xff] %vm3886_vm0, %v4071_v57 }
 0x765   :  { %4088 = vst.msk [vmem:[%s7500_s13 + $0x50] sm:$0xff] %vm3886_vm0, %v4072_v26 }
 0x766   :  { %4089 = vst.msk [vmem:[%s7500_s13 + $0x58] sm:$0xff] %vm3886_vm0, %v4073_v33 }
 0x767   :  { %4090 = vst.msk [vmem:[%s7500_s13 + $0x60] sm:$0xff] %vm3886_vm0, %v4074_v13 }
 0x768   :  { %4091 = vst.msk [vmem:[%s7500_s13 + $0x68] sm:$0xff] %vm3886_vm0, %v4075_v50 }
 0x769   :  { %4092 = vst.msk [vmem:[%s7500_s13 + $0x70] sm:$0xff] %vm3886_vm0, %v4076_v59 }
 0x76a   :  { %4093 = vst.msk [vmem:[%s7500_s13 + $0x78] sm:$0xff] %vm3886_vm0, %v4077_v21 }
 0x76b   :  { %4098 = vsyncpa [#allocation6], 1 }
 0x76c   :  { %4099 = vsyncpa [#allocation8], 1 }

</bundles_post_ra>
